<compile_context>
chip_gen: v5e
topology: v5e:2x2
jax: 0.10.0
libtpu: 0.0.40
codegen_flags: <defaults>
</compile_context>

<pallas_src>
from math import pi
import functools

import numpy as np
import jax
import jax.numpy as jnp
from jax.experimental import pallas as pl
from jax.experimental.pallas import tpu as pltpu


COUT = 64            # conv output channels (both conv layers)
NSPLIT = 2           # classifier K-reduction splits (feeds both v7x TensorCores)
TK_MAX = 8192        # max classifier K tile (<= 2 MB bf16 weight block per step)


def _cdiv(a, b):
    return -(-a // b)


def _round_up(a, b):
    return _cdiv(a, b) * b


# ---------------------------------------------------------------------------
# Pallas kernels
# ---------------------------------------------------------------------------
def _conv_prelu_pool_kernel(xq_ref, w_ref, b_ref, a_ref, out_ref, *, wq, lq):
    """Fused 3x3 conv (reflect pad) + bias + PReLU + 2x2 max-pool.

    xq_ref : (1, 1, Rq, 4*Cin)  bf16  quarter-packed, row-flattened padded input
    w_ref  : (1, 4, 4*Cin, 256) bf16  packed conv weight for this color branch
    b_ref  : (1, 1, 256)        f32   conv bias, tiled over the 4 pool positions
    a_ref  : (1, 1, 256)        f32   PReLU slope, tiled likewise
    out_ref: (1, 1, Lq, 64)     bf16  pooled output (row-major, 1 junk col/row)
    """
    acc = None
    for t in range(4):                       # (ry, rx) quarter-cell offsets
        off = (t // 2) * wq + (t % 2)        # static sublane offset into the block
        tap = xq_ref[0, 0, off:off + lq, :]
        part = jnp.dot(tap, w_ref[0, t], preferred_element_type=jnp.float32)
        acc = part if acc is None else acc + part
    z = acc + b_ref[0]
    z = jnp.where(z > 0, z, a_ref[0] * z)    # PReLU (Dropout = inference identity)
    # 2x2 max-pool = max over the four 64-lane channel groups
    m = jnp.maximum(z[:, 0:128], z[:, 128:256])
    pooled = jnp.maximum(m[:, 0:64], m[:, 64:128])
    out_ref[0, 0] = pooled.astype(out_ref.dtype)


def _linear_partial_kernel(x_ref, w_ref, out_ref, acc_ref):
    """K-tiled partial matmul for the classifier (one partial sum per K split)."""
    k = pl.program_id(1)

    @pl.when(k == 0)
    def _():
        acc_ref[...] = jnp.zeros_like(acc_ref)

    acc_ref[...] += jnp.dot(x_ref[...], w_ref[...],
                            preferred_element_type=jnp.float32)

    @pl.when(k == pl.num_programs(1) - 1)
    def _():
        out_ref[0] = acc_ref[...]


# ---------------------------------------------------------------------------
# Kernel wrappers
# ---------------------------------------------------------------------------
def conv_prelu_pool(x, w, b, a, *, batch_major_out=False):
    """x: (G, B, H, W, Cin) -> (G, B, H//2, W//2, 64) bf16
    (or (B, G, H//2, W//2, 64) when batch_major_out, so the classifier input
    is a plain reshape with no layout-changing transpose in HBM)."""
    G, B, H, W, Cin = x.shape
    assert H % 2 == 0 and W % 2 == 0, "MaxPool2d(2) needs even spatial dims"
    Hq, Wq = (H + 2) // 2, (W + 2) // 2     # quarter grid of the padded image
    Ho, Wo = H // 2, W // 2                 # pooled output extents
    Lq = Ho * Wq                            # matmul rows (1 junk col per out row)
    Rq = Hq * Wq + 1                        # packed rows (+1 slack for last tap)
    K = 4 * Cin

    # reflect pad + space-to-depth(2) + row flatten (cheap bf16 JAX glue,
    # ~raw activation size -- replaces the old 9x HBM im2col).
    xb = x.astype(jnp.bfloat16)
    xp = jnp.pad(xb, ((0, 0), (0, 0), (1, 1), (1, 1), (0, 0)), mode="reflect")
    q = xp.reshape(G, B, Hq, 2, Wq, 2, Cin)
    q = jnp.transpose(q, (0, 1, 2, 4, 3, 5, 6)).reshape(G, B, Hq * Wq, K)
    q = jnp.pad(q, ((0, 0), (0, 0), (0, 1), (0, 0)))

    kernel = functools.partial(_conv_prelu_pool_kernel, wq=Wq, lq=Lq)
    if batch_major_out:
        out_shape = jax.ShapeDtypeStruct((B, G, Lq, COUT), jnp.bfloat16)
        out_spec = pl.BlockSpec((1, 1, Lq, COUT), lambda g, n: (n, g, 0, 0))
    else:
        out_shape = jax.ShapeDtypeStruct((G, B, Lq, COUT), jnp.bfloat16)
        out_spec = pl.BlockSpec((1, 1, Lq, COUT), lambda g, n: (g, n, 0, 0))

    out = pl.pallas_call(
        kernel,
        out_shape=out_shape,
        grid=(G, B),
        in_specs=[
            pl.BlockSpec((1, 1, Rq, K), lambda g, n: (g, n, 0, 0)),
            pl.BlockSpec((1, 4, K, 4 * COUT), lambda g, n: (g, 0, 0, 0)),
            pl.BlockSpec((1, 1, 4 * COUT), lambda g, n: (g, 0, 0)),
            pl.BlockSpec((1, 1, 4 * COUT), lambda g, n: (g, 0, 0)),
        ],
        out_specs=out_spec,
        compiler_params=pltpu.CompilerParams(
            dimension_semantics=("parallel", "parallel")),
    )(q, w, b, a)

    # strip the single junk column introduced by the padded quarter-domain width
    if batch_major_out:
        out = out.reshape(B, G, Ho, Wq, COUT)[..., :Wo, :]
    else:
        out = out.reshape(G, B, Ho, Wq, COUT)[..., :Wo, :]
    return out


def _classifier_tiling(F):
    """Classifier contraction tiling: (tile_k, k_tiles_per_split, padded_F)."""
    f_r = _round_up(F, 128 * NSPLIT)
    kt = max(1, _cdiv(f_r, NSPLIT * TK_MAX))
    tk = _round_up(_cdiv(f_r, NSPLIT * kt), 128)
    return tk, kt, NSPLIT * kt * tk


def linear_partial(x_cat, w_packed, tk, kt):
    """(B, F_pad) bf16 @ (F_pad, 128) bf16 -> (NSPLIT, B, 128) f32 partial sums."""
    B, F_pad = x_cat.shape
    assert w_packed.shape[0] == F_pad and F_pad == NSPLIT * kt * tk
    return pl.pallas_call(
        _linear_partial_kernel,
        out_shape=jax.ShapeDtypeStruct((NSPLIT, B, 128), jnp.float32),
        grid=(NSPLIT, kt),
        in_specs=[
            pl.BlockSpec((B, tk), lambda s, k: (0, s * kt + k)),
            pl.BlockSpec((tk, 128), lambda s, k: (s * kt + k, 0)),
        ],
        out_specs=pl.BlockSpec((1, B, 128), lambda s, k: (s, 0, 0)),
        scratch_shapes=[pltpu.VMEM((B, 128), jnp.float32)],
        compiler_params=pltpu.CompilerParams(
            dimension_semantics=("parallel", "arbitrary"),
            vmem_limit_bytes=32 * 1024 * 1024),
    )(x_cat, w_packed)


# ---------------------------------------------------------------------------
# Color conversions (kornia semantics) -- plain JAX glue on NCHW tensors
# ---------------------------------------------------------------------------
def rgb_to_hsv(x, eps=1e-8):
    r, g, b = x[:, 0], x[:, 1], x[:, 2]
    maxc = jnp.max(x, axis=1)
    minc = jnp.min(x, axis=1)
    imax = jnp.argmax(x, axis=1)
    deltac = maxc - minc
    v = maxc
    s = deltac / (maxc + eps)
    dsafe = jnp.where(deltac == 0, jnp.ones_like(deltac), deltac)
    rc, gc, bc = maxc - r, maxc - g, maxc - b
    h0 = bc - gc
    h1 = (rc - bc) + 2.0 * dsafe
    h2 = (gc - rc) + 4.0 * dsafe
    h = jnp.where(imax == 0, h0, jnp.where(imax == 1, h1, h2)) / dsafe
    h = ((h / 6.0) % 1.0) * (2.0 * jnp.pi)
    return jnp.stack([h, s, v], axis=1)


def rgb_to_hls(x, eps=1e-8):
    r, g, b = x[:, 0], x[:, 1], x[:, 2]
    maxc = jnp.max(x, axis=1)
    minc = jnp.min(x, axis=1)
    imax = jnp.argmax(x, axis=1)
    l = (maxc + minc) * 0.5
    deltac = maxc - minc
    s = jnp.where(l < 0.5,
                  deltac / (maxc + minc + eps),
                  deltac / (2.0 - (maxc + minc) + eps))
    dsafe = jnp.where(deltac == 0, jnp.ones_like(deltac), deltac)
    h0 = (g - b) / dsafe
    h1 = 2.0 + (b - r) / dsafe
    h2 = 4.0 + (r - g) / dsafe
    h = jnp.where(imax == 0, h0, jnp.where(imax == 1, h1, h2))
    h = ((h / 6.0) % 1.0) * (2.0 * jnp.pi)
    h = jnp.where(deltac == 0, jnp.zeros_like(h), h)
    return jnp.stack([h, l, s], axis=1)


def rgb_to_xyz(x):
    r, g, b = x[:, 0], x[:, 1], x[:, 2]
    X = 0.412453 * r + 0.357580 * g + 0.180423 * b
    Y = 0.212671 * r + 0.715160 * g + 0.072169 * b
    Z = 0.019334 * r + 0.119193 * g + 0.950227 * b
    return jnp.stack([X, Y, Z], axis=1)


def rgb_to_ycbcr(x):
    r, g, b = x[:, 0], x[:, 1], x[:, 2]
    y = 0.299 * r + 0.587 * g + 0.114 * b
    cb = (b - y) * 0.564 + 0.5
    cr = (r - y) * 0.713 + 0.5
    return jnp.stack([y, cb, cr], axis=1)


def rgb_to_grayscale(x):
    r, g, b = x[:, 0], x[:, 1], x[:, 2]
    gray = 0.299 * r + 0.587 * g + 0.114 * b
    return gray[:, None, :, :]


def _color_branches(x_bhwc):
    """(B, H, W, 3) RGB in [0,1] -> (6, B, H, W, 3) normalized color branches."""
    x = jnp.transpose(x_bhwc, (0, 3, 1, 2))            # torch permute(0,-1,1,2)
    rgb = x * 2.0 - 1.0
    hsv = rgb_to_hsv(x)
    # torch: hsv[:, 1:] = hsv[:, 1:2]*2-1  -> channels 1 AND 2 both get S*2-1
    hsv = jnp.stack([hsv[:, 0] * (1.0 / pi) - 1.0,
                     hsv[:, 1] * 2.0 - 1.0,
                     hsv[:, 1] * 2.0 - 1.0], axis=1)
    hls = rgb_to_hls(x)
    hls = jnp.stack([hls[:, 0] * (1.0 / pi) - 1.0,
                     hls[:, 1] * 2.0 - 1.0,
                     hls[:, 1] * 2.0 - 1.0], axis=1)
    xyz = rgb_to_xyz(x) * 2.0 - 1.0
    ycbcr = rgb_to_ycbcr(x) * 2.0 - 1.0
    gray = rgb_to_grayscale(x) * 2.0 - 1.0
    gray3 = jnp.concatenate(
        [gray, jnp.zeros_like(gray), jnp.zeros_like(gray)], axis=1)
    feats = jnp.stack([rgb, hsv, hls, xyz, ycbcr, gray3], axis=0)   # (6,B,3,H,W)
    return jnp.transpose(feats, (0, 1, 3, 4, 2))                    # (6,B,H,W,3)


# ---------------------------------------------------------------------------
# Model forward (mirrors G.forward) and parameter init / packing
# ---------------------------------------------------------------------------
def g_forward(x_bhwc, params):
    B, H, W, _ = x_bhwc.shape
    assert H % 4 == 0 and W % 4 == 0, "two 2x2 max-pools require H, W % 4 == 0"
    feats = _color_branches(x_bhwc)                                 # (6,B,H,W,3)

    h1 = conv_prelu_pool(feats, params["w1"], params["b1"], params["a1"])
    h2 = conv_prelu_pool(h1, params["w2"], params["b2"], params["a2"],
                         batch_major_out=True)       # (B, 6, H//4, W//4, 64)

    F = 6 * (H // 4) * (W // 4) * COUT
    tk, kt, F_pad = _classifier_tiling(F)
    assert params["lin_w"].shape[0] == F_pad
    x_cat = h2.reshape(B, F)
    if F_pad > F:
        x_cat = jnp.pad(x_cat, ((0, 0), (0, F_pad - F)))
    partial = linear_partial(x_cat.astype(jnp.bfloat16), params["lin_w"], tk, kt)
    logits = jnp.sum(partial, axis=0)[:, :100] + params["lin_b"]
    return jax.nn.log_softmax(logits, axis=-1)


def _pack_conv_weight_quarter(w_oihw, cin_pad):
    """torch OIHW 3x3 weight -> (4 taps, 4*cin_pad, 4*Cout) quarter-packed weight."""
    w = np.zeros((COUT, cin_pad, 3, 3), np.float32)
    w[:, :w_oihw.shape[1]] = np.asarray(w_oihw, np.float32)
    wp = np.zeros((4, 4 * cin_pad, 4 * COUT), np.float32)
    for ry in range(2):
        for rx in range(2):
            t = 2 * ry + rx
            for ey in range(2):
                for ex in range(2):
                    for py in range(2):          # pool position (dy_out)
                        for px in range(2):
                            dy = 2 * ry + ey - py
                            dx = 2 * rx + ex - px
                            if 0 <= dy <= 2 and 0 <= dx <= 2:
                                ci = (2 * ey + ex) * cin_pad
                                co = (2 * py + px) * COUT
                                wp[t, ci:ci + cin_pad, co:co + COUT] = w[:, :, dy, dx].T
    return jnp.asarray(wp)


def init_params(key, H, W):
    in_chs = [3, 3, 3, 3, 3, 1]          # rgb, hsv, hls, xyz, ycbcr, gray
    keys = jax.random.split(key, 8)

    w1_raw, b1_raw, w2_raw, b2_raw = [], [], [], []
    w1p, b1p, w2p, b2p = [], [], [], []
    for i, cin in enumerate(in_chs):
        k1, k2, k3, k4 = jax.random.split(keys[i], 4)
        w1 = jax.random.normal(k1, (COUT, cin, 3, 3), jnp.float32) / (cin * 9) ** 0.5
        b1 = jax.random.normal(k2, (COUT,), jnp.float32) * 0.01
        w2 = jax.random.normal(k3, (COUT, COUT, 3, 3), jnp.float32) / (COUT * 9) ** 0.5
        b2 = jax.random.normal(k4, (COUT,), jnp.float32) * 0.01
        w1_raw.append(w1); b1_raw.append(b1); w2_raw.append(w2); b2_raw.append(b2)
        w1p.append(_pack_conv_weight_quarter(w1, 3))
        w2p.append(_pack_conv_weight_quarter(w2, COUT))
        b1p.append(jnp.tile(b1, 4).reshape(1, 4 * COUT))
        b2p.append(jnp.tile(b2, 4).reshape(1, 4 * COUT))
    alpha = jnp.full((6, 1, 4 * COUT), 0.25, jnp.float32)   # PReLU default slope

    M2 = (H // 4) * (W // 4)
    F = 6 * COUT * M2
    lin_w = jax.random.normal(keys[6], (100, F), jnp.float32) * 0.02  # torch (out,in)
    lin_b = jax.random.normal(keys[7], (100,), jnp.float32) * 0.01

    # Pre-pack the classifier weight ONCE: permute rows from the torch feature
    # order (branch, channel, spatial) to the kernel-natural order
    # (branch, spatial, channel), pad F -> F_pad rows and 100 -> 128 lanes, bf16.
    tk, kt, F_pad = _classifier_tiling(F)
    del tk, kt
    w_nat = lin_w.T.reshape(6, COUT, M2, 100)
    w_nat = jnp.transpose(w_nat, (0, 2, 1, 3)).reshape(F, 100)
    w_pad = jnp.zeros((F_pad, 128), jnp.float32).at[:F, :100].set(w_nat)
    w_pad = w_pad.astype(jnp.bfloat16)

    params = {
        "w1": jnp.stack(w1p).astype(jnp.bfloat16), "b1": jnp.stack(b1p), "a1": alpha,
        "w2": jnp.stack(w2p).astype(jnp.bfloat16), "b2": jnp.stack(b2p), "a2": alpha,
        "lin_w": w_pad, "lin_b": lin_b,
    }
    raw = {"w1": w1_raw, "b1": b1_raw, "w2": w2_raw, "b2": b2_raw,
           "lin_w": lin_w, "lin_b": lin_b}
    return params, raw


# ---------------------------------------------------------------------------
# Plain-JAX reference (same bf16 rounding points) for self-validation
# ---------------------------------------------------------------------------
def _ref_conv_block(x, w, b, alpha=0.25):
    Bn, H, W, _ = x.shape
    xb = x.astype(jnp.bfloat16).astype(jnp.float32)
    wb = w.astype(jnp.bfloat16).astype(jnp.float32)
    xp = jnp.pad(xb, ((0, 0), (1, 1), (1, 1), (0, 0)), mode="reflect")
    out = 0.0
    for dy in range(3):
        for dx in range(3):
            out = out + jnp.einsum("bhwc,oc->bhwo",
                                   xp[:, dy:dy + H, dx:dx + W, :], wb[:, :, dy, dx])
    out = out + b
    out = jnp.where(out > 0, out, alpha * out)
    return out.reshape(Bn, H // 2, 2, W // 2, 2, COUT).max(axis=(2, 4))


def reference_forward(x_bhwc, raw):
    in_chs = [3, 3, 3, 3, 3, 1]
    B = x_bhwc.shape[0]
    feats = _color_branches(x_bhwc)
    branch_feats = []
    for i in range(6):
        xi = feats[i][..., :in_chs[i]]
        h = _ref_conv_block(xi, raw["w1"][i], raw["b1"][i])
        h = _ref_conv_block(h, raw["w2"][i], raw["b2"][i])
        branch_feats.append(jnp.transpose(h, (0, 3, 1, 2)).reshape(B, -1))
    feat = jnp.concatenate(branch_feats, axis=1)
    f16 = feat.astype(jnp.bfloat16).astype(jnp.float32)
    w16 = raw["lin_w"].astype(jnp.bfloat16).astype(jnp.float32)
    logits = f16 @ w16.T + raw["lin_b"]
    return jax.nn.log_softmax(logits, axis=-1)


# ---------------------------------------------------------------------------
if __name__ == "__main__":
    key = jax.random.PRNGKey(0)
    kx, kp = jax.random.split(key)
    B, H, W = 2, 16, 16
    x = jax.random.uniform(kx, (B, H, W, 3), jnp.float32)    # RGB image in [0, 1]
    params, raw = init_params(kp, H, W)

    fwd = jax.jit(g_forward)
    y = jax.block_until_ready(fwd(x, params))

    assert y.shape == (B, 100), y.shape
    assert bool(jnp.all(jnp.isfinite(y)))
    # LogSoftmax rows must exponentiate to ~1
    assert bool(jnp.allclose(jnp.sum(jnp.exp(y), axis=1), 1.0, atol=1e-3))
    # validate against a plain-JAX reference using the raw (torch-layout) weights
    y_ref = reference_forward(x, raw)
    assert bool(jnp.allclose(y, y_ref, atol=3e-2, rtol=0.0)), \
        float(jnp.max(jnp.abs(y - y_ref)))
    print("KERNEL_OK")
</pallas_src>

<mosaic_0001>
module attributes {stable_mosaic.version = 11 : i64} {
  func.func @_conv_prelu_pool_kernel(%arg0: i32, %arg1: i32, %arg2: memref<1x1x82x12xbf16, #tpu.memory_space<vmem>>, %arg3: memref<1x4x12x256xbf16, #tpu.memory_space<vmem>>, %arg4: memref<1x1x256xf32, #tpu.memory_space<vmem>>, %arg5: memref<1x1x256xf32, #tpu.memory_space<vmem>>, %arg6: memref<1x1x72x64xbf16, #tpu.memory_space<vmem>>) attributes {dimension_semantics = [#tpu.dimension_semantics<parallel>, #tpu.dimension_semantics<parallel>], iteration_bounds = array<i64: 6, 2>, scalar_prefetch = 0 : i64, scratch_operands = 0 : i64, tpu.core_type = #tpu.core_type<tc>, window_params = [{transform_indices = @transform_0, window_bounds = array<i64: 1, 1, 82, 12>}, {transform_indices = @transform_1, window_bounds = array<i64: 1, 4, 12, 256>}, {transform_indices = @transform_2, window_bounds = array<i64: 1, 1, 256>}, {transform_indices = @transform_3, window_bounds = array<i64: 1, 1, 256>}, {transform_indices = @transform_4, window_bounds = array<i64: 1, 1, 72, 64>}]} {
    %c0 = arith.constant 0 : index
    %c0_0 = arith.constant 0 : index
    %c0_1 = arith.constant 0 : index
    %c0_2 = arith.constant 0 : index
    %0 = vector.load %arg2[%c0, %c0_0, %c0_1, %c0_2] : memref<1x1x82x12xbf16, #tpu.memory_space<vmem>>, vector<1x1x72x12xbf16>
    %1 = vector.shape_cast %0 : vector<1x1x72x12xbf16> to vector<72x12xbf16>
    %c0_3 = arith.constant 0 : index
    %c0_4 = arith.constant 0 : index
    %c0_5 = arith.constant 0 : index
    %c0_6 = arith.constant 0 : index
    %2 = vector.load %arg3[%c0_3, %c0_4, %c0_5, %c0_6] : memref<1x4x12x256xbf16, #tpu.memory_space<vmem>>, vector<1x1x12x256xbf16>
    %3 = vector.shape_cast %2 : vector<1x1x12x256xbf16> to vector<12x256xbf16>
    %cst = arith.constant dense<0.000000e+00> : vector<72x256xf32>
    %4 = tpu.matmul %1, %3, %cst {dimension_numbers = #tpu.dot_dimension_numbers<[1], [0], [0], [1], [0, 0, 1, 1], [], []>} : vector<72x12xbf16>, vector<12x256xbf16>, vector<72x256xf32> -> vector<72x256xf32>
    %c0_7 = arith.constant 0 : index
    %c0_8 = arith.constant 0 : index
    %c1 = arith.constant 1 : index
    %c0_9 = arith.constant 0 : index
    %5 = vector.load %arg2[%c0_7, %c0_8, %c1, %c0_9] : memref<1x1x82x12xbf16, #tpu.memory_space<vmem>>, vector<1x1x72x12xbf16>
    %6 = vector.shape_cast %5 : vector<1x1x72x12xbf16> to vector<72x12xbf16>
    %c0_10 = arith.constant 0 : index
    %c1_11 = arith.constant 1 : index
    %c0_12 = arith.constant 0 : index
    %c0_13 = arith.constant 0 : index
    %7 = vector.load %arg3[%c0_10, %c1_11, %c0_12, %c0_13] : memref<1x4x12x256xbf16, #tpu.memory_space<vmem>>, vector<1x1x12x256xbf16>
    %8 = vector.shape_cast %7 : vector<1x1x12x256xbf16> to vector<12x256xbf16>
    %cst_14 = arith.constant dense<0.000000e+00> : vector<72x256xf32>
    %9 = tpu.matmul %6, %8, %cst_14 {dimension_numbers = #tpu.dot_dimension_numbers<[1], [0], [0], [1], [0, 0, 1, 1], [], []>} : vector<72x12xbf16>, vector<12x256xbf16>, vector<72x256xf32> -> vector<72x256xf32>
    %10 = arith.addf %4, %9 : vector<72x256xf32>
    %c0_15 = arith.constant 0 : index
    %c0_16 = arith.constant 0 : index
    %c9 = arith.constant 9 : index
    %c0_17 = arith.constant 0 : index
    %11 = vector.load %arg2[%c0_15, %c0_16, %c9, %c0_17] : memref<1x1x82x12xbf16, #tpu.memory_space<vmem>>, vector<1x1x72x12xbf16>
    %12 = vector.shape_cast %11 : vector<1x1x72x12xbf16> to vector<72x12xbf16>
    %c0_18 = arith.constant 0 : index
    %c2 = arith.constant 2 : index
    %c0_19 = arith.constant 0 : index
    %c0_20 = arith.constant 0 : index
    %13 = vector.load %arg3[%c0_18, %c2, %c0_19, %c0_20] : memref<1x4x12x256xbf16, #tpu.memory_space<vmem>>, vector<1x1x12x256xbf16>
    %14 = vector.shape_cast %13 : vector<1x1x12x256xbf16> to vector<12x256xbf16>
    %cst_21 = arith.constant dense<0.000000e+00> : vector<72x256xf32>
    %15 = tpu.matmul %12, %14, %cst_21 {dimension_numbers = #tpu.dot_dimension_numbers<[1], [0], [0], [1], [0, 0, 1, 1], [], []>} : vector<72x12xbf16>, vector<12x256xbf16>, vector<72x256xf32> -> vector<72x256xf32>
    %16 = arith.addf %10, %15 : vector<72x256xf32>
    %c0_22 = arith.constant 0 : index
    %c0_23 = arith.constant 0 : index
    %c10 = arith.constant 10 : index
    %c0_24 = arith.constant 0 : index
    %17 = vector.load %arg2[%c0_22, %c0_23, %c10, %c0_24] : memref<1x1x82x12xbf16, #tpu.memory_space<vmem>>, vector<1x1x72x12xbf16>
    %18 = vector.shape_cast %17 : vector<1x1x72x12xbf16> to vector<72x12xbf16>
    %c0_25 = arith.constant 0 : index
    %c3 = arith.constant 3 : index
    %c0_26 = arith.constant 0 : index
    %c0_27 = arith.constant 0 : index
    %19 = vector.load %arg3[%c0_25, %c3, %c0_26, %c0_27] : memref<1x4x12x256xbf16, #tpu.memory_space<vmem>>, vector<1x1x12x256xbf16>
    %20 = vector.shape_cast %19 : vector<1x1x12x256xbf16> to vector<12x256xbf16>
    %cst_28 = arith.constant dense<0.000000e+00> : vector<72x256xf32>
    %21 = tpu.matmul %18, %20, %cst_28 {dimension_numbers = #tpu.dot_dimension_numbers<[1], [0], [0], [1], [0, 0, 1, 1], [], []>} : vector<72x12xbf16>, vector<12x256xbf16>, vector<72x256xf32> -> vector<72x256xf32>
    %22 = arith.addf %16, %21 : vector<72x256xf32>
    %c0_29 = arith.constant 0 : index
    %c0_30 = arith.constant 0 : index
    %c0_31 = arith.constant 0 : index
    %23 = vector.load %arg4[%c0_29, %c0_30, %c0_31] : memref<1x1x256xf32, #tpu.memory_space<vmem>>, vector<1x1x256xf32>
    %24 = vector.shape_cast %23 : vector<1x1x256xf32> to vector<1x256xf32>
    %25 = vector.broadcast %24 : vector<1x256xf32> to vector<72x256xf32>
    %26 = arith.addf %22, %25 : vector<72x256xf32>
    %cst_32 = arith.constant 0.000000e+00 : f32
    %27 = vector.broadcast %cst_32 : f32 to vector<72x256xf32>
    %28 = arith.cmpf ogt, %26, %27 : vector<72x256xf32>
    %c0_33 = arith.constant 0 : index
    %c0_34 = arith.constant 0 : index
    %c0_35 = arith.constant 0 : index
    %29 = vector.load %arg5[%c0_33, %c0_34, %c0_35] : memref<1x1x256xf32, #tpu.memory_space<vmem>>, vector<1x1x256xf32>
    %30 = vector.shape_cast %29 : vector<1x1x256xf32> to vector<1x256xf32>
    %31 = vector.broadcast %30 : vector<1x256xf32> to vector<72x256xf32>
    %32 = arith.mulf %31, %26 : vector<72x256xf32>
    %33 = arith.select %28, %26, %32 : vector<72x256xi1>, vector<72x256xf32>
    %34 = vector.extract_strided_slice %33 {offsets = [0, 0], sizes = [72, 128], strides = [1, 1]} : vector<72x256xf32> to vector<72x128xf32>
    %35 = vector.extract_strided_slice %33 {offsets = [0, 128], sizes = [72, 128], strides = [1, 1]} : vector<72x256xf32> to vector<72x128xf32>
    %36 = arith.maximumf %34, %35 : vector<72x128xf32>
    %37 = vector.extract_strided_slice %36 {offsets = [0, 0], sizes = [72, 64], strides = [1, 1]} : vector<72x128xf32> to vector<72x64xf32>
    %38 = vector.extract_strided_slice %36 {offsets = [0, 64], sizes = [72, 64], strides = [1, 1]} : vector<72x128xf32> to vector<72x64xf32>
    %39 = arith.maximumf %37, %38 : vector<72x64xf32>
    %40 = arith.truncf %39 : vector<72x64xf32> to vector<72x64xbf16>
    %c0_36 = arith.constant 0 : index
    %c0_37 = arith.constant 0 : index
    %c0_38 = arith.constant 0 : index
    %c0_39 = arith.constant 0 : index
    %41 = vector.load %arg6[%c0_36, %c0_37, %c0_38, %c0_39] : memref<1x1x72x64xbf16, #tpu.memory_space<vmem>>, vector<1x1x72x64xbf16>
    %42 = vector.shape_cast %41 : vector<1x1x72x64xbf16> to vector<72x64xbf16>
    %43 = vector.shape_cast %40 : vector<72x64xbf16> to vector<1x1x72x64xbf16>
    tpu.vector_store %arg6[%c0_36, %c0_37, %c0_38, %c0_39], %43 {strides = array<i32>} : memref<1x1x72x64xbf16, #tpu.memory_space<vmem>>, vector<1x1x72x64xbf16>,
    return
  }
  func.func @transform_0(%arg0: i32, %arg1: i32) -> (i32, i32, i32, i32) {
    %c0_i32 = arith.constant 0 : i32
    %c0_i32_0 = arith.constant 0 : i32
    %c0_i32_1 = arith.constant 0 : i32
    return %arg0, %arg1, %c0_i32, %c0_i32_0 : i32, i32, i32, i32
  }
  func.func @transform_1(%arg0: i32, %arg1: i32) -> (i32, i32, i32, i32) {
    %c0_i32 = arith.constant 0 : i32
    %c0_i32_0 = arith.constant 0 : i32
    %c0_i32_1 = arith.constant 0 : i32
    %c0_i32_2 = arith.constant 0 : i32
    return %arg0, %c0_i32, %c0_i32_0, %c0_i32_1 : i32, i32, i32, i32
  }
  func.func @transform_2(%arg0: i32, %arg1: i32) -> (i32, i32, i32) {
    %c0_i32 = arith.constant 0 : i32
    %c0_i32_0 = arith.constant 0 : i32
    %c0_i32_1 = arith.constant 0 : i32
    return %arg0, %c0_i32, %c0_i32_0 : i32, i32, i32
  }
  func.func @transform_3(%arg0: i32, %arg1: i32) -> (i32, i32, i32) {
    %c0_i32 = arith.constant 0 : i32
    %c0_i32_0 = arith.constant 0 : i32
    %c0_i32_1 = arith.constant 0 : i32
    return %arg0, %c0_i32, %c0_i32_0 : i32, i32, i32
  }
  func.func @transform_4(%arg0: i32, %arg1: i32) -> (i32, i32, i32, i32) {
    %c0_i32 = arith.constant 0 : i32
    %c0_i32_0 = arith.constant 0 : i32
    %c0_i32_1 = arith.constant 0 : i32
    return %arg0, %arg1, %c0_i32, %c0_i32_0 : i32, i32, i32, i32
  }
}

module attributes {stable_mosaic.version = 11 : i64} {
  func.func @_conv_prelu_pool_kernel(%arg0: i32, %arg1: i32, %arg2: memref<1x1x26x256xbf16, #tpu.memory_space<vmem>>, %arg3: memref<1x4x256x256xbf16, #tpu.memory_space<vmem>>, %arg4: memref<1x1x256xf32, #tpu.memory_space<vmem>>, %arg5: memref<1x1x256xf32, #tpu.memory_space<vmem>>, %arg6: memref<1x1x20x64xbf16, #tpu.memory_space<vmem>>) attributes {dimension_semantics = [#tpu.dimension_semantics<parallel>, #tpu.dimension_semantics<parallel>], iteration_bounds = array<i64: 6, 2>, scalar_prefetch = 0 : i64, scratch_operands = 0 : i64, tpu.core_type = #tpu.core_type<tc>, window_params = [{transform_indices = @transform_0, window_bounds = array<i64: 1, 1, 26, 256>}, {transform_indices = @transform_1, window_bounds = array<i64: 1, 4, 256, 256>}, {transform_indices = @transform_2, window_bounds = array<i64: 1, 1, 256>}, {transform_indices = @transform_3, window_bounds = array<i64: 1, 1, 256>}, {transform_indices = @transform_4, window_bounds = array<i64: 1, 1, 20, 64>}]} {
    %c0 = arith.constant 0 : index
    %c0_0 = arith.constant 0 : index
    %c0_1 = arith.constant 0 : index
    %c0_2 = arith.constant 0 : index
    %0 = vector.load %arg2[%c0, %c0_0, %c0_1, %c0_2] : memref<1x1x26x256xbf16, #tpu.memory_space<vmem>>, vector<1x1x20x256xbf16>
    %1 = vector.shape_cast %0 : vector<1x1x20x256xbf16> to vector<20x256xbf16>
    %c0_3 = arith.constant 0 : index
    %c0_4 = arith.constant 0 : index
    %c0_5 = arith.constant 0 : index
    %c0_6 = arith.constant 0 : index
    %2 = vector.load %arg3[%c0_3, %c0_4, %c0_5, %c0_6] : memref<1x4x256x256xbf16, #tpu.memory_space<vmem>>, vector<1x1x256x256xbf16>
    %3 = vector.shape_cast %2 : vector<1x1x256x256xbf16> to vector<256x256xbf16>
    %cst = arith.constant dense<0.000000e+00> : vector<20x256xf32>
    %4 = tpu.matmul %1, %3, %cst {dimension_numbers = #tpu.dot_dimension_numbers<[1], [0], [0], [1], [0, 0, 1, 1], [], []>} : vector<20x256xbf16>, vector<256x256xbf16>, vector<20x256xf32> -> vector<20x256xf32>
    %c0_7 = arith.constant 0 : index
    %c0_8 = arith.constant 0 : index
    %c1 = arith.constant 1 : index
    %c0_9 = arith.constant 0 : index
    %5 = vector.load %arg2[%c0_7, %c0_8, %c1, %c0_9] : memref<1x1x26x256xbf16, #tpu.memory_space<vmem>>, vector<1x1x20x256xbf16>
    %6 = vector.shape_cast %5 : vector<1x1x20x256xbf16> to vector<20x256xbf16>
    %c0_10 = arith.constant 0 : index
    %c1_11 = arith.constant 1 : index
    %c0_12 = arith.constant 0 : index
    %c0_13 = arith.constant 0 : index
    %7 = vector.load %arg3[%c0_10, %c1_11, %c0_12, %c0_13] : memref<1x4x256x256xbf16, #tpu.memory_space<vmem>>, vector<1x1x256x256xbf16>
    %8 = vector.shape_cast %7 : vector<1x1x256x256xbf16> to vector<256x256xbf16>
    %cst_14 = arith.constant dense<0.000000e+00> : vector<20x256xf32>
    %9 = tpu.matmul %6, %8, %cst_14 {dimension_numbers = #tpu.dot_dimension_numbers<[1], [0], [0], [1], [0, 0, 1, 1], [], []>} : vector<20x256xbf16>, vector<256x256xbf16>, vector<20x256xf32> -> vector<20x256xf32>
    %10 = arith.addf %4, %9 : vector<20x256xf32>
    %c0_15 = arith.constant 0 : index
    %c0_16 = arith.constant 0 : index
    %c5 = arith.constant 5 : index
    %c0_17 = arith.constant 0 : index
    %11 = vector.load %arg2[%c0_15, %c0_16, %c5, %c0_17] : memref<1x1x26x256xbf16, #tpu.memory_space<vmem>>, vector<1x1x20x256xbf16>
    %12 = vector.shape_cast %11 : vector<1x1x20x256xbf16> to vector<20x256xbf16>
    %c0_18 = arith.constant 0 : index
    %c2 = arith.constant 2 : index
    %c0_19 = arith.constant 0 : index
    %c0_20 = arith.constant 0 : index
    %13 = vector.load %arg3[%c0_18, %c2, %c0_19, %c0_20] : memref<1x4x256x256xbf16, #tpu.memory_space<vmem>>, vector<1x1x256x256xbf16>
    %14 = vector.shape_cast %13 : vector<1x1x256x256xbf16> to vector<256x256xbf16>
    %cst_21 = arith.constant dense<0.000000e+00> : vector<20x256xf32>
    %15 = tpu.matmul %12, %14, %cst_21 {dimension_numbers = #tpu.dot_dimension_numbers<[1], [0], [0], [1], [0, 0, 1, 1], [], []>} : vector<20x256xbf16>, vector<256x256xbf16>, vector<20x256xf32> -> vector<20x256xf32>
    %16 = arith.addf %10, %15 : vector<20x256xf32>
    %c0_22 = arith.constant 0 : index
    %c0_23 = arith.constant 0 : index
    %c6 = arith.constant 6 : index
    %c0_24 = arith.constant 0 : index
    %17 = vector.load %arg2[%c0_22, %c0_23, %c6, %c0_24] : memref<1x1x26x256xbf16, #tpu.memory_space<vmem>>, vector<1x1x20x256xbf16>
    %18 = vector.shape_cast %17 : vector<1x1x20x256xbf16> to vector<20x256xbf16>
    %c0_25 = arith.constant 0 : index
    %c3 = arith.constant 3 : index
    %c0_26 = arith.constant 0 : index
    %c0_27 = arith.constant 0 : index
    %19 = vector.load %arg3[%c0_25, %c3, %c0_26, %c0_27] : memref<1x4x256x256xbf16, #tpu.memory_space<vmem>>, vector<1x1x256x256xbf16>
    %20 = vector.shape_cast %19 : vector<1x1x256x256xbf16> to vector<256x256xbf16>
    %cst_28 = arith.constant dense<0.000000e+00> : vector<20x256xf32>
    %21 = tpu.matmul %18, %20, %cst_28 {dimension_numbers = #tpu.dot_dimension_numbers<[1], [0], [0], [1], [0, 0, 1, 1], [], []>} : vector<20x256xbf16>, vector<256x256xbf16>, vector<20x256xf32> -> vector<20x256xf32>
    %22 = arith.addf %16, %21 : vector<20x256xf32>
    %c0_29 = arith.constant 0 : index
    %c0_30 = arith.constant 0 : index
    %c0_31 = arith.constant 0 : index
    %23 = vector.load %arg4[%c0_29, %c0_30, %c0_31] : memref<1x1x256xf32, #tpu.memory_space<vmem>>, vector<1x1x256xf32>
    %24 = vector.shape_cast %23 : vector<1x1x256xf32> to vector<1x256xf32>
    %25 = vector.broadcast %24 : vector<1x256xf32> to vector<20x256xf32>
    %26 = arith.addf %22, %25 : vector<20x256xf32>
    %cst_32 = arith.constant 0.000000e+00 : f32
    %27 = vector.broadcast %cst_32 : f32 to vector<20x256xf32>
    %28 = arith.cmpf ogt, %26, %27 : vector<20x256xf32>
    %c0_33 = arith.constant 0 : index
    %c0_34 = arith.constant 0 : index
    %c0_35 = arith.constant 0 : index
    %29 = vector.load %arg5[%c0_33, %c0_34, %c0_35] : memref<1x1x256xf32, #tpu.memory_space<vmem>>, vector<1x1x256xf32>
    %30 = vector.shape_cast %29 : vector<1x1x256xf32> to vector<1x256xf32>
    %31 = vector.broadcast %30 : vector<1x256xf32> to vector<20x256xf32>
    %32 = arith.mulf %31, %26 : vector<20x256xf32>
    %33 = arith.select %28, %26, %32 : vector<20x256xi1>, vector<20x256xf32>
    %34 = vector.extract_strided_slice %33 {offsets = [0, 0], sizes = [20, 128], strides = [1, 1]} : vector<20x256xf32> to vector<20x128xf32>
    %35 = vector.extract_strided_slice %33 {offsets = [0, 128], sizes = [20, 128], strides = [1, 1]} : vector<20x256xf32> to vector<20x128xf32>
    %36 = arith.maximumf %34, %35 : vector<20x128xf32>
    %37 = vector.extract_strided_slice %36 {offsets = [0, 0], sizes = [20, 64], strides = [1, 1]} : vector<20x128xf32> to vector<20x64xf32>
    %38 = vector.extract_strided_slice %36 {offsets = [0, 64], sizes = [20, 64], strides = [1, 1]} : vector<20x128xf32> to vector<20x64xf32>
    %39 = arith.maximumf %37, %38 : vector<20x64xf32>
    %40 = arith.truncf %39 : vector<20x64xf32> to vector<20x64xbf16>
    %c0_36 = arith.constant 0 : index
    %c0_37 = arith.constant 0 : index
    %c0_38 = arith.constant 0 : index
    %c0_39 = arith.constant 0 : index
    %41 = vector.load %arg6[%c0_36, %c0_37, %c0_38, %c0_39] : memref<1x1x20x64xbf16, #tpu.memory_space<vmem>>, vector<1x1x20x64xbf16>
    %42 = vector.shape_cast %41 : vector<1x1x20x64xbf16> to vector<20x64xbf16>
    %43 = vector.shape_cast %40 : vector<20x64xbf16> to vector<1x1x20x64xbf16>
    tpu.vector_store %arg6[%c0_36, %c0_37, %c0_38, %c0_39], %43 {strides = array<i32>} : memref<1x1x20x64xbf16, #tpu.memory_space<vmem>>, vector<1x1x20x64xbf16>,
    return
  }
  func.func @transform_0(%arg0: i32, %arg1: i32) -> (i32, i32, i32, i32) {
    %c0_i32 = arith.constant 0 : i32
    %c0_i32_0 = arith.constant 0 : i32
    %c0_i32_1 = arith.constant 0 : i32
    return %arg0, %arg1, %c0_i32, %c0_i32_0 : i32, i32, i32, i32
  }
  func.func @transform_1(%arg0: i32, %arg1: i32) -> (i32, i32, i32, i32) {
    %c0_i32 = arith.constant 0 : i32
    %c0_i32_0 = arith.constant 0 : i32
    %c0_i32_1 = arith.constant 0 : i32
    %c0_i32_2 = arith.constant 0 : i32
    return %arg0, %c0_i32, %c0_i32_0, %c0_i32_1 : i32, i32, i32, i32
  }
  func.func @transform_2(%arg0: i32, %arg1: i32) -> (i32, i32, i32) {
    %c0_i32 = arith.constant 0 : i32
    %c0_i32_0 = arith.constant 0 : i32
    %c0_i32_1 = arith.constant 0 : i32
    return %arg0, %c0_i32, %c0_i32_0 : i32, i32, i32
  }
  func.func @transform_3(%arg0: i32, %arg1: i32) -> (i32, i32, i32) {
    %c0_i32 = arith.constant 0 : i32
    %c0_i32_0 = arith.constant 0 : i32
    %c0_i32_1 = arith.constant 0 : i32
    return %arg0, %c0_i32, %c0_i32_0 : i32, i32, i32
  }
  func.func @transform_4(%arg0: i32, %arg1: i32) -> (i32, i32, i32, i32) {
    %c0_i32 = arith.constant 0 : i32
    %c0_i32_0 = arith.constant 0 : i32
    %c0_i32_1 = arith.constant 0 : i32
    return %arg1, %arg0, %c0_i32, %c0_i32_0 : i32, i32, i32, i32
  }
}

module attributes {stable_mosaic.version = 11 : i64} {
  func.func @_linear_partial_kernel(%arg0: i32, %arg1: i32, %arg2: memref<2x3072xbf16, #tpu.memory_space<vmem>>, %arg3: memref<3072x128xbf16, #tpu.memory_space<vmem>>, %arg4: memref<1x2x128xf32, #tpu.memory_space<vmem>>, %arg5: memref<2x128xf32, #tpu.memory_space<vmem>>) attributes {dimension_semantics = [#tpu.dimension_semantics<parallel>, #tpu.dimension_semantics<arbitrary>], iteration_bounds = array<i64: 2, 1>, scalar_prefetch = 0 : i64, scratch_operands = 1 : i64, tpu.core_type = #tpu.core_type<tc>, window_params = [{transform_indices = @transform_0, window_bounds = array<i64: 2, 3072>}, {transform_indices = @transform_1, window_bounds = array<i64: 3072, 128>}, {transform_indices = @transform_2, window_bounds = array<i64: 1, 2, 128>}]} {
    %c0_i32 = arith.constant 0 : i32
    %0 = arith.cmpi eq, %arg1, %c0_i32 : i32
    %1 = arith.extui %0 : i1 to i32
    %c0_i32_0 = arith.constant 0 : i32
    %2 = arith.cmpi ne, %1, %c0_i32_0 : i32
    scf.if %2 {
      %cst_10 = arith.constant 0.000000e+00 : f32
      %12 = vector.broadcast %cst_10 : f32 to vector<2x128xf32>
      %c0_11 = arith.constant 0 : index
      %c0_12 = arith.constant 0 : index
      %13 = vector.load %arg5[%c0_11, %c0_12] : memref<2x128xf32, #tpu.memory_space<vmem>>, vector<2x128xf32>
      tpu.vector_store %arg5[%c0_11, %c0_12], %12 {strides = array<i32>} : memref<2x128xf32, #tpu.memory_space<vmem>>, vector<2x128xf32>,
    } else {
    }
    %c0 = arith.constant 0 : index
    %c0_1 = arith.constant 0 : index
    %3 = vector.load %arg5[%c0, %c0_1] : memref<2x128xf32, #tpu.memory_space<vmem>>, vector<2x128xf32>
    %c0_2 = arith.constant 0 : index
    %c0_3 = arith.constant 0 : index
    %4 = vector.load %arg2[%c0_2, %c0_3] : memref<2x3072xbf16, #tpu.memory_space<vmem>>, vector<2x3072xbf16>
    %c0_4 = arith.constant 0 : index
    %c0_5 = arith.constant 0 : index
    %5 = vector.load %arg3[%c0_4, %c0_5] : memref<3072x128xbf16, #tpu.memory_space<vmem>>, vector<3072x128xbf16>
    %cst = arith.constant dense<0.000000e+00> : vector<2x128xf32>
    %6 = tpu.matmul %4, %5, %cst {dimension_numbers = #tpu.dot_dimension_numbers<[1], [0], [0], [1], [0, 0, 1, 1], [], []>} : vector<2x3072xbf16>, vector<3072x128xbf16>, vector<2x128xf32> -> vector<2x128xf32>
    %7 = arith.addf %3, %6 : vector<2x128xf32>
    %c0_6 = arith.constant 0 : index
    %c0_7 = arith.constant 0 : index
    %8 = vector.load %arg5[%c0_6, %c0_7] : memref<2x128xf32, #tpu.memory_space<vmem>>, vector<2x128xf32>
    tpu.vector_store %arg5[%c0_6, %c0_7], %7 {strides = array<i32>} : memref<2x128xf32, #tpu.memory_space<vmem>>, vector<2x128xf32>,
    %c0_i32_8 = arith.constant 0 : i32
    %9 = arith.cmpi eq, %arg1, %c0_i32_8 : i32
    %10 = arith.extui %9 : i1 to i32
    %c0_i32_9 = arith.constant 0 : i32
    %11 = arith.cmpi ne, %10, %c0_i32_9 : i32
    scf.if %11 {
      %c0_10 = arith.constant 0 : index
      %c0_11 = arith.constant 0 : index
      %12 = vector.load %arg5[%c0_10, %c0_11] : memref<2x128xf32, #tpu.memory_space<vmem>>, vector<2x128xf32>
      %c0_12 = arith.constant 0 : index
      %c0_13 = arith.constant 0 : index
      %c0_14 = arith.constant 0 : index
      %13 = vector.load %arg4[%c0_12, %c0_13, %c0_14] : memref<1x2x128xf32, #tpu.memory_space<vmem>>, vector<1x2x128xf32>
      %14 = vector.shape_cast %13 : vector<1x2x128xf32> to vector<2x128xf32>
      %15 = vector.shape_cast %12 : vector<2x128xf32> to vector<1x2x128xf32>
      tpu.vector_store %arg4[%c0_12, %c0_13, %c0_14], %15 {strides = array<i32>} : memref<1x2x128xf32, #tpu.memory_space<vmem>>, vector<1x2x128xf32>,
    } else {
    }
    return
  }
  func.func @transform_0(%arg0: i32, %arg1: i32) -> (i32, i32) {
    %c1_i32 = arith.constant 1 : i32
    %0 = arith.muli %arg0, %c1_i32 : i32
    %1 = arith.addi %0, %arg1 : i32
    %c0_i32 = arith.constant 0 : i32
    %c0_i32_0 = arith.constant 0 : i32
    return %c0_i32, %1 : i32, i32
  }
  func.func @transform_1(%arg0: i32, %arg1: i32) -> (i32, i32) {
    %c1_i32 = arith.constant 1 : i32
    %0 = arith.muli %arg0, %c1_i32 : i32
    %1 = arith.addi %0, %arg1 : i32
    %c0_i32 = arith.constant 0 : i32
    %c0_i32_0 = arith.constant 0 : i32
    return %1, %c0_i32 : i32, i32
  }
  func.func @transform_2(%arg0: i32, %arg1: i32) -> (i32, i32, i32) {
    %c0_i32 = arith.constant 0 : i32
    %c0_i32_0 = arith.constant 0 : i32
    %c0_i32_1 = arith.constant 0 : i32
    return %arg0, %c0_i32, %c0_i32_0 : i32, i32, i32
  }
}

</mosaic_0001>

<bundles_post_ra>
// kernel: g_forward.3
= control target key start
LH: loop header
LB: loop body
LE: loop exit
PB: predicated region body
PF: predicated region fallthrough
CT: control target
= control target key end

     0   :  { %s1440_s15 = smov 0   ;;  %s1442_s16 = smov 0   ;;  %s1755_s0 = inlined_call_operand.vmem [shape: bf16[6,2,82,12], index: 0, kind: input, shape index: {}]   ;;  %s1756_s1 = inlined_call_operand.vmem [shape: bf16[6,4,12,256], index: 1, kind: input, shape index: {}]   ;;  %s1757_s2 = inlined_call_operand.vmem [shape: f32[6,1,256], index: 2, kind: input, shape index: {}]   ;;  %s1758_s3 = inlined_call_operand.vmem [shape: f32[6,1,256], index: 3, kind: input, shape index: {}]   ;;  %s1759_s4 = inlined_call_operand.vmem [shape: bf16[6,2,72,64], index: 4, kind: output, shape index: {}]  }
   0x1   :  { %s1444_s17 = smov 0   ;;  %s1446_s18 = smov 0  }
   0x2   :  { %s1448_s19 = smov 0  }
   0x3 LB: > { %s23_s20 = sadd.s32 1, %s1404_s17  ;;  %s26_s21 = sadd.s32 1, %s1408_s18  ;;  %s1412_s19 = sphi %s1448_s19, %s14_s19   ;;  %s1408_s18 = sphi %s1446_s18, %s1763_s18   ;;  %s1404_s17 = sphi %s1444_s17, %s1762_s17   ;;  %s1400_s16 = sphi %s1442_s16, %s1761_s16   ;;  %s1396_s15 = sphi %s1440_s15, %s1760_s15  }
   0x4   : > { %p24_p0 = scmp.ge.s32.totalorder %s23_s20, 2  ;;  %p1170_p1 = scmp.ge.s32.totalorder %s1412_s19, 1 }
   0x5   : > { %p210_p2 = scmp.lt.s32.totalorder %s1412_s19, 13 }
   0x6   : > { %s1765_s20 = smov (%p24_p0, %s23_s20), 0  ;;  %s1767_s21 = smov (!%p24_p0, %s26_s21), %s1408_s18 }
   0x7   : > { %p211_p3 = pnand %p1170_p1, %p210_p2  ;;  %p28_p4 = scmp.ge.s32.totalorder %s1767_s21, 6 }
   0x8   : > { %p257_p5 = scmp.lt.s32.totalorder (!%p211_p3), %s1400_s16, 5  ;;  %p259_p6 = scmp.lt.s32.totalorder (!%p211_p3), %s1396_s15, 1 }
   0x9   : > { %s1769_s21 = smov (%p28_p4, %s1767_s21), 0  ;;  %214 = sbr.rel (%p211_p3) target bundleno = 429 (0x1ad), region = 36 }
   0xa   : > { %s1414_s14 = smov (!%p211_p3), 64  }
   0xe   : > { %s1771_s16 = smov (!%p257_p5, %s1400_s16), 5  ;;  %s1773_s15 = smov (!%p259_p6, %s1396_s15), 1  ;;  %vm393_vm0 = vcmask 1045504   ;;  %vm377_vm1 = vcmask 97280   ;;  %vm329_vm2 = vsmask.f32 7424 }
   0xf   : > { %s1307_s22 = smul.u32 22, %s1771_s16  ;;  %s1289_s23 = sshll.u32 %s1771_s16, 6  ;;  %vm755_vm3 = vcmask 1046528  }
  0x10   : > { %s1306_s24 = smul.u32 11, %s1773_s15  ;;  %s1480_s27 = scalar_lea.vmem %s1756_s1, %s1289_s23 }
  0x11   : > { %v1215_v0 = vld [vmem:[%s1480_s27] sm:$0xf]  ;;  %v1295_v1 = vld [vmem:[%s1480_s27 + $0x4] sm:$0x30]  ;;  %v1294_v2 = vld [vmem:[%s1480_s27 + $0x4] sm:$0xf] }
  0x12   : > { %s263_s28 = sadd.s32 %s1307_s22, %s1306_s24  ;;  %v1216_v3 = vor.u32 %v1295_v1, %v1215_v0  ;;  %v1217_v4 = vld [vmem:[%s1480_s27 + $0x8] sm:$0x30]  ;;  %v1271_v5 = vld [vmem:[%s1480_s27 + $0x30] sm:$0xf]  ;;  %v1305_v6 = vld [vmem:[%s1480_s27 + $0x34] sm:$0x30] }
  0x13   : > { %s1171_s29 = sshll.u32 %s263_s28, 2  ;;  %v1220_v7 = vor.u32 %v1294_v2, %v1217_v4  ;;  %v1272_v8 = vor.u32 %v1305_v6, %v1271_v5  ;;  %v1304_v9 = vld [vmem:[%s1480_s27 + $0x34] sm:$0xf]  ;;  %v1273_v10 = vld [vmem:[%s1480_s27 + $0x38] sm:$0x30]  ;;  %s1174_s7 = sshll.u32 %s1771_s16, 1 }
  0x14   : > { %s1493_s6 = scalar_lea.vmem %s1755_s0, %s1171_s29  ;;  %v487_v11 = vsel %vm393_vm0, %v1216_v3, 0  ;;  %v1276_v12 = vor.u32 %v1304_v9, %v1273_v10  ;;  %v1197_v13 = vld [vmem:[%s1480_s27 + $0x10] sm:$0xf]  ;;  %v1297_v14 = vld [vmem:[%s1480_s27 + $0x14] sm:$0x30]  ;;  %s274_s10 = scalar_lea.vmem %s1757_s2, %s1174_s7 }
  0x15   : > { %499 = vmatpush.bf16.msra.mxu2 %v487_v11  ;;  %v490_v15 = vsel %vm393_vm0, %v1220_v7, 0  ;;  %v1290_v16 = vld [vmem:[%s1493_s6] sm:$0xff]  ;;  %v789_v17 = vsel %vm393_vm0, %v1272_v8, 0  ;;  %v1198_v18 = vor.u32 %v1297_v14, %v1197_v13  ;;  %v1296_v19 = vld [vmem:[%s1480_s27 + $0x14] sm:$0xf]  ;;  %v1291_v20 = vld [vmem:[%s1493_s6 + $0x8] sm:$0xff]  ;;  %s278_s13 = scalar_lea.vmem %s1758_s3, %s1174_s7 }
  0x16   : > { %532 = vmatpush.bf16.msra.mxu3 %v490_v15  ;;  %v792_v21 = vsel %vm393_vm0, %v1276_v12, 0  ;;  %v1199_v22 = vld [vmem:[%s1480_s27 + $0x18] sm:$0x30]  ;;  %v1251_v23 = vld [vmem:[%s1480_s27 + $0x20] sm:$0xf]  ;;  %v331_v26 = vshrl.u32 %v1290_v16, 16 }
  0x17   : > { %v395_v24 = vsel %vm393_vm0, %v1198_v18, 0  ;;  %v1202_v25 = vor.u32 %v1296_v19, %v1199_v22  ;;  %v333_v27 = vshll.u32 %v1290_v16, 16  ;;  %v1303_v28 = vld [vmem:[%s1480_s27 + $0x24] sm:$0x30]  ;;  %v338_v29 = vshll.u32 %v1291_v20, 16  ;;  %v1292_v41 = vld [vmem:[%s1493_s6 + $0x10] sm:$0xff] }
  0x18   : > { %1221 = vmatmul.msk.bf16.vlgmr.msra.gmra.mxu2 %vm377_vm1, %v1290_v16  ;;  %407 = vmatpush.bf16.msra.mxu0 %v395_v24  ;;  %v1252_v30 = vor.u32 %v1303_v28, %v1251_v23  ;;  %v1302_v31 = vld [vmem:[%s1480_s27 + $0x24] sm:$0xf]  ;;  %v1253_v32 = vld [vmem:[%s1480_s27 + $0x28] sm:$0x30]  ;;  %v342_v42 = vshrl.u32 %v1291_v20, 16  ;;  %v346_v43 = vshll.u32 %v1292_v41, 16 }
  0x19   : > { %801 = vmatpush.bf16.msrb.mxu2 %v789_v17  ;;  %1226 = vmatmul.msk.bf16.vlgmr.msra.gmra.mxu3 %vm377_vm1, %v1290_v16  ;;  %v398_v33 = vsel %vm393_vm0, %v1202_v25, 0  ;;  %v335_v34 = vrot.slane %v333_v27, 1  ;;  %v1256_v35 = vor.u32 %v1302_v31, %v1253_v32  ;;  %v340_v36 = vrot.slane %v338_v29, 1  ;;  %v1293_v47 = vld [vmem:[%s1493_s6 + $0x18] sm:$0xff]  ;;  %v297_v52 = vld [vmem:[%s1493_s6 + $0x20] sm:$0xf] }
  0x1a   : > { %834 = vmatpush.bf16.msrb.mxu3 %v792_v21  ;;  %440 = vmatpush.bf16.msra.mxu1 %v398_v33  ;;  %v659_v37 = vsel %vm393_vm0, %v1252_v30, 0  ;;  %v348_v45 = vrot.slane %v346_v43, 1  ;;  %v350_v48 = vshrl.u32 %v1292_v41, 16  ;;  %v354_v49 = vshll.u32 %v1293_v47, 16  ;;  %v300_v53 = vld [vmem:[%s1493_s6 + $0x24] sm:$0x1] }
  0x1b   : > { %v336_v38 = vor.u32 %v335_v34, %v331_v26  ;;  %v662_v39 = vsel %vm393_vm0, %v1256_v35, 0  ;;  %v344_v44 = vor.u32 %v342_v42, %v340_v36  ;;  %v322_v55 = vunpack.c.l.b16 %v297_v52  ;;  %v559_v0 = vld [vmem:[%s1493_s6 + $0x4] sm:$0xff]   ;;  %v1298_v5 = vld [vmem:[%s1493_s6 + $0xc] sm:$0xff]  ;;  %v1299_v17 = vld [vmem:[%s1493_s6 + $0x14] sm:$0xff]  ;;  %s1308_s22 = smul.u32 9, %s1773_s15 }
  0x1c   : > { %671 = vmatpush.bf16.msrb.mxu0 %v659_v37  ;;  %v352_v50 = vor.u32 %v350_v48, %v348_v45  ;;  %v356_v51 = vrot.slane %v354_v49, 1  ;;  %v323_v56 = vunpack.c.l.b16 %v300_v53  ;;  %v358_v58 = vshrl.u32 %v1293_v47, 16  ;;  %v1371_v1 = vld [vmem:[%s1493_s6 + $0x4] sm:$0xf0]  ;;  %v1372_v3 = vld [vmem:[%s1493_s6 + $0x4] sm:$0xe] }
  0x1d   : > { %v341_v40 = vsel %vm329_vm2, %v336_v38, %v340_v36  ;;  %v349_v46 = vsel %vm329_vm2, %v344_v44, %v348_v45  ;;  %v466_v63 = vpack.c.b16 %v322_v55, %v322_v55  ;;  %v1373_v6 = vor.u32 %v1372_v3, %v1371_v1  ;;  %v1300_v25 = vld [vmem:[%s1493_s6 + $0x1c] sm:$0xff]  ;;  %v1247_v32 = vld [vmem:[%s1493_s6 + $0x24] sm:$0xf]  ;;  %v1301_v33 = vld [vmem:[%s1493_s6 + $0x24] sm:$0x10]  ;;  %s1309_s23 = smul.u32 18, %s1771_s16 }
  0x1e   : > { %704 = vmatpush.bf16.msrb.mxu1 %v662_v39  ;;  %1203 = vmatmul.msk.bf16.vlgmr.msra.gmra.mxu0 %vm377_vm1, %v341_v40  ;;  %v357_v54 = vsel %vm329_vm2, %v352_v50, %v356_v51  ;;  %v328_v57 = vpack.c.b16 %v323_v56, %v322_v55  ;;  %v360_v60 = vor.u32 %v358_v58, %v356_v51  ;;  %v599_v7 = vshll.u32 %v559_v0, 16 }
  0x1f   : > { %1208 = vmatmul.msk.bf16.vlgmr.msra.gmra.mxu1 %vm377_vm1, %v341_v40  ;;  %v756_v8 = vrot.slane %v1373_v6, 1  ;;  %v757_v9 = vrot.slane %v1298_v5, 1  ;;  %v597_v10 = vshrl.u32 %v559_v0, 16  ;;  %v604_v12 = vshll.u32 %v1298_v5, 16  ;;  %s285_s24 = sadd.s32 %s1309_s23, %s1308_s22 }
  0x20   : > { %v362_v59 = vshll.u32 %v328_v57, 16  ;;  %v366_v2 = vshrl.u32 %v328_v57, 16  ;;  %v601_v11 = vrot.slane %v599_v7, 1  ;;  %v759_v18 = vrot.slane %v1299_v17, 1  ;;  %s1176_s25 = sshll.u32 %s285_s24, 2 }
  0x21   : > { %v758_v13 = vsel %vm755_vm3, %v756_v8, %v757_v9  ;;  %v606_v15 = vrot.slane %v604_v12, 1  ;;  %v608_v19 = vshrl.u32 %v1298_v5, 16  ;;  %v761_v26 = vrot.slane %v1300_v25, 1  ;;  %s1715_s28 = scalar_lea.vmem %s1759_s4, %s1176_s25 }
  0x22   : > { %v364_v61 = vrot.slane %v362_v59, 1  ;;  %v602_v14 = vor.u32 %v601_v11, %v597_v10  ;;  %v760_v21 = vsel %vm755_vm3, %v757_v9, %v759_v18  ;;  %v616_v27 = vshrl.u32 %v1299_v17, 16 }
  0x23   : > { %v610_v22 = vor.u32 %v608_v19, %v606_v15  ;;  %v620_v28 = vshll.u32 %v1300_v25, 16  ;;  %v762_v29 = vsel %vm755_vm3, %v759_v18, %v761_v26  ;;  %v1248_v35 = vor.u32 %v1301_v33, %v1247_v32 }
  0x24   : > { %v365_v62 = vsel %vm329_vm2, %v360_v60, %v364_v61  ;;  %v368_v4 = vor.u32 %v366_v2, %v364_v61  ;;  %v607_v16 = vsel %vm329_vm2, %v602_v14, %v606_v15  ;;  %v624_v37 = vshrl.u32 %v1300_v25, 16 }
  0x25   : > { %v622_v31 = vrot.slane %v620_v28, 1  ;;  %v763_v36 = vrot.slane %v1248_v35, 1  ;;  %v628_v38 = vshll.u32 %v1248_v35, 16  ;;  %v632_v55 = vshrl.u32 %v1248_v35, 16 }
  0x27   : > { %v764_v39 = vsel %vm755_vm3, %v761_v26, %v763_v36  ;;  %v626_v40 = vor.u32 %v624_v37, %v622_v31 }
  0x28   : > { %1222 = vmatmul.msk.bf16.gmra.mxu2 %vm377_vm1, %v1291_v20 }
  0x29   : > { %1227 = vmatmul.msk.bf16.gmra.mxu3 %vm377_vm1, %v1291_v20  ;;  %v612_v20 = vshll.u32 %v1299_v17, 16 }
  0x2b   : > { %v614_v23 = vrot.slane %v612_v20, 1 }
  0x2d   : > { %v615_v24 = vsel %vm329_vm2, %v610_v22, %v614_v23  ;;  %v618_v30 = vor.u32 %v616_v27, %v614_v23 }
  0x2e   : > { %1204 = vmatmul.msk.bf16.gmra.mxu0 %vm377_vm1, %v349_v46 }
  0x2f   : > { %1209 = vmatmul.msk.bf16.gmra.mxu1 %vm377_vm1, %v349_v46  ;;  %v623_v34 = vsel %vm329_vm2, %v618_v30, %v622_v31 }
  0x38   : > { %1223 = vmatmul.msk.bf16.gmra.mxu2 %vm377_vm1, %v1292_v41 }
  0x39   : > { %1228 = vmatmul.msk.bf16.gmra.mxu3 %vm377_vm1, %v1292_v41  ;;  %v630_v41 = vrot.slane %v628_v38, 1 }
  0x3b   : > { %v631_v44 = vsel %vm329_vm2, %v626_v40, %v630_v41  ;;  %v634_v56 = vor.u32 %v632_v55, %v630_v41 }
  0x3e   : > { %1205 = vmatmul.msk.bf16.gmra.mxu0 %vm377_vm1, %v357_v54 }
  0x3f   : > { %1210 = vmatmul.msk.bf16.gmra.mxu1 %vm377_vm1, %v357_v54 }
  0x48   : > { %1224 = vmatmul.msk.bf16.gmra.mxu2 %vm377_vm1, %v1293_v47 }
  0x49   : > { %1229 = vmatmul.msk.bf16.gmra.mxu3 %vm377_vm1, %v1293_v47 }
  0x4e   : > { %1206 = vmatmul.msk.bf16.gmra.mxu0 %vm377_vm1, %v365_v62 }
  0x4f   : > { %1211 = vmatmul.msk.bf16.gmra.mxu1 %vm377_vm1, %v365_v62 }
  0x58   : > { %1225 = vmatmul.msk.bf16.gmra.mxu2 %vm377_vm1, %v466_v63 }
  0x59   : > { %1230 = vmatmul.msk.bf16.gmra.mxu3 %vm377_vm1, %v466_v63 }
  0x5e   : > { %1207 = vmatmul.msk.bf16.gmra.mxu0 %vm377_vm1, %v368_v4 }
  0x5f   : > { %1212 = vmatmul.msk.bf16.gmra.mxu1 %vm377_vm1, %v368_v4 }
  0x68   : > { %1277 = vmatmul.msk.bf16.vlgmr.msrb.gmra.mxu2 %vm377_vm1, %v758_v13 }
  0x69   : > { %1282 = vmatmul.msk.bf16.vlgmr.msrb.gmra.mxu3 %vm377_vm1, %v758_v13 }
  0x6e   : > { %1257 = vmatmul.msk.bf16.vlgmr.msrb.gmra.mxu0 %vm377_vm1, %v607_v16 }
  0x6f   : > { %1262 = vmatmul.msk.bf16.vlgmr.msrb.gmra.mxu1 %vm377_vm1, %v607_v16 }
  0x78   : > { %1278 = vmatmul.msk.bf16.gmra.mxu2 %vm377_vm1, %v760_v21 }
  0x79   : > { %1283 = vmatmul.msk.bf16.gmra.mxu3 %vm377_vm1, %v760_v21 }
  0x7e   : > { %1258 = vmatmul.msk.bf16.gmra.mxu0 %vm377_vm1, %v615_v24 }
  0x7f   : > { %1263 = vmatmul.msk.bf16.gmra.mxu1 %vm377_vm1, %v615_v24 }
  0x88   : > { %1279 = vmatmul.msk.bf16.gmra.mxu2 %vm377_vm1, %v762_v29 }
  0x89   : > { %1284 = vmatmul.msk.bf16.gmra.mxu3 %vm377_vm1, %v762_v29 }
  0x8e   : > { %1259 = vmatmul.msk.bf16.gmra.mxu0 %vm377_vm1, %v623_v34 }
  0x8f   : > { %1264 = vmatmul.msk.bf16.gmra.mxu1 %vm377_vm1, %v623_v34 }
  0x98   : > { %1280 = vmatmul.msk.bf16.gmra.mxu2 %vm377_vm1, %v764_v39 }
  0x99   : > { %1285 = vmatmul.msk.bf16.gmra.mxu3 %vm377_vm1, %v764_v39  ;;  %v878_v39 = vld [vmem:[%s274_s10] sm:$0x3] }
  0x9b   : > { %v409_v42 = vpop.f32.mrf.mxu0  ;;  %v501_v45 = vpop.f32.mrf.mxu2 }
  0x9c   : > { %v442_v43 = vpop.f32.mrf.mxu1  ;;  %v534_v46 = vpop.f32.mrf.mxu3  ;;  %v1571_v47 = vadd.f32 %v501_v45, %v409_v42  ;;  %v920_v42 = vld [vmem:[%s278_s13] sm:$0x3] }
  0x9d   : > { %v1573_v48 = vadd.f32 %v534_v46, %v442_v43  ;;  %v1622_v46 = vperm.slane %v878_v39, 0 }
  0x9e   : > { %1260 = vmatmul.msk.bf16.gmra.mxu0 %vm377_vm1, %v631_v44 }
  0x9f   : > { %1265 = vmatmul.msk.bf16.gmra.mxu1 %vm377_vm1, %v631_v44 }
  0xa3   : > { %v411_v49 = vpop.f32.mrf.mxu0  ;;  %v503_v51 = vpop.f32.mrf.mxu2 }
  0xa4   : > { %v444_v50 = vpop.f32.mrf.mxu1  ;;  %v536_v52 = vpop.f32.mrf.mxu3  ;;  %v1577_v53 = vadd.f32 %v503_v51, %v411_v49 }
  0xa5   : > { %v1579_v54 = vadd.f32 %v536_v52, %v444_v50  ;;  %v1624_v50 = vperm.slane %v878_v39, 1  ;;  %v1626_v52 = vperm.slane %v920_v42, 0 }
  0xa8   : > { %1281 = vmatmul.msk.bf16.gmra.mxu2 %vm377_vm1, %v763_v36 }
  0xa9   : > { %1286 = vmatmul.msk.bf16.gmra.mxu3 %vm377_vm1, %v763_v36 }
  0xab   : > { %v414_v57 = vpop.f32.mrf.mxu0  ;;  %v506_v59 = vpop.f32.mrf.mxu2 }
  0xac   : > { %v447_v58 = vpop.f32.mrf.mxu1  ;;  %v539_v60 = vpop.f32.mrf.mxu3  ;;  %v1583_v61 = vadd.f32 %v506_v59, %v414_v57 }
  0xad   : > { %v1585_v62 = vadd.f32 %v539_v60, %v447_v58 }
  0xae   : > { %1261 = vmatmul.msk.bf16.gmra.mxu0 %vm377_vm1, %v634_v56 }
  0xaf   : > { %1266 = vmatmul.msk.bf16.gmra.mxu1 %vm377_vm1, %v634_v56  ;;  %v1628_v56 = vperm.slane %v920_v42, 1 }
  0xb3   : > { %v416_v63 = vpop.f32.mrf.mxu0  ;;  %v508_v1 = vpop.f32.mrf.mxu2 }
  0xb4   : > { %v449_v0 = vpop.f32.mrf.mxu1  ;;  %v541_v2 = vpop.f32.mrf.mxu3  ;;  %v1589_v3 = vadd.f32 %v508_v1, %v416_v63 }
  0xb5   : > { %v1591_v4 = vadd.f32 %v541_v2, %v449_v0 }
  0xbb   : > { %v419_v5 = vpop.f32.mrf.mxu0  ;;  %v511_v7 = vpop.f32.mrf.mxu2 }
  0xbc   : > { %v452_v6 = vpop.f32.mrf.mxu1  ;;  %v544_v8 = vpop.f32.mrf.mxu3  ;;  %v1593_v9 = vadd.f32 %v511_v7, %v419_v5 }
  0xbd   : > { %v1595_v10 = vadd.f32 %v544_v8, %v452_v6 }
  0xc3   : > { %v421_v11 = vpop.f32.mrf.mxu0  ;;  %v513_v13 = vpop.f32.mrf.mxu2 }
  0xc4   : > { %v454_v12 = vpop.f32.mrf.mxu1  ;;  %v546_v14 = vpop.f32.mrf.mxu3  ;;  %v1597_v15 = vadd.f32 %v513_v13, %v421_v11 }
  0xc5   : > { %v1599_v16 = vadd.f32 %v546_v14, %v454_v12 }
  0xcb   : > { %v424_v17 = vpop.f32.mrf.mxu0  ;;  %v516_v19 = vpop.f32.mrf.mxu2 }
  0xcc   : > { %v457_v18 = vpop.f32.mrf.mxu1  ;;  %v549_v20 = vpop.f32.mrf.mxu3  ;;  %v1601_v21 = vadd.f32 %v516_v19, %v424_v17 }
  0xcd   : > { %v1603_v22 = vadd.f32 %v549_v20, %v457_v18 }
  0xd3   : > { %v426_v23 = vpop.f32.mrf.mxu0  ;;  %v518_v25 = vpop.f32.mrf.mxu2 }
  0xd4   : > { %v459_v24 = vpop.f32.mrf.mxu1  ;;  %v551_v26 = vpop.f32.mrf.mxu3  ;;  %v1605_v27 = vadd.f32 %v518_v25, %v426_v23 }
  0xd5   : > { %v1607_v28 = vadd.f32 %v551_v26, %v459_v24 }
  0xdb   : > { %v429_v29 = vpop.f32.mrf.mxu0  ;;  %v521_v31 = vpop.f32.mrf.mxu2 }
  0xdc   : > { %v462_v30 = vpop.f32.mrf.mxu1  ;;  %v554_v32 = vpop.f32.mrf.mxu3  ;;  %v1609_v33 = vadd.f32 %v521_v31, %v429_v29 }
  0xdd   : > { %v1611_v34 = vadd.f32 %v554_v32, %v462_v30 }
  0xe3   : > { %v431_v35 = vpop.f32.mrf.mxu0  ;;  %v523_v37 = vpop.f32.mrf.mxu2 }
  0xe4   : > { %v464_v36 = vpop.f32.mrf.mxu1  ;;  %v556_v38 = vpop.f32.mrf.mxu3 }
  0xeb   : > { %v673_v40 = vpop.f32.mrf.mxu0  ;;  %v803_v45 = vpop.f32.mrf.mxu2 }
  0xec   : > { %v706_v41 = vpop.f32.mrf.mxu1  ;;  %v730_v43 = vadd.f32 %v673_v40, %v1571_v47  ;;  %v836_v49 = vpop.f32.mrf.mxu3 }
  0xed   : > { %v731_v44 = vadd.f32 %v706_v41, %v1573_v48 }
  0xee   : > { %v860_v51 = vadd.f32 %v803_v45, %v730_v43 }
  0xef   : > { %v861_v55 = vadd.f32 %v836_v49, %v731_v44 }
  0xf0   : > { %v884_v57 = vadd.f32 %v1622_v46, %v860_v51 }
  0xf1   : > { %v885_v58 = vadd.f32 %v1624_v50, %v861_v55 }
  0xf2   : > { %v926_v47 = vmul.f32 %v1626_v52, %v884_v57  ;;  %vm902_vm4 = vcmp.gt.f32.partialorder %v884_v57, 0.0 }
  0xf3   : > { %v927_v48 = vmul.f32 %v1628_v56, %v885_v58  ;;  %vm903_vm5 = vcmp.gt.f32.partialorder %v885_v58, 0.0  ;;  %v675_v59 = vpop.f32.mrf.mxu0  ;;  %v805_v1 = vpop.f32.mrf.mxu2 }
  0xf4   : > { %v708_v60 = vpop.f32.mrf.mxu1  ;;  %v732_v63 = vadd.f32 %v675_v59, %v1577_v53  ;;  %v838_v2 = vpop.f32.mrf.mxu3  ;;  %v944_v5 = vsel %vm902_vm4, %v884_v57, %v926_v47 }
  0xf5   : > { %v733_v0 = vadd.f32 %v708_v60, %v1579_v54  ;;  %v945_v6 = vsel %vm903_vm5, %v885_v58, %v927_v48 }
  0xf6   : > { %v1636_v7 = vmax.f32 %v944_v5, %v945_v6  ;;  %v862_v8 = vadd.f32 %v805_v1, %v732_v63 }
  0xf7   : > { %v863_v11 = vadd.f32 %v838_v2, %v733_v0 }
  0xf8   : > { %v886_v12 = vadd.f32 %v1622_v46, %v862_v8 }
  0xf9   : > { %v887_v13 = vadd.f32 %v1624_v50, %v863_v11 }
  0xfa   : > { %v928_v14 = vmul.f32 %v1626_v52, %v886_v12  ;;  %vm904_vm6 = vcmp.gt.f32.partialorder %v886_v12, 0.0 }
  0xfb   : > { %v929_v17 = vmul.f32 %v1628_v56, %v887_v13  ;;  %vm905_vm7 = vcmp.gt.f32.partialorder %v887_v13, 0.0  ;;  %v678_v53 = vpop.f32.mrf.mxu0  ;;  %v808_v20 = vpop.f32.mrf.mxu2 }
  0xfc   : > { %v711_v54 = vpop.f32.mrf.mxu1  ;;  %v734_v18 = vadd.f32 %v678_v53, %v1583_v61  ;;  %v841_v23 = vpop.f32.mrf.mxu3  ;;  %v946_v24 = vsel %vm904_vm6, %v886_v12, %v928_v14  ;;  %vm1025_vm6 = vcmask 519168  }
  0xfd   : > { %v735_v19 = vadd.f32 %v711_v54, %v1585_v62  ;;  %v947_v25 = vsel %vm905_vm7, %v887_v13, %v929_v17 }
  0xfe   : > { %v1644_v26 = vmax.f32 %v946_v24, %v947_v25  ;;  %v864_v29 = vadd.f32 %v808_v20, %v734_v18 }
  0xff   : > { %v865_v30 = vadd.f32 %v841_v23, %v735_v19 }
 0x100   : > { %v1351_v31 = vpack.i.bf16 %v1644_v26, %v1636_v7  ;;  %v888_v32 = vadd.f32 %v1622_v46, %v864_v29 }
 0x101   : > { %v889_v35 = vadd.f32 %v1624_v50, %v865_v30 }
 0x102   : > { %1352 = vrot.lane.b32.xlu0 %v1351_v31, %s1414_s14  ;;  %vm906_vm8 = vcmp.gt.f32.partialorder %v888_v32, 0.0  ;;  %v930_v61 = vmul.f32 %v1626_v52, %v888_v32 }
 0x103   : > { %vm907_vm9 = vcmp.gt.f32.partialorder %v889_v35, 0.0  ;;  %v931_v62 = vmul.f32 %v1628_v56, %v889_v35  ;;  %v680_v36 = vpop.f32.mrf.mxu0  ;;  %v810_v40 = vpop.f32.mrf.mxu2 }
 0x104   : > { %v713_v37 = vpop.f32.mrf.mxu1  ;;  %v736_v38 = vadd.f32 %v680_v36, %v1589_v3  ;;  %v843_v41 = vpop.f32.mrf.mxu3  ;;  %v948_v42 = vsel %vm906_vm8, %v888_v32, %v930_v61 }
 0x105   : > { %v737_v39 = vadd.f32 %v713_v37, %v1591_v4  ;;  %v949_v43 = vsel %vm907_vm9, %v889_v35, %v931_v62 }
 0x106   : > { %v1655_v44 = vmax.f32 %v948_v42, %v949_v43  ;;  %v866_v45 = vadd.f32 %v810_v40, %v736_v38 }
 0x107   : > { %v867_v49 = vadd.f32 %v843_v41, %v737_v39 }
 0x108   : > { %v890_v51 = vadd.f32 %v1622_v46, %v866_v45 }
 0x109   : > { %v891_v55 = vadd.f32 %v1624_v50, %v867_v49 }
 0x10a   : > { %vm908_vm10 = vcmp.gt.f32.partialorder %v890_v51, 0.0  ;;  %v932_v57 = vmul.f32 %v1626_v52, %v890_v51 }
 0x10b   : > { %vm909_vm11 = vcmp.gt.f32.partialorder %v891_v55, 0.0  ;;  %v933_v3 = vmul.f32 %v1628_v56, %v891_v55  ;;  %v683_v58 = vpop.f32.mrf.mxu0  ;;  %v813_v59 = vpop.f32.mrf.mxu2 }
 0x10c   : > { %v716_v4 = vpop.f32.mrf.mxu1  ;;  %v738_v47 = vadd.f32 %v683_v58, %v1593_v9  ;;  %v846_v60 = vpop.f32.mrf.mxu3  ;;  %v950_v63 = vsel %vm908_vm10, %v890_v51, %v932_v57 }
 0x10d   : > { %v739_v48 = vadd.f32 %v716_v4, %v1595_v10  ;;  %v951_v0 = vsel %vm909_vm11, %v891_v55, %v933_v3 }
 0x10e   : > { %v1663_v1 = vmax.f32 %v950_v63, %v951_v0  ;;  %v868_v2 = vadd.f32 %v813_v59, %v738_v47 }
 0x10f   : > { %v869_v5 = vadd.f32 %v846_v60, %v739_v48 }
 0x110   : > { %v1356_v6 = vpack.i.bf16 %v1663_v1, %v1655_v44  ;;  %v892_v8 = vadd.f32 %v1622_v46, %v868_v2 }
 0x111   : > { %v893_v11 = vadd.f32 %v1624_v50, %v869_v5 }
 0x112   : > { %1357 = vrot.lane.b32.xlu0 %v1356_v6, %s1414_s14  ;;  %v934_v9 = vmul.f32 %v1626_v52, %v892_v8  ;;  %vm910_vm12 = vcmp.gt.f32.partialorder %v892_v8, 0.0 }
 0x113   : > { %v935_v10 = vmul.f32 %v1628_v56, %v893_v11  ;;  %vm911_vm13 = vcmp.gt.f32.partialorder %v893_v11, 0.0  ;;  %v685_v12 = vpop.f32.mrf.mxu0  ;;  %v815_v53 = vpop.f32.mrf.mxu2 }
 0x114   : > { %v718_v13 = vpop.f32.mrf.mxu1  ;;  %v740_v14 = vadd.f32 %v685_v12, %v1597_v15  ;;  %v848_v54 = vpop.f32.mrf.mxu3  ;;  %v952_v18 = vsel %vm910_vm12, %v892_v8, %v934_v9 }
 0x115   : > { %v741_v17 = vadd.f32 %v718_v13, %v1599_v16  ;;  %v953_v19 = vsel %vm911_vm13, %v893_v11, %v935_v10 }
 0x116   : > { %v1674_v20 = vmax.f32 %v952_v18, %v953_v19  ;;  %v870_v23 = vadd.f32 %v815_v53, %v740_v14 }
 0x117   : > { %v871_v24 = vadd.f32 %v848_v54, %v741_v17 }
 0x118   : > { %v894_v25 = vadd.f32 %v1622_v46, %v870_v23 }
 0x119   : > { %v895_v29 = vadd.f32 %v1624_v50, %v871_v24 }
 0x11a   : > { %v936_v30 = vmul.f32 %v1626_v52, %v894_v25  ;;  %vm912_vm14 = vcmp.gt.f32.partialorder %v894_v25, 0.0 }
 0x11b   : > { %v937_v31 = vmul.f32 %v1628_v56, %v895_v29  ;;  %vm913_vm15 = vcmp.gt.f32.partialorder %v895_v29, 0.0  ;;  %v688_v15 = vpop.f32.mrf.mxu0  ;;  %v818_v61 = vpop.f32.mrf.mxu2 }
 0x11c   : > { %v721_v16 = vpop.f32.mrf.mxu1  ;;  %v742_v32 = vadd.f32 %v688_v15, %v1601_v21  ;;  %v851_v62 = vpop.f32.mrf.mxu3  ;;  %v954_v36 = vsel %vm912_vm14, %v894_v25, %v936_v30 }
 0x11d   : > { %v743_v35 = vadd.f32 %v721_v16, %v1603_v22  ;;  %v955_v37 = vsel %vm913_vm15, %v895_v29, %v937_v31 }
 0x11e   : > { %v1682_v38 = vmax.f32 %v954_v36, %v955_v37  ;;  %v872_v39 = vadd.f32 %v818_v61, %v742_v32 }
 0x11f   : > { %v873_v40 = vadd.f32 %v851_v62, %v743_v35 }
 0x120   : > { %v1361_v41 = vpack.i.bf16 %v1682_v38, %v1674_v20  ;;  %v896_v42 = vadd.f32 %v1622_v46, %v872_v39 }
 0x121   : > { %v897_v43 = vadd.f32 %v1624_v50, %v873_v40 }
 0x122   : > { %1362 = vrot.lane.b32.xlu1 %v1361_v41, %s1414_s14  ;;  %vm914_vm0 = vcmp.gt.f32.partialorder %v896_v42, 0.0  ;;  %v938_v21 = vmul.f32 %v1626_v52, %v896_v42 }
 0x123   : > { %vm915_vm1 = vcmp.gt.f32.partialorder %v897_v43, 0.0  ;;  %v939_v22 = vmul.f32 %v1628_v56, %v897_v43  ;;  %v690_v45 = vpop.f32.mrf.mxu0  ;;  %v820_v57 = vpop.f32.mrf.mxu2 }
 0x124   : > { %v723_v49 = vpop.f32.mrf.mxu1  ;;  %v744_v51 = vadd.f32 %v690_v45, %v1605_v27  ;;  %v853_v3 = vpop.f32.mrf.mxu3  ;;  %v956_v58 = vsel %vm914_vm0, %v896_v42, %v938_v21 }
 0x125   : > { %v745_v55 = vadd.f32 %v723_v49, %v1607_v28  ;;  %v957_v4 = vsel %vm915_vm1, %v897_v43, %v939_v22 }
 0x126   : > { %v1693_v47 = vmax.f32 %v956_v58, %v957_v4  ;;  %v874_v48 = vadd.f32 %v820_v57, %v744_v51 }
 0x127   : > { %v875_v59 = vadd.f32 %v853_v3, %v745_v55 }
 0x128   : > { %v898_v60 = vadd.f32 %v1622_v46, %v874_v48 }
 0x129   : > { %v899_v63 = vadd.f32 %v1624_v50, %v875_v59 }
 0x12a   : > { %vm916_vm2 = vcmp.gt.f32.partialorder %v898_v60, 0.0  ;;  %v940_v0 = vmul.f32 %v1626_v52, %v898_v60 }
 0x12b   : > { %vm917_vm3 = vcmp.gt.f32.partialorder %v899_v63, 0.0  ;;  %v941_v27 = vmul.f32 %v1628_v56, %v899_v63  ;;  %v693_v2 = vpop.f32.mrf.mxu0  ;;  %v823_v8 = vpop.f32.mrf.mxu2 }
 0x12c   : > { %v726_v28 = vpop.f32.mrf.mxu1  ;;  %v746_v5 = vadd.f32 %v693_v2, %v1609_v33  ;;  %v856_v11 = vpop.f32.mrf.mxu3  ;;  %v958_v9 = vsel %vm916_vm2, %v898_v60, %v940_v0 }
 0x12d   : > { %v747_v6 = vadd.f32 %v726_v28, %v1611_v34  ;;  %v959_v10 = vsel %vm917_vm3, %v899_v63, %v941_v27 }
 0x12e   : > { %v969_v12 = vmax.f32 %v958_v9, %v959_v10  ;;  %v876_v13 = vadd.f32 %v823_v8, %v746_v5 }
 0x12f   : > { %v877_v14 = vadd.f32 %v856_v11, %v747_v6 }
 0x130   : > { %v1366_v17 = vpack.i.bf16 %v969_v12, %v1693_v47  ;;  %v900_v53 = vadd.f32 %v1622_v46, %v876_v13 }
 0x131   : > { %v901_v54 = vadd.f32 %v1624_v50, %v877_v14 }
 0x132   : > { %1367 = vrot.lane.b32.xlu1 %v1366_v17, %s1414_s14  ;;  %vm918_vm4 = vcmp.gt.f32.partialorder %v900_v53, 0.0  ;;  %v942_v33 = vmul.f32 %v1626_v52, %v900_v53 }
 0x133   : > { %vm919_vm5 = vcmp.gt.f32.partialorder %v901_v54, 0.0  ;;  %v943_v34 = vmul.f32 %v1628_v56, %v901_v54  ;;  %v695_v18 = vpop.f32.mrf.mxu0  ;;  %v825_v25 = vpop.f32.mrf.mxu2 }
 0x134   : > { %v728_v19 = vpop.f32.mrf.mxu1  ;;  %v960_v23 = vsel %vm918_vm4, %v900_v53, %v942_v33  ;;  %v858_v29 = vpop.f32.mrf.mxu3 }
 0x135   : > { %v961_v24 = vsel %vm919_vm5, %v901_v54, %v943_v34 }
 0x136   : > { %v970_v30 = vmax.f32 %v960_v23, %v961_v24 }
 0x138   : > { %996 = vrot.lane.b32.xlu2 %v970_v30, %s1414_s14 }
 0x174   : > { %v1353_v46 = vpop.permute.xlu0 %1352 }
 0x175   : > { %v1355_v50 = vunpack.i.h.bf16 %v1353_v46  ;;  %v1354_v31 = vunpack.i.l.bf16 %v1353_v46 }
 0x177   : > { %v1008_v52 = vmax.f32 %v1644_v26, %v1355_v50  ;;  %v1007_v56 = vmax.f32 %v1636_v7, %v1354_v31 }
 0x179   : > { %v1017_v15 = vpack.c.bf16 %v1008_v52, %v1008_v52  ;;  %v1016_v16 = vpack.c.bf16 %v1007_v56, %v1007_v56 }
 0x17b   : > { %1027 = vst.msk [vmem:[%s1715_s28 + $0x4] sm:$0xf] %vm1025_vm6, %v1017_v15 }
 0x17c   : > { %1026 = vst.msk [vmem:[%s1715_s28] sm:$0xf] %vm1025_vm6, %v1016_v16 }
 0x184   : > { %v1358_v26 = vpop.permute.xlu0 %1357 }
 0x185   : > { %v1360_v32 = vunpack.i.h.bf16 %v1358_v26  ;;  %v1359_v7 = vunpack.i.l.bf16 %v1358_v26 }
 0x187   : > { %v1010_v35 = vmax.f32 %v1663_v1, %v1360_v32  ;;  %v1009_v61 = vmax.f32 %v1655_v44, %v1359_v7 }
 0x189   : > { %v1019_v62 = vpack.c.bf16 %v1010_v35, %v1010_v35  ;;  %v1018_v36 = vpack.c.bf16 %v1009_v61, %v1009_v61 }
 0x18b   : > { %1029 = vst.msk [vmem:[%s1715_s28 + $0xc] sm:$0xf] %vm1025_vm6, %v1019_v62 }
 0x18c   : > { %1028 = vst.msk [vmem:[%s1715_s28 + $0x8] sm:$0xf] %vm1025_vm6, %v1018_v36 }
 0x192   : > { %v997_v37 = vpop.permute.xlu2 %996 }
 0x193   : > { %v1015_v39 = vmax.f32 %v970_v30, %v997_v37 }
 0x194   : > { %v1363_v40 = vpop.permute.xlu1 %1362 }
 0x195   : > { %v1024_v41 = vpack.c.bf16 %v1015_v39, %v1015_v39  ;;  %v1365_v42 = vunpack.i.h.bf16 %v1363_v40  ;;  %v1364_v43 = vunpack.i.l.bf16 %v1363_v40 }
 0x197   : > { %1034 = vst.msk [vmem:[%s1715_s28 + $0x20] sm:$0xf] %vm1025_vm6, %v1024_v41  ;;  %v1012_v44 = vmax.f32 %v1682_v38, %v1365_v42  ;;  %v1011_v1 = vmax.f32 %v1674_v20, %v1364_v43 }
 0x199   : > { %v1021_v21 = vpack.c.bf16 %v1012_v44, %v1012_v44  ;;  %v1020_v22 = vpack.c.bf16 %v1011_v1, %v1011_v1 }
 0x19b   : > { %1031 = vst.msk [vmem:[%s1715_s28 + $0x14] sm:$0xf] %vm1025_vm6, %v1021_v21 }
 0x19c   : > { %1030 = vst.msk [vmem:[%s1715_s28 + $0x10] sm:$0xf] %vm1025_vm6, %v1020_v22 }
 0x1a4   : > { %v1368_v45 = vpop.permute.xlu1 %1367 }
 0x1a5   : > { %v1370_v49 = vunpack.i.h.bf16 %v1368_v45  ;;  %v1369_v51 = vunpack.i.l.bf16 %v1368_v45 }
 0x1a7   : > { %v1014_v55 = vmax.f32 %v969_v12, %v1370_v49  ;;  %v1013_v57 = vmax.f32 %v1693_v47, %v1369_v51 }
 0x1a9   : > { %v1023_v3 = vpack.c.bf16 %v1014_v55, %v1014_v55  ;;  %v1022_v58 = vpack.c.bf16 %v1013_v57, %v1013_v57 }
 0x1ab   : > { %1033 = vst.msk [vmem:[%s1715_s28 + $0x1c] sm:$0xf] %vm1025_vm6, %v1023_v3 }
 0x1ac   : > { %1032 = vst.msk [vmem:[%s1715_s28 + $0x18] sm:$0xf] %vm1025_vm6, %v1022_v58 }
 0x1ad PF: > { %s14_s19 = sadd.s32 1, %s1412_s19   ;;  %s1760_s15 = smov %s1404_s17 }
 0x1ae   : > { %p11_p7 = scmp.ge.s32.totalorder %s14_s19, 14   ;;  %s1761_s16 = smov %s1408_s18 }
 0x1af   : > { %s1762_s17 = smov %s1765_s20  ;;  %s1763_s18 = smov %s1769_s21 }
 0x1b0   :  { %13 = sbr.rel (!%p11_p7) target bundleno = 3 (0x3), region = 78 }

// kernel: g_forward.4
= control target key start
LH: loop header
LB: loop body
LE: loop exit
PB: predicated region body
PF: predicated region fallthrough
CT: control target
= control target key end

     0   :  { %s2575_s15 = smov 0   ;;  %s2577_s16 = smov 0   ;;  %s3003_s0 = inlined_call_operand.vmem [shape: bf16[6,2,26,256], index: 0, kind: input, shape index: {}]   ;;  %s3004_s1 = inlined_call_operand.vmem [shape: bf16[6,4,256,256], index: 1, kind: input, shape index: {}]   ;;  %s3005_s2 = inlined_call_operand.vmem [shape: f32[6,1,256], index: 2, kind: input, shape index: {}]   ;;  %s3006_s3 = inlined_call_operand.vmem [shape: f32[6,1,256], index: 3, kind: input, shape index: {}]   ;;  %s3007_s4 = inlined_call_operand.vmem [shape: bf16[2,6,20,64], index: 4, kind: output, shape index: {}]  }
   0x1   :  { %s2579_s17 = smov 0   ;;  %s2581_s18 = smov 0  }
   0x2   :  { %s2583_s19 = smov 0  }
   0x3 LB: > { %s23_s20 = sadd.s32 1, %s2539_s17  ;;  %s26_s21 = sadd.s32 1, %s2543_s18  ;;  %s2547_s19 = sphi %s2583_s19, %s14_s19   ;;  %s2543_s18 = sphi %s2581_s18, %s3011_s18   ;;  %s2539_s17 = sphi %s2579_s17, %s3010_s17   ;;  %s2535_s16 = sphi %s2577_s16, %s3009_s16   ;;  %s2531_s15 = sphi %s2575_s15, %s3008_s15  }
   0x4   : > { %p24_p0 = scmp.ge.s32.totalorder %s23_s20, 2  ;;  %p1693_p1 = scmp.ge.s32.totalorder %s2547_s19, 1 }
   0x5   : > { %p210_p2 = scmp.lt.s32.totalorder %s2547_s19, 13 }
   0x6   : > { %s3013_s20 = smov (%p24_p0, %s23_s20), 0  ;;  %s3015_s21 = smov (!%p24_p0, %s26_s21), %s2543_s18 }
   0x7   : > { %p211_p3 = pnand %p1693_p1, %p210_p2  ;;  %p28_p4 = scmp.ge.s32.totalorder %s3015_s21, 6 }
   0x8   : > { %p257_p5 = scmp.lt.s32.totalorder (!%p211_p3), %s2535_s16, 5  ;;  %p259_p6 = scmp.lt.s32.totalorder (!%p211_p3), %s2531_s15, 1 }
   0x9   : > { %s3017_s21 = smov (%p28_p4, %s3015_s21), 0  ;;  %214 = sbr.rel (%p211_p3) target bundleno = 432 (0x1b0), region = 36 }
   0xa   : > { %s2549_s14 = smov (!%p211_p3), 64  }
   0xe   : > { %s3019_s16 = smov (!%p257_p5, %s2535_s16), 5  ;;  %s3021_s15 = smov (!%p259_p6, %s2531_s15), 1  ;;  %vm370_vm0 = vsmask.f32 7424  ;;  %vm931_vm1 = vsmask.f32 5376 }
   0xf   : > { %s2328_s22 = sshll.u32 %s3019_s16, 10  ;;  %s1694_s26 = sshll.u32 %s3021_s15, 3  ;;  %vm1247_vm2 = vcmask 1044480   ;;  %vm1553_vm9 = vcmask 519168   ;;  %vm1556_vm10 = vcmask 517120  }
  0x10   : > { %s2613_s25 = scalar_lea.vmem %s3004_s1, %s2328_s22  ;;  %s1695_s27 = sshll.u32 %s3019_s16, 4 }
  0x11   : > { %v1800_v0 = vld [vmem:[%s2613_s25 + $0x170] sm:$0xf]  ;;  %v2378_v1 = vld [vmem:[%s2613_s25 + $0x174] sm:$0xf0]  ;;  %v2377_v5 = vld [vmem:[%s2613_s25 + $0x174] sm:$0xf]  ;;  %s263_s28 = sadd.s32 %s1695_s27, %s1694_s26 }
  0x12   : > { %v1864_v2 = vld [vmem:[%s2613_s25 + $0x1f0] sm:$0xf]  ;;  %v1801_v3 = vor.u32 %v2378_v1, %v1800_v0  ;;  %v2394_v4 = vld [vmem:[%s2613_s25 + $0x1f4] sm:$0xf0]  ;;  %v1802_v6 = vld [vmem:[%s2613_s25 + $0x178] sm:$0xf0] }
  0x13   : > { %v1865_v7 = vor.u32 %v2394_v4, %v1864_v2  ;;  %v1805_v8 = vor.u32 %v2377_v5, %v1802_v6  ;;  %v2393_v9 = vld [vmem:[%s2613_s25 + $0x1f4] sm:$0xf]  ;;  %v1866_v10 = vld [vmem:[%s2613_s25 + $0x1f8] sm:$0xf0]  ;;  %v1792_v11 = vld [vmem:[%s2613_s25 + $0x160] sm:$0xf] }
  0x14   : > { %565 = vmatpush.bf16.msra.mxu0 %v1801_v3  ;;  %v1869_v12 = vor.u32 %v2393_v9, %v1866_v10  ;;  %v2376_v13 = vld [vmem:[%s2613_s25 + $0x164] sm:$0xf0]  ;;  %v1856_v14 = vld [vmem:[%s2613_s25 + $0x1e0] sm:$0xf]  ;;  %v2375_v18 = vld [vmem:[%s2613_s25 + $0x164] sm:$0xf] }
  0x15   : > { %v2392_v15 = vld [vmem:[%s2613_s25 + $0x1e4] sm:$0xf0]  ;;  %583 = vmatpush.bf16.msra.mxu1 %v1865_v7  ;;  %601 = vmatpush.bf16.msra.mxu2 %v1805_v8  ;;  %v1793_v16 = vor.u32 %v2376_v13, %v1792_v11  ;;  %v1794_v19 = vld [vmem:[%s2613_s25 + $0x168] sm:$0xf0]  ;;  %v2391_v20 = vld [vmem:[%s2613_s25 + $0x1e4] sm:$0xf] }
  0x16   : > { %v1857_v17 = vor.u32 %v2392_v15, %v1856_v14  ;;  %619 = vmatpush.bf16.msra.mxu3 %v1869_v12  ;;  %v1797_v21 = vor.u32 %v2375_v18, %v1794_v19  ;;  %v1858_v22 = vld [vmem:[%s2613_s25 + $0x1e8] sm:$0xf0]  ;;  %v1784_v23 = vld [vmem:[%s2613_s25 + $0x150] sm:$0xf]  ;;  %v2374_v24 = vld [vmem:[%s2613_s25 + $0x154] sm:$0xf0] }
  0x17   : > { %v1861_v25 = vor.u32 %v2391_v20, %v1858_v22  ;;  %v1848_v26 = vld [vmem:[%s2613_s25 + $0x1d0] sm:$0xf]  ;;  %v2390_v27 = vld [vmem:[%s2613_s25 + $0x1d4] sm:$0xf0]  ;;  %v2373_v28 = vld [vmem:[%s2613_s25 + $0x154] sm:$0xf]  ;;  %v1785_v29 = vor.u32 %v2374_v24, %v1784_v23 }
  0x18   : > { %566 = vmatpush.bf16.msra.mxu0 %v1793_v16  ;;  %v1786_v30 = vld [vmem:[%s2613_s25 + $0x158] sm:$0xf0]  ;;  %v2389_v31 = vld [vmem:[%s2613_s25 + $0x1d4] sm:$0xf]  ;;  %v1849_v33 = vor.u32 %v2390_v27, %v1848_v26  ;;  %v1776_v35 = vld [vmem:[%s2613_s25 + $0x140] sm:$0xf] }
  0x19   : > { %v1850_v32 = vld [vmem:[%s2613_s25 + $0x1d8] sm:$0xf0]  ;;  %584 = vmatpush.bf16.msra.mxu1 %v1857_v17  ;;  %602 = vmatpush.bf16.msra.mxu2 %v1797_v21  ;;  %v1789_v34 = vor.u32 %v2373_v28, %v1786_v30  ;;  %v2372_v36 = vld [vmem:[%s2613_s25 + $0x144] sm:$0xf0]  ;;  %v1840_v37 = vld [vmem:[%s2613_s25 + $0x1c0] sm:$0xf] }
  0x1a   : > { %620 = vmatpush.bf16.msra.mxu3 %v1861_v25  ;;  %v1853_v38 = vor.u32 %v2389_v31, %v1850_v32  ;;  %v2388_v39 = vld [vmem:[%s2613_s25 + $0x1c4] sm:$0xf0]  ;;  %v2371_v40 = vld [vmem:[%s2613_s25 + $0x144] sm:$0xf]  ;;  %v1778_v41 = vld [vmem:[%s2613_s25 + $0x148] sm:$0xf0]  ;;  %v1777_v44 = vor.u32 %v2372_v36, %v1776_v35 }
  0x1b   : > { %v2387_v42 = vld [vmem:[%s2613_s25 + $0x1c4] sm:$0xf]  ;;  %v1842_v43 = vld [vmem:[%s2613_s25 + $0x1c8] sm:$0xf0]  ;;  %v1841_v45 = vor.u32 %v2388_v39, %v1840_v37  ;;  %v1781_v46 = vor.u32 %v2371_v40, %v1778_v41  ;;  %v1768_v47 = vld [vmem:[%s2613_s25 + $0x130] sm:$0xf] }
  0x1c   : > { %567 = vmatpush.bf16.msra.mxu0 %v1785_v29  ;;  %v2370_v48 = vld [vmem:[%s2613_s25 + $0x134] sm:$0xf0]  ;;  %v1832_v49 = vld [vmem:[%s2613_s25 + $0x1b0] sm:$0xf]  ;;  %v1845_v50 = vor.u32 %v2387_v42, %v1842_v43  ;;  %v2369_v52 = vld [vmem:[%s2613_s25 + $0x134] sm:$0xf] }
  0x1d   : > { %585 = vmatpush.bf16.msra.mxu1 %v1849_v33  ;;  %603 = vmatpush.bf16.msra.mxu2 %v1789_v34  ;;  %v2386_v51 = vld [vmem:[%s2613_s25 + $0x1b4] sm:$0xf0]  ;;  %v1770_v53 = vld [vmem:[%s2613_s25 + $0x138] sm:$0xf0]  ;;  %v2385_v54 = vld [vmem:[%s2613_s25 + $0x1b4] sm:$0xf]  ;;  %v1769_v56 = vor.u32 %v2370_v48, %v1768_v47 }
  0x1e   : > { %621 = vmatpush.bf16.msra.mxu3 %v1853_v38  ;;  %v1834_v55 = vld [vmem:[%s2613_s25 + $0x1b8] sm:$0xf0]  ;;  %v1833_v57 = vor.u32 %v2386_v51, %v1832_v49  ;;  %v1773_v58 = vor.u32 %v2369_v52, %v1770_v53  ;;  %v1760_v59 = vld [vmem:[%s2613_s25 + $0x120] sm:$0xf]  ;;  %v2368_v60 = vld [vmem:[%s2613_s25 + $0x124] sm:$0xf0] }
  0x1f   : > { %v1824_v61 = vld [vmem:[%s2613_s25 + $0x1a0] sm:$0xf]  ;;  %v1837_v62 = vor.u32 %v2385_v54, %v1834_v55  ;;  %v2384_v63 = vld [vmem:[%s2613_s25 + $0x1a4] sm:$0xf0]  ;;  %v2367_v0 = vld [vmem:[%s2613_s25 + $0x124] sm:$0xf]  ;;  %v1761_v4 = vor.u32 %v2368_v60, %v1760_v59 }
  0x20   : > { %568 = vmatpush.bf16.msra.mxu0 %v1777_v44  ;;  %v1762_v1 = vld [vmem:[%s2613_s25 + $0x128] sm:$0xf0]  ;;  %v2383_v2 = vld [vmem:[%s2613_s25 + $0x1a4] sm:$0xf]  ;;  %v1752_v5 = vld [vmem:[%s2613_s25 + $0x110] sm:$0xf]  ;;  %v1825_v8 = vor.u32 %v2384_v63, %v1824_v61 }
  0x21   : > { %586 = vmatpush.bf16.msra.mxu1 %v1841_v45  ;;  %604 = vmatpush.bf16.msra.mxu2 %v1781_v46  ;;  %v1826_v3 = vld [vmem:[%s2613_s25 + $0x1a8] sm:$0xf0]  ;;  %v2366_v6 = vld [vmem:[%s2613_s25 + $0x114] sm:$0xf0]  ;;  %v1816_v7 = vld [vmem:[%s2613_s25 + $0x190] sm:$0xf]  ;;  %v1765_v9 = vor.u32 %v2367_v0, %v1762_v1 }
  0x22   : > { %622 = vmatpush.bf16.msra.mxu3 %v1845_v50  ;;  %v2382_v10 = vld [vmem:[%s2613_s25 + $0x194] sm:$0xf0]  ;;  %v2365_v11 = vld [vmem:[%s2613_s25 + $0x114] sm:$0xf]  ;;  %v1754_v12 = vld [vmem:[%s2613_s25 + $0x118] sm:$0xf0]  ;;  %v1829_v13 = vor.u32 %v2383_v2, %v1826_v3  ;;  %v1753_v20 = vor.u32 %v2366_v6, %v1752_v5 }
  0x23   : > { %v2381_v14 = vld [vmem:[%s2613_s25 + $0x194] sm:$0xf]  ;;  %v1818_v15 = vld [vmem:[%s2613_s25 + $0x198] sm:$0xf0]  ;;  %s1696_s29 = sshll.u32 %s263_s28, 2  ;;  %v1817_v21 = vor.u32 %v2382_v10, %v1816_v7  ;;  %v1757_v27 = vor.u32 %v2365_v11, %v1754_v12  ;;  %s1699_s7 = sshll.u32 %s3019_s16, 1 }
  0x24   : > { %569 = vmatpush.bf16.msra.mxu0 %v1769_v56  ;;  %v1744_v16 = vld [vmem:[%s2613_s25 + $0x100] sm:$0xf]  ;;  %v2364_v17 = vld [vmem:[%s2613_s25 + $0x104] sm:$0xf0]  ;;  %s2686_s6 = scalar_lea.vmem %s3003_s0, %s1696_s29  ;;  %v2363_v22 = vld [vmem:[%s2613_s25 + $0x104] sm:$0xf]  ;;  %v1821_v34 = vor.u32 %v2381_v14, %v1818_v15  ;;  %s274_s10 = scalar_lea.vmem %s3005_s2, %s1699_s7 }
  0x25   : > { %587 = vmatpush.bf16.msra.mxu1 %v1833_v57  ;;  %605 = vmatpush.bf16.msra.mxu2 %v1773_v58  ;;  %v1808_v18 = vld [vmem:[%s2613_s25 + $0x180] sm:$0xf]  ;;  %v2380_v19 = vld [vmem:[%s2613_s25 + $0x184] sm:$0xf0]  ;;  %v1746_v23 = vld [vmem:[%s2613_s25 + $0x108] sm:$0xf0]  ;;  %v1745_v44 = vor.u32 %v2364_v17, %v1744_v16  ;;  %s278_s13 = scalar_lea.vmem %s3006_s3, %s1699_s7 }
  0x26   : > { %623 = vmatpush.bf16.msra.mxu3 %v1837_v62  ;;  %v1736_v24 = vld [vmem:[%s2686_s6] sm:$0xf]  ;;  %v2330_v25 = vld [vmem:[%s2686_s6 + $0x4] sm:$0xf0]  ;;  %v323_v26 = vld [vmem:[%s2686_s6 + $0x10] sm:$0x77]  ;;  %v1809_v45 = vor.u32 %v2380_v19, %v1808_v18  ;;  %v1749_v50 = vor.u32 %v2363_v22, %v1746_v23 }
  0x27   : > { %v2379_v28 = vld [vmem:[%s2613_s25 + $0x184] sm:$0xf]  ;;  %v364_v29 = vunpack.c.l.b16 %v323_v26  ;;  %v2694_v30 = vor.u32 %v2330_v25, %v1736_v24  ;;  %v1738_v32 = vld [vmem:[%s2686_s6 + $0x8] sm:$0xf0]  ;;  %v365_v33 = vunpack.c.h.b16 %v323_v26  ;;  %v2345_v37 = vld [vmem:[%s2613_s25 + $0x74] sm:$0xf] }
  0x28   : > { %570 = vmatpush.bf16.msra.mxu0 %v1761_v4  ;;  %v2329_v31 = vld [vmem:[%s2686_s6 + $0x4] sm:$0xf]  ;;  %v1810_v35 = vld [vmem:[%s2613_s25 + $0x188] sm:$0xf0]  ;;  %v1930_v42 = vld [vmem:[%s2613_s25 + $0x78] sm:$0xf0] }
  0x29   : > { %588 = vmatpush.bf16.msra.mxu1 %v1825_v8  ;;  %606 = vmatpush.bf16.msra.mxu2 %v1765_v9  ;;  %v2699_v36 = vor.u32 %v2329_v31, %v1738_v32  ;;  %v2702_v38 = vpack.c.b16 %v364_v29, %v364_v29  ;;  %v372_v39 = vshrl.u32 %v2694_v30, 16  ;;  %v374_v40 = vshll.u32 %v2694_v30, 16  ;;  %v2361_v43 = vld [vmem:[%s2613_s25 + $0xf4] sm:$0xf]  ;;  %v1994_v48 = vld [vmem:[%s2613_s25 + $0xf8] sm:$0xf0] }
  0x2a   : > { %624 = vmatpush.bf16.msra.mxu3 %v1829_v13  ;;  %v2706_v41 = vpack.c.b16 %v365_v33, %v365_v33  ;;  %v1928_v49 = vld [vmem:[%s2613_s25 + $0x70] sm:$0xf]  ;;  %v2346_v54 = vld [vmem:[%s2613_s25 + $0x74] sm:$0xf0]  ;;  %v1813_v55 = vor.u32 %v2379_v28, %v1810_v35  ;;  %v1933_v57 = vor.u32 %v2345_v37, %v1930_v42  ;;  %v1997_v63 = vor.u32 %v2361_v43, %v1994_v48  ;;  %v2343_v0 = vld [vmem:[%s2613_s25 + $0x64] sm:$0xf] }
  0x2b   : > { %v384_v46 = vshrl.u32 %v2699_v36, 16  ;;  %v386_v47 = vshll.u32 %v2699_v36, 16  ;;  %v376_v51 = vrot.slane %v374_v40, 1  ;;  %v379_v52 = vshll.u32 %v2702_v38, 16  ;;  %v1992_v58 = vld [vmem:[%s2613_s25 + $0xf0] sm:$0xf] }
  0x2c   : > { %571 = vmatpush.bf16.msra.mxu0 %v1753_v20  ;;  %v391_v53 = vshll.u32 %v2706_v41, 16  ;;  %v2362_v59 = vld [vmem:[%s2613_s25 + $0xf4] sm:$0xf0]  ;;  %v1922_v1 = vld [vmem:[%s2613_s25 + $0x68] sm:$0xf0]  ;;  %v1929_v6 = vor.u32 %v2346_v54, %v1928_v49  ;;  %v395_v33 = vshrl.u32 %v2702_v38, 16 }
  0x2d   : > { %589 = vmatpush.bf16.msra.mxu1 %v1817_v21  ;;  %607 = vmatpush.bf16.msra.mxu2 %v1757_v27  ;;  %v388_v56 = vrot.slane %v386_v47, 1  ;;  %v377_v60 = vor.u32 %v376_v51, %v372_v39  ;;  %v2719_v61 = vrot.slane %v379_v52, 1  ;;  %v2359_v3 = vld [vmem:[%s2613_s25 + $0xe4] sm:$0xf]  ;;  %v1986_v4 = vld [vmem:[%s2613_s25 + $0xe8] sm:$0xf0]  ;;  %v1993_v8 = vor.u32 %v2362_v59, %v1992_v58 }
  0x2e   : > { %625 = vmatpush.bf16.msra.mxu3 %v1821_v34  ;;  %v2721_v62 = vrot.slane %v391_v53, 1  ;;  %v1925_v9 = vor.u32 %v2343_v0, %v1922_v1  ;;  %v1920_v10 = vld [vmem:[%s2613_s25 + $0x60] sm:$0xf]  ;;  %v2344_v11 = vld [vmem:[%s2613_s25 + $0x64] sm:$0xf0]  ;;  %v1989_v13 = vor.u32 %v2359_v3, %v1986_v4  ;;  %s2461_s22 = smul.u32 3, %s3019_s16 }
  0x2f   : > { %v389_v2 = vor.u32 %v388_v56, %v384_v46  ;;  %v382_v5 = vsel %vm370_vm0, %v377_v60, %v2719_v61  ;;  %v1984_v12 = vld [vmem:[%s2613_s25 + $0xe0] sm:$0xf]  ;;  %v2360_v14 = vld [vmem:[%s2613_s25 + $0xe4] sm:$0xf0]  ;;  %v2341_v15 = vld [vmem:[%s2613_s25 + $0x54] sm:$0xf]  ;;  %v1921_v19 = vor.u32 %v2344_v11, %v1920_v10 }
  0x30   : > { %572 = vmatpush.bf16.msra.mxu0 %v1745_v44  ;;  %v1914_v16 = vld [vmem:[%s2613_s25 + $0x58] sm:$0xf0]  ;;  %v2357_v17 = vld [vmem:[%s2613_s25 + $0xd4] sm:$0xf]  ;;  %v1985_v20 = vor.u32 %v2360_v14, %v1984_v12  ;;  %v1912_v22 = vld [vmem:[%s2613_s25 + $0x50] sm:$0xf] }
  0x31   : > { %590 = vmatpush.bf16.msra.mxu1 %v1809_v45  ;;  %608 = vmatpush.bf16.msra.mxu2 %v1749_v50  ;;  %v394_v7 = vsel %vm370_vm0, %v389_v2, %v2721_v62  ;;  %v1978_v18 = vld [vmem:[%s2613_s25 + $0xd8] sm:$0xf0]  ;;  %v1917_v21 = vor.u32 %v2341_v15, %v1914_v16  ;;  %v2342_v23 = vld [vmem:[%s2613_s25 + $0x54] sm:$0xf0]  ;;  %v1976_v24 = vld [vmem:[%s2613_s25 + $0xd0] sm:$0xf] }
  0x32   : > { %626 = vmatpush.bf16.msra.mxu3 %v1813_v55  ;;  %v1981_v25 = vor.u32 %v2357_v17, %v1978_v18  ;;  %v2358_v26 = vld [vmem:[%s2613_s25 + $0xd4] sm:$0xf0]  ;;  %v2339_v27 = vld [vmem:[%s2613_s25 + $0x44] sm:$0xf]  ;;  %v1906_v28 = vld [vmem:[%s2613_s25 + $0x48] sm:$0xf0]  ;;  %v1913_v32 = vor.u32 %v2342_v23, %v1912_v22 }
  0x33   : > { %573 = vmatmul.bf16.vlgmr.msra.gmra.mxu0 %v382_v5  ;;  %v2355_v29 = vld [vmem:[%s2613_s25 + $0xc4] sm:$0xf]  ;;  %v1970_v31 = vld [vmem:[%s2613_s25 + $0xc8] sm:$0xf0]  ;;  %v1977_v34 = vor.u32 %v2358_v26, %v1976_v24  ;;  %v1909_v35 = vor.u32 %v2339_v27, %v1906_v28  ;;  %v1904_v37 = vld [vmem:[%s2613_s25 + $0x40] sm:$0xf] }
  0x34   : > { %591 = vmatmul.bf16.vlgmr.msra.gmra.mxu1 %v394_v7  ;;  %609 = vmatmul.bf16.vlgmr.msra.gmra.mxu2 %v382_v5  ;;  %v2340_v39 = vld [vmem:[%s2613_s25 + $0x44] sm:$0xf0]  ;;  %v1968_v40 = vld [vmem:[%s2613_s25 + $0xc0] sm:$0xf]  ;;  %v1973_v42 = vor.u32 %v2355_v29, %v1970_v31  ;;  %v2337_v44 = vld [vmem:[%s2613_s25 + $0x34] sm:$0xf] }
  0x35   : > { %842 = vmatpush.bf16.msrb.mxu2 %v1933_v57  ;;  %627 = vmatmul.bf16.vlgmr.msra.gmra.mxu3 %v394_v7  ;;  %v2356_v43 = vld [vmem:[%s2613_s25 + $0xc4] sm:$0xf0]  ;;  %v1898_v45 = vld [vmem:[%s2613_s25 + $0x38] sm:$0xf0]  ;;  %v398_v46 = vshrl.u32 %v2706_v41, 16  ;;  %v1905_v48 = vor.u32 %v2340_v39, %v1904_v37  ;;  %v397_v41 = vor.u32 %v395_v33, %v2719_v61  ;;  %s2462_s23 = smul.u32 18, %s3021_s15 }
  0x36   : > { %860 = vmatpush.bf16.msrb.mxu3 %v1997_v63  ;;  %806 = vmatpush.bf16.msrb.mxu0 %v1929_v6  ;;  %v2353_v38 = vld [vmem:[%s2613_s25 + $0xb4] sm:$0xf]  ;;  %v1962_v47 = vld [vmem:[%s2613_s25 + $0xb8] sm:$0xf0]  ;;  %v1969_v49 = vor.u32 %v2356_v43, %v1968_v40  ;;  %v1901_v50 = vor.u32 %v2337_v44, %v1898_v45  ;;  %v1896_v51 = vld [vmem:[%s2613_s25 + $0x30] sm:$0xf] }
  0x37   : > { %824 = vmatpush.bf16.msrb.mxu1 %v1993_v8  ;;  %v2338_v52 = vld [vmem:[%s2613_s25 + $0x34] sm:$0xf0]  ;;  %v1960_v53 = vld [vmem:[%s2613_s25 + $0xb0] sm:$0xf]  ;;  %v1965_v54 = vor.u32 %v2353_v38, %v1962_v47  ;;  %v2335_v56 = vld [vmem:[%s2613_s25 + $0x24] sm:$0xf]  ;;  %v400_v58 = vor.u32 %v398_v46, %v2721_v62  ;;  %s285_s24 = sadd.s32 %s2462_s23, %s2461_s22 }
  0x38   : > { %v2354_v55 = vld [vmem:[%s2613_s25 + $0xb4] sm:$0xf0]  ;;  %v1890_v57 = vld [vmem:[%s2613_s25 + $0x28] sm:$0xf0]  ;;  %v2351_v59 = vld [vmem:[%s2613_s25 + $0xa4] sm:$0xf]  ;;  %v1897_v63 = vor.u32 %v2338_v52, %v1896_v51 }
  0x39   : > { %843 = vmatpush.bf16.msrb.mxu2 %v1925_v9  ;;  %v1954_v60 = vld [vmem:[%s2613_s25 + $0xa8] sm:$0xf0]  ;;  %v1961_v0 = vor.u32 %v2354_v55, %v1960_v53  ;;  %v1893_v61 = vor.u32 %v2335_v56, %v1890_v57  ;;  %v1888_v1 = vld [vmem:[%s2613_s25 + $0x20] sm:$0xf]  ;;  %v2336_v2 = vld [vmem:[%s2613_s25 + $0x24] sm:$0xf0] }
  0x3a   : > { %861 = vmatpush.bf16.msrb.mxu3 %v1989_v13  ;;  %807 = vmatpush.bf16.msrb.mxu0 %v1921_v19  ;;  %v1952_v3 = vld [vmem:[%s2613_s25 + $0xa0] sm:$0xf]  ;;  %v1957_v4 = vor.u32 %v2351_v59, %v1954_v60  ;;  %v2352_v62 = vld [vmem:[%s2613_s25 + $0xa4] sm:$0xf0]  ;;  %v2333_v5 = vld [vmem:[%s2613_s25 + $0x14] sm:$0xf]  ;;  %v1889_v9 = vor.u32 %v2336_v2, %v1888_v1 }
  0x3b   : > { %825 = vmatpush.bf16.msrb.mxu1 %v1985_v20  ;;  %v1882_v6 = vld [vmem:[%s2613_s25 + $0x18] sm:$0xf0]  ;;  %v2349_v7 = vld [vmem:[%s2613_s25 + $0x94] sm:$0xf]  ;;  %v1880_v10 = vld [vmem:[%s2613_s25 + $0x10] sm:$0xf]  ;;  %v1953_v11 = vor.u32 %v2352_v62, %v1952_v3 }
  0x3c   : > { %v1946_v8 = vld [vmem:[%s2613_s25 + $0x98] sm:$0xf0]  ;;  %v1885_v12 = vor.u32 %v2333_v5, %v1882_v6  ;;  %v2334_v13 = vld [vmem:[%s2613_s25 + $0x14] sm:$0xf0]  ;;  %v1944_v14 = vld [vmem:[%s2613_s25 + $0x90] sm:$0xf] }
  0x3d   : > { %844 = vmatpush.bf16.msrb.mxu2 %v1917_v21  ;;  %v2350_v15 = vld [vmem:[%s2613_s25 + $0x94] sm:$0xf0]  ;;  %v1949_v16 = vor.u32 %v2349_v7, %v1946_v8  ;;  %v2331_v17 = vld [vmem:[%s2613_s25 + $0x4] sm:$0xf]  ;;  %v1874_v18 = vld [vmem:[%s2613_s25 + $0x8] sm:$0xf0]  ;;  %v1881_v23 = vor.u32 %v2334_v13, %v1880_v10 }
  0x3e   : > { %862 = vmatpush.bf16.msrb.mxu3 %v1981_v25  ;;  %808 = vmatpush.bf16.msrb.mxu0 %v1913_v32  ;;  %v2347_v19 = vld [vmem:[%s2613_s25 + $0x84] sm:$0xf]  ;;  %v1938_v20 = vld [vmem:[%s2613_s25 + $0x88] sm:$0xf0]  ;;  %v2411_v21 = vld [vmem:[%s2613_s25 + $0x274] sm:$0xf]  ;;  %v1945_v27 = vor.u32 %v2350_v15, %v1944_v14  ;;  %v1877_v28 = vor.u32 %v2331_v17, %v1874_v18 }
  0x3f   : > { %826 = vmatpush.bf16.msrb.mxu1 %v1977_v34  ;;  %v2098_v22 = vld [vmem:[%s2613_s25 + $0x278] sm:$0xf0]  ;;  %v1872_v24 = vld [vmem:[%s2613_s25] sm:$0xf]  ;;  %v2427_v25 = vld [vmem:[%s2613_s25 + $0x2f4] sm:$0xf]  ;;  %v1941_v33 = vor.u32 %v2347_v19, %v1938_v20 }
  0x40   : > { %v2162_v26 = vld [vmem:[%s2613_s25 + $0x2f8] sm:$0xf0]  ;;  %v2332_v29 = vld [vmem:[%s2613_s25 + $0x4] sm:$0xf0]  ;;  %v1936_v31 = vld [vmem:[%s2613_s25 + $0x80] sm:$0xf]  ;;  %v2101_v34 = vor.u32 %v2411_v21, %v2098_v22 }
  0x41   : > { %845 = vmatpush.bf16.msrb.mxu2 %v1909_v35  ;;  %v2348_v32 = vld [vmem:[%s2613_s25 + $0x84] sm:$0xf0]  ;;  %v2096_v35 = vld [vmem:[%s2613_s25 + $0x270] sm:$0xf]  ;;  %v2412_v37 = vld [vmem:[%s2613_s25 + $0x274] sm:$0xf0]  ;;  %v2165_v40 = vor.u32 %v2427_v25, %v2162_v26  ;;  %v1873_v45 = vor.u32 %v2332_v29, %v1872_v24 }
  0x42   : > { %863 = vmatpush.bf16.msrb.mxu3 %v1973_v42  ;;  %809 = vmatpush.bf16.msrb.mxu0 %v1905_v48  ;;  %v2160_v39 = vld [vmem:[%s2613_s25 + $0x2f0] sm:$0xf]  ;;  %v2428_v42 = vld [vmem:[%s2613_s25 + $0x2f4] sm:$0xf0]  ;;  %v2409_v43 = vld [vmem:[%s2613_s25 + $0x264] sm:$0xf]  ;;  %v1937_v46 = vor.u32 %v2348_v32, %v1936_v31  ;;  %v2097_v38 = vor.u32 %v2412_v37, %v2096_v35 }
  0x43   : > { %827 = vmatpush.bf16.msrb.mxu1 %v1969_v49  ;;  %578 = vmatmul.bf16.gmra.mxu0 %v397_v41  ;;  %v2090_v44 = vld [vmem:[%s2613_s25 + $0x268] sm:$0xf0]  ;;  %v2425_v47 = vld [vmem:[%s2613_s25 + $0x2e4] sm:$0xf]  ;;  %v2161_v49 = vor.u32 %v2428_v42, %v2160_v39  ;;  %v2088_v51 = vld [vmem:[%s2613_s25 + $0x260] sm:$0xf] }
  0x44   : > { %596 = vmatmul.bf16.gmra.mxu1 %v400_v58  ;;  %614 = vmatmul.bf16.gmra.mxu2 %v397_v41  ;;  %v2154_v48 = vld [vmem:[%s2613_s25 + $0x2e8] sm:$0xf0]  ;;  %v2410_v52 = vld [vmem:[%s2613_s25 + $0x264] sm:$0xf0]  ;;  %v2152_v53 = vld [vmem:[%s2613_s25 + $0x2e0] sm:$0xf] }
  0x45   : > { %846 = vmatpush.bf16.msrb.mxu2 %v1901_v50  ;;  %632 = vmatmul.bf16.gmra.mxu3 %v400_v58  ;;  %v2093_v50 = vor.u32 %v2409_v43, %v2090_v44  ;;  %v2426_v41 = vld [vmem:[%s2613_s25 + $0x2e4] sm:$0xf0]  ;;  %v2082_v55 = vld [vmem:[%s2613_s25 + $0x258] sm:$0xf0]  ;;  %v2157_v56 = vor.u32 %v2425_v47, %v2154_v48  ;;  %v2089_v57 = vor.u32 %v2410_v52, %v2088_v51  ;;  %v2423_v58 = vld [vmem:[%s2613_s25 + $0x2d4] sm:$0xf] }
  0x46   : > { %864 = vmatpush.bf16.msrb.mxu3 %v1965_v54  ;;  %810 = vmatpush.bf16.msrb.mxu0 %v1897_v63  ;;  %v2407_v54 = vld [vmem:[%s2613_s25 + $0x254] sm:$0xf]  ;;  %v2146_v59 = vld [vmem:[%s2613_s25 + $0x2d8] sm:$0xf0]  ;;  %v2153_v60 = vor.u32 %v2426_v41, %v2152_v53  ;;  %v2144_v1 = vld [vmem:[%s2613_s25 + $0x2d0] sm:$0xf] }
  0x47   : > { %828 = vmatpush.bf16.msrb.mxu1 %v1961_v0  ;;  %v2085_v63 = vor.u32 %v2407_v54, %v2082_v55  ;;  %v2080_v0 = vld [vmem:[%s2613_s25 + $0x250] sm:$0xf]  ;;  %v2424_v2 = vld [vmem:[%s2613_s25 + $0x2d4] sm:$0xf0]  ;;  %v2405_v3 = vld [vmem:[%s2613_s25 + $0x244] sm:$0xf]  ;;  %v2149_v62 = vor.u32 %v2423_v58, %v2146_v59 }
  0x48   : > { %v2421_v5 = vld [vmem:[%s2613_s25 + $0x2c4] sm:$0xf]  ;;  %v2138_v6 = vld [vmem:[%s2613_s25 + $0x2c8] sm:$0xf0]  ;;  %v2145_v7 = vor.u32 %v2424_v2, %v2144_v1  ;;  %v2406_v10 = vld [vmem:[%s2613_s25 + $0x244] sm:$0xf0] }
  0x49   : > { %847 = vmatpush.bf16.msrb.mxu2 %v1893_v61  ;;  %v2408_v61 = vld [vmem:[%s2613_s25 + $0x254] sm:$0xf0]  ;;  %v2066_v13 = vld [vmem:[%s2613_s25 + $0x238] sm:$0xf0]  ;;  %v290_v14 = vld [vmem:[%s2686_s6 + $0x10] sm:$0x33]  ;;  %v2141_v17 = vor.u32 %v2421_v5, %v2138_v6 }
  0x4a   : > { %865 = vmatpush.bf16.msrb.mxu3 %v1957_v4  ;;  %811 = vmatpush.bf16.msrb.mxu0 %v1889_v9  ;;  %v2074_v4 = vld [vmem:[%s2613_s25 + $0x248] sm:$0xf0]  ;;  %v2072_v9 = vld [vmem:[%s2613_s25 + $0x240] sm:$0xf]  ;;  %v2419_v15 = vld [vmem:[%s2613_s25 + $0x2b4] sm:$0xf]  ;;  %v639_v32 = vunpack.c.h.b16 %v290_v14 }
  0x4b   : > { %829 = vmatpush.bf16.msrb.mxu1 %v1953_v11  ;;  %v2077_v8 = vor.u32 %v2405_v3, %v2074_v4  ;;  %v2422_v11 = vld [vmem:[%s2613_s25 + $0x2c4] sm:$0xf0]  ;;  %v2073_v18 = vor.u32 %v2406_v10, %v2072_v9  ;;  %v2064_v19 = vld [vmem:[%s2613_s25 + $0x230] sm:$0xf]  ;;  %v878_v20 = vld [vmem:[%s2686_s6] sm:$0xcc] }
  0x4c   : > { %v2831_v21 = vld [vmem:[%s2686_s6 + $0x8] sm:$0xff]  ;;  %v2404_v24 = vld [vmem:[%s2613_s25 + $0x234] sm:$0xf0]  ;;  %v2128_v25 = vld [vmem:[%s2613_s25 + $0x2b0] sm:$0xf]  ;;  %v919_v37 = vunpack.c.l.b16 %v878_v20  ;;  %v641_v55 = vpack.c.b16 %v639_v32, %v639_v32 }
  0x4d   : > { %848 = vmatpush.bf16.msrb.mxu2 %v1885_v12  ;;  %v2403_v12 = vld [vmem:[%s2613_s25 + $0x234] sm:$0xf]  ;;  %v2420_v26 = vld [vmem:[%s2613_s25 + $0x2b4] sm:$0xf0]  ;;  %v2058_v29 = vld [vmem:[%s2613_s25 + $0x228] sm:$0xf0]  ;;  %v921_v39 = vunpack.c.l.b16 %v2831_v21  ;;  %v2065_v42 = vor.u32 %v2404_v24, %v2064_v19 }
  0x4e   : > { %866 = vmatpush.bf16.msrb.mxu3 %v1949_v16  ;;  %812 = vmatpush.bf16.msrb.mxu0 %v1881_v23  ;;  %v2130_v16 = vld [vmem:[%s2613_s25 + $0x2b8] sm:$0xf0]  ;;  %v2069_v23 = vor.u32 %v2403_v12, %v2066_v13  ;;  %v2839_v31 = vld [vmem:[%s2613_s25 + $0x2a4] sm:$0xf]  ;;  %v2402_v35 = vld [vmem:[%s2613_s25 + $0x224] sm:$0xf0]  ;;  %v2129_v47 = vor.u32 %v2420_v26, %v2128_v25 }
  0x4f   : > { %830 = vmatpush.bf16.msrb.mxu1 %v1945_v27  ;;  %v638_v27 = vunpack.c.l.b16 %v290_v14  ;;  %v2120_v43 = vld [vmem:[%s2613_s25 + $0x2a0] sm:$0xf]  ;;  %v2032_v44 = vld [vmem:[%s2686_s6 + $0x10] sm:$0xf]  ;;  %v2034_v51 = vld [vmem:[%s2686_s6 + $0x18] sm:$0x10] }
  0x50   : > { %v2399_v53 = vld [vmem:[%s2613_s25 + $0x214] sm:$0xf]  ;;  %v2050_v41 = vld [vmem:[%s2613_s25 + $0x218] sm:$0xf0]  ;;  %v2048_v58 = vld [vmem:[%s2613_s25 + $0x210] sm:$0xf] }
  0x51   : > { %849 = vmatpush.bf16.msrb.mxu2 %v1877_v28  ;;  %v2401_v28 = vld [vmem:[%s2613_s25 + $0x224] sm:$0xf]  ;;  %v640_v52 = vpack.c.b16 %v638_v27, %v638_v27  ;;  %v2855_v54 = vld [vmem:[%s2613_s25 + $0x294] sm:$0xf]  ;;  %v2400_v59 = vld [vmem:[%s2613_s25 + $0x214] sm:$0xf0] }
  0x52   : > { %867 = vmatpush.bf16.msrb.mxu3 %v1941_v33  ;;  %813 = vmatpush.bf16.msrb.mxu0 %v1873_v45  ;;  %v2122_v33 = vld [vmem:[%s2613_s25 + $0x2a8] sm:$0xf0]  ;;  %v2396_v45 = vld [vmem:[%s2686_s6 + $0x14] sm:$0x10]  ;;  %v2061_v48 = vor.u32 %v2401_v28, %v2058_v29  ;;  %v2397_v2 = vld [vmem:[%s2613_s25 + $0x204] sm:$0xf]  ;;  %v2049_v9 = vor.u32 %v2400_v59, %v2048_v58 }
  0x53   : > { %831 = vmatpush.bf16.msrb.mxu1 %v1937_v46  ;;  %v920_v46 = vunpack.c.h.b16 %v878_v20  ;;  %v2416_v1 = vld [vmem:[%s2613_s25 + $0x294] sm:$0xf0]  ;;  %v2042_v5 = vld [vmem:[%s2613_s25 + $0x208] sm:$0xf0]  ;;  %v2413_v6 = vld [vmem:[%s2613_s25 + $0x284] sm:$0xf] }
  0x54   : > { %850 = vmatmul.bf16.vlgmr.msrb.gmra.mxu2 %v2694_v30  ;;  %v2040_v10 = vld [vmem:[%s2613_s25 + $0x200] sm:$0xf]  ;;  %v2045_v25 = vor.u32 %v2397_v2, %v2042_v5  ;;  %v2459_v26 = vld [vmem:[%s2613_s25 + $0x3f4] sm:$0xf]  ;;  %v2322_v27 = vld [vmem:[%s2613_s25 + $0x3f8] sm:$0xf0] }
  0x55   : > { %1166 = vmatpush.bf16.msra.mxu2 %v2101_v34  ;;  %814 = vmatmul.bf16.vlgmr.msrb.gmra.mxu0 %v2694_v30  ;;  %v2081_v30 = vor.u32 %v2408_v61, %v2080_v0  ;;  %v2056_v34 = vld [vmem:[%s2613_s25 + $0x220] sm:$0xf]  ;;  %v2112_v61 = vld [vmem:[%s2613_s25 + $0x290] sm:$0xf]  ;;  %v2458_v2 = vld [vmem:[%s2613_s25 + $0x3e4] sm:$0xf0] }
  0x56   : > { %1184 = vmatpush.bf16.msra.mxu3 %v2165_v40  ;;  %1130 = vmatpush.bf16.msra.mxu0 %v2097_v38  ;;  %v2133_v40 = vor.u32 %v2419_v15, %v2130_v16  ;;  %v922_v38 = vunpack.c.h.b16 %v2831_v21  ;;  %v2057_v0 = vor.u32 %v2402_v35, %v2056_v34  ;;  %v2258_v16 = vld [vmem:[%s2613_s25 + $0x378] sm:$0xf0]  ;;  %v2113_v24 = vor.u32 %v2416_v1, %v2112_v61  ;;  %v2256_v28 = vld [vmem:[%s2613_s25 + $0x370] sm:$0xf]  ;;  %v2460_v35 = vld [vmem:[%s2613_s25 + $0x3f4] sm:$0xf0] }
  0x57   : > { %1148 = vmatpush.bf16.msra.mxu1 %v2161_v49  ;;  %868 = vmatmul.bf16.vlgmr.msrb.gmra.mxu3 %v2699_v36  ;;  %v2418_v49 = vld [vmem:[%s2613_s25 + $0x2a4] sm:$0xf0]  ;;  %v2320_v34 = vld [vmem:[%s2613_s25 + $0x3f0] sm:$0xf]  ;;  %v2312_v1 = vld [vmem:[%s2613_s25 + $0x3e0] sm:$0xf] }
  0x58   : > { %832 = vmatmul.bf16.vlgmr.msrb.gmra.mxu1 %v2699_v36  ;;  %v2136_v36 = vld [vmem:[%s2613_s25 + $0x2c0] sm:$0xf]  ;;  %v928_v3 = vpack.c.b16 %v922_v38, %v920_v46  ;;  %v2306_v5 = vld [vmem:[%s2613_s25 + $0x3d8] sm:$0xf0] }
  0x59   : > { %1167 = vmatpush.bf16.msra.mxu2 %v2093_v50  ;;  %v2137_v22 = vor.u32 %v2422_v11, %v2136_v36  ;;  %v2395_v50 = vld [vmem:[%s2686_s6 + $0x14] sm:$0xf]  ;;  %v2398_v36 = vld [vmem:[%s2613_s25 + $0x204] sm:$0xf0] }
  0x5a   : > { %1185 = vmatpush.bf16.msra.mxu3 %v2157_v56  ;;  %1131 = vmatpush.bf16.msra.mxu0 %v2089_v57  ;;  %v2125_v56 = vor.u32 %v2839_v31, %v2122_v33  ;;  %v2114_v57 = vld [vmem:[%s2613_s25 + $0x298] sm:$0xf0]  ;;  %v2870_v4 = vor.u32 %v2395_v50, %v2034_v51  ;;  %v2443_v11 = vld [vmem:[%s2613_s25 + $0x374] sm:$0xf]  ;;  %v950_v19 = vshrl.u32 %v928_v3, 16  ;;  %v953_v20 = vshll.u32 %v928_v3, 16 }
  0x5b   : > { %1149 = vmatpush.bf16.msra.mxu1 %v2153_v60  ;;  %v927_v60 = vpack.c.b16 %v921_v39, %v919_v37  ;;  %v2041_v31 = vor.u32 %v2398_v36, %v2040_v10  ;;  %v2261_v32 = vor.u32 %v2443_v11, %v2258_v16  ;;  %v2444_v33 = vld [vmem:[%s2613_s25 + $0x374] sm:$0xf0]  ;;  %v2325_v51 = vor.u32 %v2459_v26, %v2322_v27  ;;  %v2439_v3 = vld [vmem:[%s2613_s25 + $0x354] sm:$0xf]  ;;  %v2240_v10 = vld [vmem:[%s2613_s25 + $0x350] sm:$0xf] }
  0x5c   : > { %v955_v46 = vrot.slane %v953_v20, 3  ;;  %v2440_v36 = vld [vmem:[%s2613_s25 + $0x354] sm:$0xf0]  ;;  %v2234_v16 = vld [vmem:[%s2613_s25 + $0x348] sm:$0xf0] }
  0x5d   : > { %1168 = vmatpush.bf16.msra.mxu2 %v2085_v63  ;;  %v2863_v63 = vor.u32 %v2396_v45, %v2032_v44  ;;  %v933_v12 = vshrl.u32 %v927_v60, 16  ;;  %v936_v13 = vshll.u32 %v927_v60, 16  ;;  %v2441_v44 = vld [vmem:[%s2613_s25 + $0x364] sm:$0xf]  ;;  %v952_v45 = vrot.slane %v950_v19, 2 }
  0x5e   : > { %1186 = vmatpush.bf16.msra.mxu3 %v2149_v62  ;;  %1132 = vmatpush.bf16.msra.mxu0 %v2081_v30  ;;  %v2121_v62 = vor.u32 %v2418_v49, %v2120_v43  ;;  %v2053_v30 = vor.u32 %v2399_v53, %v2050_v41  ;;  %v2250_v49 = vld [vmem:[%s2613_s25 + $0x368] sm:$0xf0]  ;;  %v2321_v53 = vor.u32 %v2460_v35, %v2320_v34  ;;  %v2457_v41 = vld [vmem:[%s2613_s25 + $0x3e4] sm:$0xf]  ;;  %v2248_v60 = vld [vmem:[%s2613_s25 + $0x360] sm:$0xf] }
  0x5f   : > { %1150 = vmatpush.bf16.msra.mxu1 %v2145_v7  ;;  %v2106_v7 = vld [vmem:[%s2613_s25 + $0x288] sm:$0xf0]  ;;  %v941_v14 = vshrl.u32 %v2863_v63, 16  ;;  %v944_v15 = vshll.u32 %v2863_v63, 16  ;;  %v935_v37 = vrot.slane %v933_v12, 2  ;;  %v956_v58 = vor.u32 %v955_v46, %v952_v45 }
  0x60   : > { %v2109_v29 = vor.u32 %v2413_v6, %v2106_v7  ;;  %v2241_v19 = vor.u32 %v2440_v36, %v2240_v10  ;;  %v2296_v26 = vld [vmem:[%s2613_s25 + $0x3c0] sm:$0xf]  ;;  %v2454_v27 = vld [vmem:[%s2613_s25 + $0x3c4] sm:$0xf0]  ;;  %v2224_v35 = vld [vmem:[%s2613_s25 + $0x330] sm:$0xf] }
  0x61   : > { %1169 = vmatpush.bf16.msra.mxu2 %v2077_v8  ;;  %v2117_v8 = vor.u32 %v2855_v54, %v2114_v57  ;;  %v946_v43 = vrot.slane %v944_v15, 3  ;;  %v2314_v54 = vld [vmem:[%s2613_s25 + $0x3e8] sm:$0xf0]  ;;  %v2253_v57 = vor.u32 %v2441_v44, %v2250_v49  ;;  %v2437_v15 = vld [vmem:[%s2613_s25 + $0x344] sm:$0xf]  ;;  %v2297_v34 = vor.u32 %v2454_v27, %v2296_v26 }
  0x62   : > { %1187 = vmatpush.bf16.msra.mxu3 %v2141_v17  ;;  %1133 = vmatpush.bf16.msra.mxu0 %v2073_v18  ;;  %v2104_v17 = vld [vmem:[%s2613_s25 + $0x280] sm:$0xf]  ;;  %v2414_v18 = vld [vmem:[%s2613_s25 + $0x284] sm:$0xf0]  ;;  %v2317_v61 = vor.u32 %v2457_v41, %v2314_v54  ;;  %v2452_v44 = vld [vmem:[%s2613_s25 + $0x3b4] sm:$0xf0] }
  0x63   : > { %1151 = vmatpush.bf16.msra.mxu1 %v2137_v22  ;;  %v958_v22 = vshrl.u32 %v2870_v4, 16  ;;  %v2105_v50 = vor.u32 %v2414_v18, %v2104_v17  ;;  %v2453_v17 = vld [vmem:[%s2613_s25 + $0x3c4] sm:$0xf]  ;;  %v2298_v18 = vld [vmem:[%s2613_s25 + $0x3c8] sm:$0xf0]  ;;  %v1252_v27 = vrot.slane %v2870_v4, 3 }
  0x64   : > { %855 = vmatmul.bf16.gmra.mxu2 %v640_v52  ;;  %v2433_v45 = vld [vmem:[%s2613_s25 + $0x324] sm:$0xf]  ;;  %v2218_v46 = vld [vmem:[%s2613_s25 + $0x328] sm:$0xf0]  ;;  %v2280_v54 = vld [vmem:[%s2613_s25 + $0x3a0] sm:$0xf] }
  0x65   : > { %1170 = vmatpush.bf16.msra.mxu2 %v2069_v23  ;;  %819 = vmatmul.bf16.gmra.mxu0 %v640_v52  ;;  %v961_v23 = vshll.u32 %v2870_v4, 16  ;;  %v2257_v52 = vor.u32 %v2444_v33, %v2256_v28  ;;  %v2435_v28 = vld [vmem:[%s2613_s25 + $0x334] sm:$0xf]  ;;  %v2445_v10 = vld [vmem:[%s2613_s25 + $0x384] sm:$0xf] }
  0x66   : > { %1188 = vmatpush.bf16.msra.mxu3 %v2133_v40  ;;  %1134 = vmatpush.bf16.msra.mxu0 %v2065_v42  ;;  %v938_v40 = vrot.slane %v936_v13, 3  ;;  %v943_v42 = vrot.slane %v941_v14, 2  ;;  %v2304_v13 = vld [vmem:[%s2613_s25 + $0x3d0] sm:$0xf]  ;;  %v2456_v14 = vld [vmem:[%s2613_s25 + $0x3d4] sm:$0xf0] }
  0x67   : > { %1152 = vmatpush.bf16.msra.mxu1 %v2129_v47  ;;  %873 = vmatmul.bf16.gmra.mxu3 %v641_v55  ;;  %v960_v47 = vrot.slane %v958_v22, 2  ;;  %v2305_v20 = vor.u32 %v2456_v14, %v2304_v13  ;;  %v2232_v22 = vld [vmem:[%s2613_s25 + $0x340] sm:$0xf]  ;;  %v2266_v36 = vld [vmem:[%s2613_s25 + $0x388] sm:$0xf0] }
  0x68   : > { %837 = vmatmul.bf16.gmra.mxu1 %v641_v55  ;;  %v939_v55 = vor.u32 %v938_v40, %v935_v37  ;;  %v2436_v37 = vld [vmem:[%s2613_s25 + $0x334] sm:$0xf0]  ;;  %v2200_v14 = vld [vmem:[%s2613_s25 + $0x300] sm:$0xf] }
  0x69   : > { %1171 = vmatpush.bf16.msra.mxu2 %v2061_v48  ;;  %v963_v48 = vrot.slane %v961_v23, 3  ;;  %v2438_v23 = vld [vmem:[%s2613_s25 + $0x344] sm:$0xf0]  ;;  %v2225_v49 = vor.u32 %v2436_v37, %v2224_v35 }
  0x6a   : > { %1189 = vmatpush.bf16.msra.mxu3 %v2125_v56  ;;  %1135 = vmatpush.bf16.msra.mxu0 %v2057_v0  ;;  %v2896_v56 = vor.u32 %v946_v43, %v943_v42  ;;  %v2442_v0 = vld [vmem:[%s2613_s25 + $0x364] sm:$0xf0]  ;;  %v2233_v33 = vor.u32 %v2438_v23, %v2232_v22  ;;  %v2288_v43 = vld [vmem:[%s2613_s25 + $0x3b0] sm:$0xf] }
  0x6b   : > { %1153 = vmatpush.bf16.msra.mxu1 %v2121_v62  ;;  %v2898_v59 = vor.u32 %v963_v48, %v960_v47  ;;  %v2242_v62 = vld [vmem:[%s2613_s25 + $0x358] sm:$0xf0]  ;;  %v2449_v47 = vld [vmem:[%s2613_s25 + $0x3a4] sm:$0xf]  ;;  %v2282_v48 = vld [vmem:[%s2613_s25 + $0x3a8] sm:$0xf0] }
  0x6c   : > { %v948_v6 = vsel %vm931_vm1, %v939_v55, %v2896_v56  ;;  %v2245_v11 = vor.u32 %v2439_v3, %v2242_v62  ;;  %v2285_v41 = vor.u32 %v2449_v47, %v2282_v48  ;;  %v2450_v55 = vld [vmem:[%s2613_s25 + $0x3a4] sm:$0xf0]  ;;  %v2432_v3 = vld [vmem:[%s2613_s25 + $0x314] sm:$0xf0]  ;;  %v1208_v62 = vld [vmem:[%s2686_s6] sm:$0x88] }
  0x6d   : > { %1172 = vmatpush.bf16.msra.mxu2 %v2053_v30  ;;  %v2455_v30 = vld [vmem:[%s2613_s25 + $0x3d4] sm:$0xf]  ;;  %v965_v7 = vsel %vm931_vm1, %v956_v58, %v2898_v59  ;;  %v2210_v58 = vld [vmem:[%s2613_s25 + $0x318] sm:$0xf0] }
  0x6e   : > { %1190 = vmatpush.bf16.msra.mxu3 %v2117_v8  ;;  %1136 = vmatpush.bf16.msra.mxu0 %v2049_v9  ;;  %v2249_v8 = vor.u32 %v2442_v0, %v2248_v60  ;;  %v2313_v9 = vor.u32 %v2458_v2, %v2312_v1  ;;  %v2309_v12 = vor.u32 %v2455_v30, %v2306_v5  ;;  %v2447_v60 = vld [vmem:[%s2613_s25 + $0x394] sm:$0xf]  ;;  %v2274_v0 = vld [vmem:[%s2613_s25 + $0x398] sm:$0xf0]  ;;  %v2208_v2 = vld [vmem:[%s2613_s25 + $0x310] sm:$0xf] }
  0x6f   : > { %1154 = vmatpush.bf16.msra.mxu1 %v2113_v24  ;;  %v2237_v24 = vor.u32 %v2437_v15, %v2234_v16  ;;  %v2281_v1 = vor.u32 %v2450_v55, %v2280_v54  ;;  %v2277_v5 = vor.u32 %v2447_v60, %v2274_v0  ;;  %v1244_v15 = vunpack.c.h.b16 %v1208_v62 }
  0x70   : > { %v2269_v16 = vor.u32 %v2445_v10, %v2266_v36 }
  0x71   : > { %1173 = vmatpush.bf16.msra.mxu2 %v2045_v25  ;;  %v2301_v25 = vor.u32 %v2453_v17, %v2298_v18  ;;  %v2430_v17 = vld [vmem:[%s2613_s25 + $0x304] sm:$0xf0]  ;;  %v2264_v18 = vld [vmem:[%s2613_s25 + $0x380] sm:$0xf]  ;;  %v1246_v23 = vpack.c.b16 %v922_v38, %v1244_v15 }
  0x72   : > { %1191 = vmatpush.bf16.msra.mxu3 %v2109_v29  ;;  %1137 = vmatpush.bf16.msra.mxu0 %v2041_v31  ;;  %v2226_v29 = vld [vmem:[%s2613_s25 + $0x338] sm:$0xf0]  ;;  %v2451_v31 = vld [vmem:[%s2613_s25 + $0x3b4] sm:$0xf] }
  0x73   : > { %1155 = vmatpush.bf16.msra.mxu1 %v2105_v50  ;;  %v2229_v40 = vor.u32 %v2435_v28, %v2226_v29  ;;  %v2289_v50 = vor.u32 %v2452_v44, %v2288_v43  ;;  %v1251_v26 = vrot.slane %v1246_v23, 3 }
  0x74   : > { %1174 = vmatmul.bf16.vlgmr.msra.gmra.mxu2 %v948_v6 }
  0x75   : > { %1454 = vmatpush.bf16.msrb.mxu2 %v2261_v32  ;;  %1138 = vmatmul.bf16.vlgmr.msra.gmra.mxu0 %v948_v6  ;;  %v2290_v32 = vld [vmem:[%s2613_s25 + $0x3b8] sm:$0xf0]  ;;  %v2272_v6 = vld [vmem:[%s2613_s25 + $0x390] sm:$0xf] }
  0x76   : > { %1472 = vmatpush.bf16.msrb.mxu3 %v2325_v51  ;;  %1418 = vmatpush.bf16.msrb.mxu0 %v2257_v52  ;;  %v2293_v42 = vor.u32 %v2451_v31, %v2290_v32  ;;  %v2216_v51 = vld [vmem:[%s2613_s25 + $0x320] sm:$0xf]  ;;  %v2434_v52 = vld [vmem:[%s2613_s25 + $0x324] sm:$0xf0] }
  0x77   : > { %1436 = vmatpush.bf16.msrb.mxu1 %v2321_v53  ;;  %1192 = vmatmul.bf16.vlgmr.msra.gmra.mxu3 %v965_v7  ;;  %v2221_v53 = vor.u32 %v2433_v45, %v2218_v46 }
  0x78   : > { %1156 = vmatmul.bf16.vlgmr.msra.gmra.mxu1 %v965_v7  ;;  %v2448_v7 = vld [vmem:[%s2613_s25 + $0x394] sm:$0xf0] }
  0x79   : > { %1455 = vmatpush.bf16.msrb.mxu2 %v2253_v57  ;;  %v2431_v57 = vld [vmem:[%s2613_s25 + $0x314] sm:$0xf]  ;;  %v2273_v13 = vor.u32 %v2448_v7, %v2272_v6 }
  0x7a   : > { %1473 = vmatpush.bf16.msrb.mxu3 %v2317_v61  ;;  %1419 = vmatpush.bf16.msrb.mxu0 %v2249_v8  ;;  %v2217_v61 = vor.u32 %v2434_v52, %v2216_v51  ;;  %v2213_v30 = vor.u32 %v2431_v57, %v2210_v58  ;;  %v2429_v8 = vld [vmem:[%s2613_s25 + $0x304] sm:$0xf] }
  0x7b   : > { %1437 = vmatpush.bf16.msrb.mxu1 %v2313_v9  ;;  %v2202_v9 = vld [vmem:[%s2613_s25 + $0x308] sm:$0xf0] }
  0x7d   : > { %1456 = vmatpush.bf16.msrb.mxu2 %v2245_v11  ;;  %v1243_v11 = vunpack.c.l.b16 %v1208_v62 }
  0x7e   : > { %1474 = vmatpush.bf16.msrb.mxu3 %v2309_v12  ;;  %1420 = vmatpush.bf16.msrb.mxu0 %v2241_v19  ;;  %v2209_v12 = vor.u32 %v2432_v3, %v2208_v2  ;;  %v2446_v19 = vld [vmem:[%s2613_s25 + $0x384] sm:$0xf0]  ;;  %s1701_s25 = sshll.u32 %s285_s24, 2 }
  0x7f   : > { %1438 = vmatpush.bf16.msrb.mxu1 %v2305_v20  ;;  %v1245_v20 = vpack.c.b16 %v921_v39, %v1243_v11  ;;  %v2265_v22 = vor.u32 %v2446_v19, %v2264_v18  ;;  %v1253_v39 = vsel %vm1247_vm2, %v1251_v26, %v1252_v27  ;;  %s287_s28 = scalar_lea.vmem %s3007_s4, %s1701_s25 }
  0x81   : > { %1457 = vmatpush.bf16.msrb.mxu2 %v2237_v24  ;;  %v1248_v24 = vrot.slane %v1245_v20, 3 }
  0x82   : > { %1475 = vmatpush.bf16.msrb.mxu3 %v2301_v25  ;;  %1421 = vmatpush.bf16.msrb.mxu0 %v2233_v33  ;;  %v1249_v25 = vrot.slane %v2863_v63, 3 }
  0x83   : > { %1439 = vmatpush.bf16.msrb.mxu1 %v2297_v34 }
  0x84   : > { %1179 = vmatmul.bf16.gmra.mxu2 %v2896_v56  ;;  %v1250_v28 = vsel %vm1247_vm2, %v1248_v24, %v1249_v25 }
  0x85   : > { %1458 = vmatpush.bf16.msrb.mxu2 %v2229_v40  ;;  %1143 = vmatmul.bf16.gmra.mxu0 %v2896_v56  ;;  %v2205_v56 = vor.u32 %v2429_v8, %v2202_v9 }
  0x86   : > { %1476 = vmatpush.bf16.msrb.mxu3 %v2293_v42  ;;  %1422 = vmatpush.bf16.msrb.mxu0 %v2225_v49 }
  0x87   : > { %1440 = vmatpush.bf16.msrb.mxu1 %v2289_v50  ;;  %1197 = vmatmul.bf16.gmra.mxu3 %v2898_v59 }
  0x88   : > { %1161 = vmatmul.bf16.gmra.mxu1 %v2898_v59  ;;  %v2201_v59 = vor.u32 %v2430_v17, %v2200_v14 }
  0x89   : > { %1459 = vmatpush.bf16.msrb.mxu2 %v2221_v53 }
  0x8a   : > { %1477 = vmatpush.bf16.msrb.mxu3 %v2285_v41  ;;  %1423 = vmatpush.bf16.msrb.mxu0 %v2217_v61 }
  0x8b   : > { %1441 = vmatpush.bf16.msrb.mxu1 %v2281_v1 }
  0x8d   : > { %1460 = vmatpush.bf16.msrb.mxu2 %v2213_v30 }
  0x8e   : > { %1478 = vmatpush.bf16.msrb.mxu3 %v2277_v5  ;;  %1424 = vmatpush.bf16.msrb.mxu0 %v2209_v12 }
  0x8f   : > { %1442 = vmatpush.bf16.msrb.mxu1 %v2273_v13 }
  0x91   : > { %1461 = vmatpush.bf16.msrb.mxu2 %v2205_v56 }
  0x92   : > { %1479 = vmatpush.bf16.msrb.mxu3 %v2269_v16  ;;  %1425 = vmatpush.bf16.msrb.mxu0 %v2201_v59 }
  0x93   : > { %1443 = vmatpush.bf16.msrb.mxu1 %v2265_v22 }
  0x94   : > { %1462 = vmatmul.bf16.vlgmr.msrb.gmra.mxu2 %v1250_v28 }
  0x95   : > { %1426 = vmatmul.bf16.vlgmr.msrb.gmra.mxu0 %v1250_v28 }
  0x97   : > { %1480 = vmatmul.bf16.vlgmr.msrb.gmra.mxu3 %v1253_v39 }
  0x98   : > { %1444 = vmatmul.bf16.vlgmr.msrb.gmra.mxu1 %v1253_v39 }
  0xa4   : > { %1467 = vmatmul.bf16.gmra.mxu2 %v1249_v25 }
  0xa5   : > { %1431 = vmatmul.bf16.gmra.mxu0 %v1249_v25 }
  0xa7   : > { %1485 = vmatmul.bf16.gmra.mxu3 %v1252_v27 }
  0xa8   : > { %1449 = vmatmul.bf16.gmra.mxu1 %v1252_v27 }
  0xb0   : > { %v574_v21 = vpop.f32.mrf.mxu0 }
  0xb1   : > { %v592_v38 = vpop.f32.mrf.mxu1 }
  0xb2   : > { %v593_v29 = vadd.f32 %v592_v38, %v574_v21 }
  0xb7   : > { %v610_v63 = vpop.f32.mrf.mxu2 }
  0xb8   : > { %v628_v31 = vpop.f32.mrf.mxu3  ;;  %v576_v32 = vpop.f32.mrf.mxu0 }
  0xb9   : > { %v629_v33 = vadd.f32 %v628_v31, %v610_v63  ;;  %v594_v34 = vpop.f32.mrf.mxu1  ;;  %v1496_v63 = vld [vmem:[%s274_s10] sm:$0x3] }
  0xba   : > { %v595_v35 = vadd.f32 %v594_v34, %v576_v32 }
  0xbf   : > { %v612_v4 = vpop.f32.mrf.mxu2 }
  0xc0   : > { %v630_v37 = vpop.f32.mrf.mxu3  ;;  %v579_v40 = vpop.f32.mrf.mxu0 }
  0xc1   : > { %v2967_v42 = vadd.f32 %v630_v37, %v612_v4  ;;  %v597_v43 = vpop.f32.mrf.mxu1  ;;  %v1514_v4 = vld [vmem:[%s278_s13] sm:$0x3] }
  0xc2   : > { %v598_v44 = vadd.f32 %v597_v43, %v579_v40 }
  0xc7   : > { %v615_v45 = vpop.f32.mrf.mxu2 }
  0xc8   : > { %v633_v46 = vpop.f32.mrf.mxu3  ;;  %v581_v47 = vpop.f32.mrf.mxu0 }
  0xc9   : > { %v634_v48 = vadd.f32 %v633_v46, %v615_v45  ;;  %v599_v49 = vpop.f32.mrf.mxu1 }
  0xcf   : > { %v617_v50 = vpop.f32.mrf.mxu2 }
  0xd0   : > { %v635_v51 = vpop.f32.mrf.mxu3 }
  0xd2   : > { %v815_v52 = vpop.f32.mrf.mxu0 }
  0xd3   : > { %v816_v53 = vadd.f32 %v815_v52, %v593_v29 }
  0xd5   : > { %v833_v41 = vpop.f32.mrf.mxu1 }
  0xd6   : > { %v834_v54 = vadd.f32 %v833_v41, %v816_v53 }
  0xd7   : > { %v851_v55 = vpop.f32.mrf.mxu2 }
  0xd8   : > { %v852_v57 = vadd.f32 %v851_v55, %v629_v33 }
  0xda   : > { %v869_v58 = vpop.f32.mrf.mxu3  ;;  %v817_v60 = vpop.f32.mrf.mxu0 }
  0xdb   : > { %v870_v0 = vadd.f32 %v869_v58, %v852_v57  ;;  %v818_v61 = vadd.f32 %v817_v60, %v595_v35  ;;  %v1498_v35 = vperm.slane %v1496_v63, 0 }
  0xdd   : > { %v835_v1 = vpop.f32.mrf.mxu1 }
  0xde   : > { %v836_v2 = vadd.f32 %v835_v1, %v818_v61 }
  0xdf   : > { %v853_v3 = vpop.f32.mrf.mxu2 }
  0xe0   : > { %v854_v50 = vadd.f32 %v853_v3, %v2967_v42 }
  0xe2   : > { %v871_v62 = vpop.f32.mrf.mxu3  ;;  %v820_v30 = vpop.f32.mrf.mxu0 }
  0xe3   : > { %v821_v5 = vadd.f32 %v820_v30, %v598_v44  ;;  %v1516_v44 = vperm.slane %v1514_v4, 0  ;;  %v872_v61 = vadd.f32 %v871_v62, %v854_v50 }
  0xe5   : > { %v838_v6 = vpop.f32.mrf.mxu1 }
  0xe6   : > { %v2969_v7 = vadd.f32 %v838_v6, %v821_v5 }
  0xe7   : > { %v856_v8 = vpop.f32.mrf.mxu2 }
  0xe8   : > { %v857_v9 = vadd.f32 %v856_v8, %v634_v48  ;;  %v1499_v48 = vperm.slane %v1496_v63, 1 }
  0xea   : > { %v874_v10 = vpop.f32.mrf.mxu3  ;;  %v822_v36 = vpop.f32.mrf.mxu0 }
  0xeb   : > { %v2971_v11 = vadd.f32 %v874_v10, %v857_v9 }
  0xed   : > { %v840_v12 = vpop.f32.mrf.mxu1 }
  0xef   : > { %v858_v13 = vpop.f32.mrf.mxu2 }
  0xf2   : > { %v876_v14 = vpop.f32.mrf.mxu3  ;;  %v1139_v15 = vpop.f32.mrf.mxu0 }
  0xf5   : > { %v1157_v56 = vpop.f32.mrf.mxu1 }
  0xf6   : > { %v1158_v28 = vadd.f32 %v1157_v56, %v1139_v15 }
  0xf7   : > { %v1175_v16 = vpop.f32.mrf.mxu2 }
  0xf8   : > { %v1202_v31 = vadd.f32 %v1158_v28, %v834_v54  ;;  %v1517_v54 = vperm.slane %v1514_v4, 1 }
  0xfa   : > { %v1193_v17 = vpop.f32.mrf.mxu3  ;;  %v1141_v18 = vpop.f32.mrf.mxu0 }
  0xfb   : > { %v1194_v33 = vadd.f32 %v1193_v17, %v1175_v16 }
  0xfd   : > { %v1159_v19 = vpop.f32.mrf.mxu1  ;;  %v1203_v45 = vadd.f32 %v1194_v33, %v870_v0 }
  0xfe   : > { %v1160_v37 = vadd.f32 %v1159_v19, %v1141_v18 }
  0xff   : > { %v1177_v20 = vpop.f32.mrf.mxu2 }
 0x100   : > { %v1204_v52 = vadd.f32 %v1160_v37, %v836_v2 }
 0x102   : > { %v1195_v59 = vpop.f32.mrf.mxu3  ;;  %v1144_v22 = vpop.f32.mrf.mxu0 }
 0x103   : > { %v1196_v55 = vadd.f32 %v1195_v59, %v1177_v20 }
 0x105   : > { %v1162_v23 = vpop.f32.mrf.mxu1  ;;  %v1205_v5 = vadd.f32 %v1196_v55, %v872_v61 }
 0x106   : > { %v1163_v1 = vadd.f32 %v1162_v23, %v1144_v22 }
 0x107   : > { %v1180_v24 = vpop.f32.mrf.mxu2 }
 0x108   : > { %v1206_v12 = vadd.f32 %v1163_v1, %v2969_v7 }
 0x10a   : > { %v1198_v25 = vpop.f32.mrf.mxu3  ;;  %v1146_v26 = vpop.f32.mrf.mxu0 }
 0x10b   : > { %v1199_v15 = vadd.f32 %v1198_v25, %v1180_v24 }
 0x10d   : > { %v1164_v27 = vpop.f32.mrf.mxu1  ;;  %v1207_v19 = vadd.f32 %v1199_v15, %v2971_v11 }
 0x10f   : > { %v1182_v39 = vpop.f32.mrf.mxu2 }
 0x112   : > { %v1200_v21 = vpop.f32.mrf.mxu3  ;;  %v1427_v38 = vpop.f32.mrf.mxu0 }
 0x115   : > { %v1445_v29 = vpop.f32.mrf.mxu1 }
 0x116   : > { %v1446_v32 = vadd.f32 %v1445_v29, %v1427_v38 }
 0x117   : > { %v1463_v40 = vpop.f32.mrf.mxu2 }
 0x118   : > { %v1490_v34 = vadd.f32 %v1446_v32, %v1202_v31 }
 0x11a   : > { %v1481_v43 = vpop.f32.mrf.mxu3  ;;  %v1502_v46 = vadd.f32 %v1498_v35, %v1490_v34  ;;  %v1429_v49 = vpop.f32.mrf.mxu0 }
 0x11b   : > { %v1482_v47 = vadd.f32 %v1481_v43, %v1463_v40 }
 0x11c   : > { %v1520_v60 = vmul.f32 %v1516_v44, %v1502_v46  ;;  %vm1508_vm3 = vcmp.gt.f32.partialorder %v1502_v46, 0.0 }
 0x11d   : > { %v1447_v51 = vpop.f32.mrf.mxu1  ;;  %v1491_v53 = vadd.f32 %v1482_v47, %v1203_v45 }
 0x11e   : > { %v1448_v41 = vadd.f32 %v1447_v51, %v1429_v49  ;;  %v1526_v3 = vsel %vm1508_vm3, %v1502_v46, %v1520_v60 }
 0x11f   : > { %v1503_v57 = vadd.f32 %v1499_v48, %v1491_v53  ;;  %v1465_v30 = vpop.f32.mrf.mxu2 }
 0x120   : > { %v1492_v58 = vadd.f32 %v1448_v41, %v1204_v52 }
 0x121   : > { %vm1509_vm4 = vcmp.gt.f32.partialorder %v1503_v57, 0.0  ;;  %v1521_v0 = vmul.f32 %v1517_v54, %v1503_v57 }
 0x122   : > { %v1483_v6 = vpop.f32.mrf.mxu3  ;;  %v1504_v8 = vadd.f32 %v1498_v35, %v1492_v58  ;;  %v1432_v42 = vpop.f32.mrf.mxu0 }
 0x123   : > { %v1484_v9 = vadd.f32 %v1483_v6, %v1465_v30  ;;  %v1527_v2 = vsel %vm1509_vm4, %v1503_v57, %v1521_v0 }
 0x124   : > { %v1532_v36 = vmax.f32 %v1526_v3, %v1527_v2  ;;  %v1522_v16 = vmul.f32 %v1516_v44, %v1504_v8  ;;  %vm1510_vm5 = vcmp.gt.f32.partialorder %v1504_v8, 0.0 }
 0x125   : > { %v1450_v10 = vpop.f32.mrf.mxu1  ;;  %v1493_v13 = vadd.f32 %v1484_v9, %v1205_v5 }
 0x126   : > { %v1451_v14 = vadd.f32 %v1450_v10, %v1432_v42  ;;  %v1528_v26 = vsel %vm1510_vm5, %v1504_v8, %v1522_v16 }
 0x127   : > { %v1505_v62 = vadd.f32 %v1499_v48, %v1493_v13  ;;  %v1468_v17 = vpop.f32.mrf.mxu2 }
 0x128   : > { %v1494_v56 = vadd.f32 %v1451_v14, %v1206_v12 }
 0x129   : > { %vm1511_vm6 = vcmp.gt.f32.partialorder %v1505_v62, 0.0  ;;  %v1523_v18 = vmul.f32 %v1517_v54, %v1505_v62 }
 0x12a   : > { %v1486_v20 = vpop.f32.mrf.mxu3  ;;  %v1506_v59 = vadd.f32 %v1498_v35, %v1494_v56  ;;  %v1434_v23 = vpop.f32.mrf.mxu0 }
 0x12b   : > { %v1487_v22 = vadd.f32 %v1486_v20, %v1468_v17  ;;  %v1529_v27 = vsel %vm1511_vm6, %v1505_v62, %v1523_v18 }
 0x12c   : > { %v1533_v7 = vmax.f32 %v1528_v26, %v1529_v27  ;;  %v1524_v25 = vmul.f32 %v1516_v44, %v1506_v59  ;;  %vm1512_vm7 = vcmp.gt.f32.partialorder %v1506_v59, 0.0 }
 0x12d   : > { %v1452_v28 = vpop.f32.mrf.mxu1  ;;  %v1495_v39 = vadd.f32 %v1487_v22, %v1207_v19 }
 0x12e   : > { %v2504_v24 = vpack.i.bf16 %v1533_v7, %v1532_v36  ;;  %v1530_v63 = vsel %vm1512_vm7, %v1506_v59, %v1524_v25 }
 0x12f   : > { %v1507_v21 = vadd.f32 %v1499_v48, %v1495_v39  ;;  %v1470_v29 = vpop.f32.mrf.mxu2 }
 0x130   : > { %2505 = vrot.lane.b32.xlu0 %v2504_v24, %s2549_s14 }
 0x131   : > { %v1525_v38 = vmul.f32 %v1517_v54, %v1507_v21  ;;  %vm1513_vm8 = vcmp.gt.f32.partialorder %v1507_v21, 0.0 }
 0x132   : > { %v1488_v11 = vpop.f32.mrf.mxu3 }
 0x133   : > { %v1531_v31 = vsel %vm1513_vm8, %v1507_v21, %v1525_v38 }
 0x134   : > { %v1534_v32 = vmax.f32 %v1530_v63, %v1531_v31 }
 0x138   : > { %1542 = vrot.lane.b32.xlu0 %v1534_v32, %s2549_s14 }
 0x1a2   : > { %v2506_v33 = vpop.permute.xlu0 %2505 }
 0x1a3   : > { %v2508_v34 = vunpack.i.h.bf16 %v2506_v33  ;;  %v2507_v35 = vunpack.i.l.bf16 %v2506_v33 }
 0x1a5   : > { %v1548_v4 = vmax.f32 %v1533_v7, %v2508_v34  ;;  %v1547_v37 = vmax.f32 %v1532_v36, %v2507_v35 }
 0x1a7   : > { %v1551_v40 = vpack.c.bf16 %v1548_v4, %v1548_v4  ;;  %v1550_v43 = vpack.c.bf16 %v1547_v37, %v1547_v37 }
 0x1a9   : > { %1554 = vst.msk [vmem:[%s287_s28] sm:$0xf] %vm1553_vm9, %v1550_v43 }
 0x1aa   : > { %v1543_v44 = vpop.permute.xlu0 %1542  ;;  %1555 = vst.msk [vmem:[%s287_s28 + $0x4] sm:$0xf] %vm1553_vm9, %v1551_v40 }
 0x1ab   : > { %v1549_v45 = vmax.f32 %v1534_v32, %v1543_v44 }
 0x1ad   : > { %v1552_v46 = vpack.c.bf16 %v1549_v45, %v1549_v45 }
 0x1af   : > { %1557 = vst.msk [vmem:[%s287_s28 + $0x8] sm:$0x3] %vm1556_vm10, %v1552_v46 }
 0x1b0 PF: > { %s14_s19 = sadd.s32 1, %s2547_s19   ;;  %s3008_s15 = smov %s2539_s17 }
 0x1b1   : > { %p11_p7 = scmp.ge.s32.totalorder %s14_s19, 14   ;;  %s3009_s16 = smov %s2543_s18 }
 0x1b2   : > { %s3010_s17 = smov %s3013_s20  ;;  %s3011_s18 = smov %s3017_s21 }
 0x1b3   :  { %13 = sbr.rel (!%p11_p7) target bundleno = 3 (0x3), region = 78 }

// kernel: g_forward.5
= control target key start
LH: loop header
LB: loop body
LE: loop exit
PB: predicated region body
PF: predicated region fallthrough
CT: control target
= control target key end

     0   :  { %s3211_s9 = smov 0   ;;  %s3213_s10 = smov 0   ;;  %s3464_s0 = inlined_call_operand.vmem [shape: bf16[2,6144], index: 0, kind: input, shape index: {}]   ;;  %s3465_s1 = inlined_call_operand.vmem [shape: bf16[6144,128], index: 1, kind: input, shape index: {}]   ;;  %s3466_s2 = inlined_call_operand.vmem [shape: f32[2,2,128], index: 2, kind: output, shape index: {}]  }
   0x1   :  { %s3215_s11 = smov 0  }
   0x2 LB: > { %s24_s12 = sadd.s32 1, %s3189_s10  ;;  %p2181_p0 = scmp.ge.s32.totalorder %s3193_s11, 1  ;;  %s3193_s11 = sphi %s3215_s11, %s12_s11   ;;  %s3189_s10 = sphi %s3213_s10, %s3468_s10   ;;  %s3185_s9 = sphi %s3211_s9, %s3467_s9  }
   0x3   : > { %p26_p1 = scmp.ge.s32.totalorder %s24_s12, 2  ;;  %p143_p2 = scmp.lt.s32.totalorder %s3193_s11, 3 }
   0x5   : > { %s3470_s12 = smov (%p26_p1, %s24_s12), 0  ;;  %p144_p3 = pnand %p2181_p0, %p143_p2 }
   0x6   : > { %s178_s13 = smul.u32 (!%p144_p3), 384, %s3185_s9  ;;  %p185_p6 = scmp.lt.s32.totalorder (!%p144_p3), %s3185_s9, 1 }
   0x7   : > { %147 = sbr.rel (%p144_p3) target bundleno = 356 (0x164), region = 28 }
   0x8   : > { %p179_p4 = scmp.lt.s32.totalorder (!%p144_p3), %s178_s13, 767  ;;  %s171_s18 = smul.u32 (!%p144_p3), 24, %s3185_s9 }
   0xa   : > { %p172_p5 = scmp.lt.s32.totalorder (!%p144_p3), %s171_s18, 47 }
   0xc   : > { %s3472_s13 = smov (!%p179_p4, %s178_s13), 767  ;;  %s3474_s18 = smov (!%p172_p5, %s171_s18), 47 }
   0xd   : > { %s2182_s14 = sshll.u32 %s3472_s13, 2  ;;  %s3259_s21 = scalar_lea.vmem %s3464_s0, %s3474_s18 }
   0xe   : > { %s3235_s17 = scalar_lea.vmem %s3465_s1, %s2182_s14  ;;  %v195_v20 = vld [vmem:[%s3259_s21] sm:$0xff]  ;;  %v196_v49 = vld [vmem:[%s3259_s21 + $0x8] sm:$0xff]  ;;  %s3476_s9 = smov (!%p185_p6, %s3185_s9), 1 }
   0xf   : > { %v2961_v0 = vld [vmem:[%s3235_s17 + $0x38] sm:$0xff]  ;;  %v2960_v4 = vld [vmem:[%s3235_s17 + $0x30] sm:$0xff]  ;;  %v2959_v8 = vld [vmem:[%s3235_s17 + $0x28] sm:$0xff]  ;;  %583 = vst [vmem:[#allocation1] ss:$9 sm:$0xff] %v195_v20  ;;  %s2183_s22 = sshll.u32 %s3476_s9, 1 }
  0x10   : > { %v2969_v1 = vld [vmem:[%s3235_s17 + $0x78] sm:$0xff]  ;;  %1788 = vmatpush.bf16.msra.mxu0 %v2961_v0  ;;  %v2968_v5 = vld [vmem:[%s3235_s17 + $0x70] sm:$0xff]  ;;  %v2967_v9 = vld [vmem:[%s3235_s17 + $0x68] sm:$0xff]  ;;  %s188_s25 = scalar_lea.vmem %s3466_s2, %s2183_s22 }
  0x11   : > { %v2977_v2 = vld [vmem:[%s3235_s17 + $0xb8] sm:$0xff]  ;;  %1801 = vmatpush.bf16.msra.mxu1 %v2969_v1  ;;  %v2976_v6 = vld [vmem:[%s3235_s17 + $0xb0] sm:$0xff]  ;;  %v2975_v10 = vld [vmem:[%s3235_s17 + $0xa8] sm:$0xff] }
  0x12   : > { %v2985_v3 = vld [vmem:[%s3235_s17 + $0xf8] sm:$0xff]  ;;  %1814 = vmatpush.bf16.msra.mxu2 %v2977_v2  ;;  %v2984_v7 = vld [vmem:[%s3235_s17 + $0xf0] sm:$0xff]  ;;  %v2983_v11 = vld [vmem:[%s3235_s17 + $0xe8] sm:$0xff] }
  0x13   : > { %1827 = vmatpush.bf16.msra.mxu3 %v2985_v3  ;;  %v2958_v12 = vld [vmem:[%s3235_s17 + $0x20] sm:$0xff]  ;;  %v2957_v16 = vld [vmem:[%s3235_s17 + $0x18] sm:$0xff]  ;;  %v2956_v21 = vld [vmem:[%s3235_s17 + $0x10] sm:$0xff] }
  0x14   : > { %1789 = vmatpush.bf16.msra.mxu0 %v2960_v4  ;;  %v2966_v13 = vld [vmem:[%s3235_s17 + $0x60] sm:$0xff]  ;;  %v2965_v17 = vld [vmem:[%s3235_s17 + $0x58] sm:$0xff]  ;;  %v2964_v22 = vld [vmem:[%s3235_s17 + $0x50] sm:$0xff] }
  0x15   : > { %1802 = vmatpush.bf16.msra.mxu1 %v2968_v5  ;;  %v2974_v14 = vld [vmem:[%s3235_s17 + $0xa0] sm:$0xff]  ;;  %v2973_v18 = vld [vmem:[%s3235_s17 + $0x98] sm:$0xff]  ;;  %v2972_v23 = vld [vmem:[%s3235_s17 + $0x90] sm:$0xff] }
  0x16   : > { %1815 = vmatpush.bf16.msra.mxu2 %v2976_v6  ;;  %v2982_v15 = vld [vmem:[%s3235_s17 + $0xe0] sm:$0xff]  ;;  %v2981_v19 = vld [vmem:[%s3235_s17 + $0xd8] sm:$0xff]  ;;  %v2980_v24 = vld [vmem:[%s3235_s17 + $0xd0] sm:$0xff] }
  0x17   : > { %1828 = vmatpush.bf16.msra.mxu3 %v2984_v7  ;;  %v2955_v25 = vld [vmem:[%s3235_s17 + $0x8] sm:$0xff]  ;;  %v2954_v29 = vld [vmem:[%s3235_s17] sm:$0xff]  ;;  %v2993_v33 = vld [vmem:[%s3235_s17 + $0x138] sm:$0xff] }
  0x18   : > { %1790 = vmatpush.bf16.msra.mxu0 %v2959_v8  ;;  %v2963_v26 = vld [vmem:[%s3235_s17 + $0x48] sm:$0xff]  ;;  %v2962_v30 = vld [vmem:[%s3235_s17 + $0x40] sm:$0xff]  ;;  %v3001_v34 = vld [vmem:[%s3235_s17 + $0x178] sm:$0xff] }
  0x19   : > { %1803 = vmatpush.bf16.msra.mxu1 %v2967_v9  ;;  %v2971_v27 = vld [vmem:[%s3235_s17 + $0x88] sm:$0xff]  ;;  %v2970_v31 = vld [vmem:[%s3235_s17 + $0x80] sm:$0xff]  ;;  %v3009_v35 = vld [vmem:[%s3235_s17 + $0x1b8] sm:$0xff] }
  0x1a   : > { %1816 = vmatpush.bf16.msra.mxu2 %v2975_v10  ;;  %v2979_v28 = vld [vmem:[%s3235_s17 + $0xc8] sm:$0xff]  ;;  %v2978_v32 = vld [vmem:[%s3235_s17 + $0xc0] sm:$0xff]  ;;  %v3017_v36 = vld [vmem:[%s3235_s17 + $0x1f8] sm:$0xff] }
  0x1b   : > { %1829 = vmatpush.bf16.msra.mxu3 %v2983_v11  ;;  %v2992_v37 = vld [vmem:[%s3235_s17 + $0x130] sm:$0xff]  ;;  %v584_v39 = vld [vmem:[#allocation1] sm:$0xff]  ;;  %v2991_v45 = vld [vmem:[%s3235_s17 + $0x128] sm:$0xff] }
  0x1c   : > { %1791 = vmatpush.bf16.msra.mxu0 %v2958_v12  ;;  %v586_v38 = vld [vmem:[#allocation1 + $0x12] sm:$0xff]  ;;  %v587_v41 = vld [vmem:[#allocation1 + $0x1b] sm:$0xff]  ;;  %v585_v42 = vld [vmem:[#allocation1 + $0x9] sm:$0xff] }
  0x1d   : > { %1804 = vmatpush.bf16.msra.mxu1 %v2966_v13  ;;  %v3000_v40 = vld [vmem:[%s3235_s17 + $0x170] sm:$0xff]  ;;  %v2999_v46 = vld [vmem:[%s3235_s17 + $0x168] sm:$0xff]  ;;  %v591_v52 = vld [vmem:[#allocation1 + $0x3f] sm:$0xff] }
  0x1e   : > { %1817 = vmatpush.bf16.msra.mxu2 %v2974_v14  ;;  %v3008_v43 = vld [vmem:[%s3235_s17 + $0x1b0] sm:$0xff]  ;;  %v3007_v47 = vld [vmem:[%s3235_s17 + $0x1a8] sm:$0xff]  ;;  %v2990_v54 = vld [vmem:[%s3235_s17 + $0x120] sm:$0xff] }
  0x1f   : > { %1830 = vmatpush.bf16.msra.mxu3 %v2982_v15  ;;  %v3016_v44 = vld [vmem:[%s3235_s17 + $0x1f0] sm:$0xff]  ;;  %v3015_v48 = vld [vmem:[%s3235_s17 + $0x1e8] sm:$0xff]  ;;  %v2998_v55 = vld [vmem:[%s3235_s17 + $0x160] sm:$0xff] }
  0x20   : > { %1792 = vmatpush.bf16.msra.mxu0 %v2957_v16  ;;  %v590_v50 = vld [vmem:[#allocation1 + $0x36] sm:$0xff]  ;;  %v588_v51 = vld [vmem:[#allocation1 + $0x24] sm:$0xff]  ;;  %v589_v53 = vld [vmem:[#allocation1 + $0x2d] sm:$0xff] }
  0x21   : > { %1805 = vmatpush.bf16.msra.mxu1 %v2965_v17  ;;  %593 = vst [vmem:[#allocation1] ss:$9 sm:$0xff] %v196_v49  ;;  %v3006_v56 = vld [vmem:[%s3235_s17 + $0x1a0] sm:$0xff]  ;;  %v2989_v58 = vld [vmem:[%s3235_s17 + $0x118] sm:$0xff]  ;;  %v2988_v62 = vld [vmem:[%s3235_s17 + $0x110] sm:$0xff] }
  0x22   : > { %1818 = vmatpush.bf16.msra.mxu2 %v2973_v18  ;;  %v3014_v57 = vld [vmem:[%s3235_s17 + $0x1e0] sm:$0xff]  ;;  %v2997_v59 = vld [vmem:[%s3235_s17 + $0x158] sm:$0xff]  ;;  %v2996_v63 = vld [vmem:[%s3235_s17 + $0x150] sm:$0xff] }
  0x23   : > { %1831 = vmatpush.bf16.msra.mxu3 %v2981_v19  ;;  %v3005_v60 = vld [vmem:[%s3235_s17 + $0x198] sm:$0xff]  ;;  %v3004_v0 = vld [vmem:[%s3235_s17 + $0x190] sm:$0xff]  ;;  %v2987_v2 = vld [vmem:[%s3235_s17 + $0x108] sm:$0xff] }
  0x24   : > { %1793 = vmatpush.bf16.msra.mxu0 %v2956_v21  ;;  %v3013_v61 = vld [vmem:[%s3235_s17 + $0x1d8] sm:$0xff]  ;;  %v3012_v1 = vld [vmem:[%s3235_s17 + $0x1d0] sm:$0xff]  ;;  %v2995_v3 = vld [vmem:[%s3235_s17 + $0x148] sm:$0xff] }
  0x25   : > { %1806 = vmatpush.bf16.msra.mxu1 %v2964_v22  ;;  %v3003_v4 = vld [vmem:[%s3235_s17 + $0x188] sm:$0xff]  ;;  %v2986_v6 = vld [vmem:[%s3235_s17 + $0x100] sm:$0xff]  ;;  %v3025_v10 = vld [vmem:[%s3235_s17 + $0x238] sm:$0xff] }
  0x26   : > { %1819 = vmatpush.bf16.msra.mxu2 %v2972_v23  ;;  %v3011_v5 = vld [vmem:[%s3235_s17 + $0x1c8] sm:$0xff]  ;;  %v2994_v7 = vld [vmem:[%s3235_s17 + $0x140] sm:$0xff]  ;;  %v3033_v11 = vld [vmem:[%s3235_s17 + $0x278] sm:$0xff] }
  0x27   : > { %1832 = vmatpush.bf16.msra.mxu3 %v2980_v24  ;;  %v3002_v8 = vld [vmem:[%s3235_s17 + $0x180] sm:$0xff]  ;;  %v3041_v12 = vld [vmem:[%s3235_s17 + $0x2b8] sm:$0xff]  ;;  %v3024_v14 = vld [vmem:[%s3235_s17 + $0x230] sm:$0xff] }
  0x28   : > { %1794 = vmatpush.bf16.msra.mxu0 %v2955_v25  ;;  %v3010_v9 = vld [vmem:[%s3235_s17 + $0x1c0] sm:$0xff]  ;;  %v3049_v13 = vld [vmem:[%s3235_s17 + $0x2f8] sm:$0xff]  ;;  %v3032_v15 = vld [vmem:[%s3235_s17 + $0x270] sm:$0xff] }
  0x29   : > { %1807 = vmatpush.bf16.msra.mxu1 %v2963_v26  ;;  %v3040_v16 = vld [vmem:[%s3235_s17 + $0x2b0] sm:$0xff]  ;;  %v3023_v18 = vld [vmem:[%s3235_s17 + $0x228] sm:$0xff]  ;;  %v3022_v22 = vld [vmem:[%s3235_s17 + $0x220] sm:$0xff] }
  0x2a   : > { %1820 = vmatpush.bf16.msra.mxu2 %v2971_v27  ;;  %v3048_v17 = vld [vmem:[%s3235_s17 + $0x2f0] sm:$0xff]  ;;  %v3031_v19 = vld [vmem:[%s3235_s17 + $0x268] sm:$0xff]  ;;  %v3030_v23 = vld [vmem:[%s3235_s17 + $0x260] sm:$0xff] }
  0x2b   : > { %1833 = vmatpush.bf16.msra.mxu3 %v2979_v28  ;;  %v3039_v20 = vld [vmem:[%s3235_s17 + $0x2a8] sm:$0xff]  ;;  %v3038_v24 = vld [vmem:[%s3235_s17 + $0x2a0] sm:$0xff]  ;;  %v3021_v26 = vld [vmem:[%s3235_s17 + $0x218] sm:$0xff] }
  0x2c   : > { %1795 = vmatpush.bf16.msra.mxu0 %v2954_v29  ;;  %v3047_v21 = vld [vmem:[%s3235_s17 + $0x2e8] sm:$0xff]  ;;  %v3046_v25 = vld [vmem:[%s3235_s17 + $0x2e0] sm:$0xff]  ;;  %v3029_v27 = vld [vmem:[%s3235_s17 + $0x258] sm:$0xff] }
  0x2d   : > { %1808 = vmatpush.bf16.msra.mxu1 %v2962_v30  ;;  %v3037_v28 = vld [vmem:[%s3235_s17 + $0x298] sm:$0xff]  ;;  %v3020_v30 = vld [vmem:[%s3235_s17 + $0x210] sm:$0xff] }
  0x2e   : > { %1821 = vmatpush.bf16.msra.mxu2 %v2970_v31  ;;  %v3045_v29 = vld [vmem:[%s3235_s17 + $0x2d8] sm:$0xff]  ;;  %v3028_v31 = vld [vmem:[%s3235_s17 + $0x250] sm:$0xff] }
  0x2f   : > { %1834 = vmatpush.bf16.msra.mxu3 %v2978_v32  ;;  %1796 = vmatmul.bf16.vlgmr.msra.gmra.mxu0 %v584_v39  ;;  %v3036_v32 = vld [vmem:[%s3235_s17 + $0x290] sm:$0xff]  ;;  %v3026_v39 = vld [vmem:[%s3235_s17 + $0x240] sm:$0xff] }
  0x30   : > { %1840 = vmatpush.bf16.msrb.mxu0 %v2993_v33  ;;  %1809 = vmatmul.bf16.vlgmr.msra.gmra.mxu1 %v585_v42  ;;  %v3044_v33 = vld [vmem:[%s3235_s17 + $0x2d0] sm:$0xff]  ;;  %v3057_v42 = vld [vmem:[%s3235_s17 + $0x338] sm:$0xff] }
  0x31   : > { %1853 = vmatpush.bf16.msrb.mxu1 %v3001_v34  ;;  %1822 = vmatmul.bf16.vlgmr.msra.gmra.mxu2 %v586_v38  ;;  %v3019_v34 = vld [vmem:[%s3235_s17 + $0x208] sm:$0xff]  ;;  %v3018_v38 = vld [vmem:[%s3235_s17 + $0x200] sm:$0xff] }
  0x32   : > { %1866 = vmatpush.bf16.msrb.mxu2 %v3009_v35  ;;  %1835 = vmatmul.bf16.vlgmr.msra.gmra.mxu3 %v587_v41  ;;  %v3027_v35 = vld [vmem:[%s3235_s17 + $0x248] sm:$0xff]  ;;  %v3042_v41 = vld [vmem:[%s3235_s17 + $0x2c0] sm:$0xff] }
  0x33   : > { %1879 = vmatpush.bf16.msrb.mxu3 %v3017_v36  ;;  %v3035_v36 = vld [vmem:[%s3235_s17 + $0x288] sm:$0xff] }
  0x34   : > { %1841 = vmatpush.bf16.msrb.mxu0 %v2992_v37  ;;  %v3043_v37 = vld [vmem:[%s3235_s17 + $0x2c8] sm:$0xff] }
  0x35   : > { %1854 = vmatpush.bf16.msrb.mxu1 %v3000_v40  ;;  %v3034_v40 = vld [vmem:[%s3235_s17 + $0x280] sm:$0xff]  ;;  %v595_v49 = vld [vmem:[#allocation1 + $0x9] sm:$0xff] }
  0x36   : > { %1867 = vmatpush.bf16.msrb.mxu2 %v3008_v43  ;;  %v3065_v43 = vld [vmem:[%s3235_s17 + $0x378] sm:$0xff] }
  0x37   : > { %1880 = vmatpush.bf16.msrb.mxu3 %v3016_v44  ;;  %v197_v44 = vld [vmem:[%s3259_s21 + $0x10] sm:$0xff] }
  0x38   : > { %1842 = vmatpush.bf16.msrb.mxu0 %v2991_v45  ;;  %v3073_v45 = vld [vmem:[%s3235_s17 + $0x3b8] sm:$0xff] }
  0x39   : > { %1855 = vmatpush.bf16.msrb.mxu1 %v2999_v46  ;;  %v3081_v46 = vld [vmem:[%s3235_s17 + $0x3f8] sm:$0xff] }
  0x3a   : > { %1868 = vmatpush.bf16.msrb.mxu2 %v3007_v47  ;;  %v594_v47 = vld [vmem:[#allocation1] sm:$0xff] }
  0x3b   : > { %1881 = vmatpush.bf16.msrb.mxu3 %v3015_v48  ;;  %v596_v48 = vld [vmem:[#allocation1 + $0x12] sm:$0xff] }
  0x3c   : > { %1843 = vmatpush.bf16.msrb.mxu0 %v2990_v54  ;;  %v3080_v54 = vld [vmem:[%s3235_s17 + $0x3f0] sm:$0xff] }
  0x3d   : > { %1856 = vmatpush.bf16.msrb.mxu1 %v2998_v55  ;;  %v3350_v55 = vld [vmem:[#allocation1 + $0x24] sm:$0xff] }
  0x3e   : > { %1869 = vmatpush.bf16.msrb.mxu2 %v3006_v56  ;;  %v3352_v56 = vld [vmem:[#allocation1 + $0x36] sm:$0xff] }
  0x3f   : > { %1882 = vmatpush.bf16.msrb.mxu3 %v3014_v57  ;;  %v3354_v57 = vld [vmem:[#allocation1 + $0x2d] sm:$0xff] }
  0x40   : > { %1844 = vmatpush.bf16.msrb.mxu0 %v2989_v58  ;;  %v3356_v58 = vld [vmem:[#allocation1 + $0x3f] sm:$0xff] }
  0x41   : > { %1857 = vmatpush.bf16.msrb.mxu1 %v2997_v59  ;;  %v3055_v59 = vld [vmem:[%s3235_s17 + $0x328] sm:$0xff] }
  0x42   : > { %1870 = vmatpush.bf16.msrb.mxu2 %v3005_v60  ;;  %v3063_v60 = vld [vmem:[%s3235_s17 + $0x368] sm:$0xff] }
  0x43   : > { %1883 = vmatpush.bf16.msrb.mxu3 %v3013_v61  ;;  %v3071_v61 = vld [vmem:[%s3235_s17 + $0x3a8] sm:$0xff] }
  0x44   : > { %1845 = vmatpush.bf16.msrb.mxu0 %v2988_v62  ;;  %v3079_v62 = vld [vmem:[%s3235_s17 + $0x3e8] sm:$0xff] }
  0x45   : > { %1858 = vmatpush.bf16.msrb.mxu1 %v2996_v63  ;;  %v3054_v63 = vld [vmem:[%s3235_s17 + $0x320] sm:$0xff] }
  0x46   : > { %1871 = vmatpush.bf16.msrb.mxu2 %v3004_v0  ;;  %v3062_v0 = vld [vmem:[%s3235_s17 + $0x360] sm:$0xff] }
  0x47   : > { %1884 = vmatpush.bf16.msrb.mxu3 %v3012_v1  ;;  %v3070_v1 = vld [vmem:[%s3235_s17 + $0x3a0] sm:$0xff] }
  0x48   : > { %1846 = vmatpush.bf16.msrb.mxu0 %v2987_v2  ;;  %v3078_v2 = vld [vmem:[%s3235_s17 + $0x3e0] sm:$0xff] }
  0x49   : > { %1859 = vmatpush.bf16.msrb.mxu1 %v2995_v3  ;;  %v3053_v3 = vld [vmem:[%s3235_s17 + $0x318] sm:$0xff] }
  0x4a   : > { %1872 = vmatpush.bf16.msrb.mxu2 %v3003_v4  ;;  %v3061_v4 = vld [vmem:[%s3235_s17 + $0x358] sm:$0xff] }
  0x4b   : > { %1885 = vmatpush.bf16.msrb.mxu3 %v3011_v5  ;;  %v3069_v5 = vld [vmem:[%s3235_s17 + $0x398] sm:$0xff] }
  0x4c   : > { %1847 = vmatpush.bf16.msrb.mxu0 %v2986_v6  ;;  %v3077_v6 = vld [vmem:[%s3235_s17 + $0x3d8] sm:$0xff] }
  0x4d   : > { %1860 = vmatpush.bf16.msrb.mxu1 %v2994_v7  ;;  %v3052_v7 = vld [vmem:[%s3235_s17 + $0x310] sm:$0xff] }
  0x4e   : > { %1873 = vmatpush.bf16.msrb.mxu2 %v3002_v8  ;;  %v3060_v8 = vld [vmem:[%s3235_s17 + $0x350] sm:$0xff] }
  0x4f   : > { %1886 = vmatpush.bf16.msrb.mxu3 %v3010_v9  ;;  %1848 = vmatmul.bf16.vlgmr.msrb.gmra.mxu0 %v588_v51  ;;  %v3056_v51 = vld [vmem:[%s3235_s17 + $0x330] sm:$0xff] }
  0x50   : > { %1892 = vmatpush.bf16.msra.mxu0 %v3025_v10  ;;  %1861 = vmatmul.bf16.vlgmr.msrb.gmra.mxu1 %v589_v53  ;;  %v3072_v53 = vld [vmem:[%s3235_s17 + $0x3b0] sm:$0xff] }
  0x51   : > { %1905 = vmatpush.bf16.msra.mxu1 %v3033_v11  ;;  %1874 = vmatmul.bf16.vlgmr.msrb.gmra.mxu2 %v590_v50  ;;  %v597_v50 = vld [vmem:[#allocation1 + $0x1b] sm:$0xff]  ;;  %v3068_v9 = vld [vmem:[%s3235_s17 + $0x390] sm:$0xff]  ;;  %v3051_v11 = vld [vmem:[%s3235_s17 + $0x308] sm:$0xff] }
  0x52   : > { %1918 = vmatpush.bf16.msra.mxu2 %v3041_v12  ;;  %1887 = vmatmul.bf16.vlgmr.msrb.gmra.mxu3 %v591_v52  ;;  %v3064_v52 = vld [vmem:[%s3235_s17 + $0x370] sm:$0xff]  ;;  %603 = vst [vmem:[#allocation1] ss:$9 sm:$0xff] %v197_v44  ;;  %v3059_v12 = vld [vmem:[%s3235_s17 + $0x348] sm:$0xff] }
  0x53   : > { %1931 = vmatpush.bf16.msra.mxu3 %v3049_v13  ;;  %v3076_v10 = vld [vmem:[%s3235_s17 + $0x3d0] sm:$0xff]  ;;  %v3067_v13 = vld [vmem:[%s3235_s17 + $0x388] sm:$0xff] }
  0x54   : > { %1893 = vmatpush.bf16.msra.mxu0 %v3024_v14  ;;  %v3075_v14 = vld [vmem:[%s3235_s17 + $0x3c8] sm:$0xff] }
  0x55   : > { %1906 = vmatpush.bf16.msra.mxu1 %v3032_v15  ;;  %v3050_v15 = vld [vmem:[%s3235_s17 + $0x300] sm:$0xff]  ;;  %v3091_v44 = vld [vmem:[%s3235_s17 + $0x448] sm:$0xff] }
  0x56   : > { %1919 = vmatpush.bf16.msra.mxu2 %v3040_v16  ;;  %v3058_v16 = vld [vmem:[%s3235_s17 + $0x340] sm:$0xff] }
  0x57   : > { %1932 = vmatpush.bf16.msra.mxu3 %v3048_v17  ;;  %v3066_v17 = vld [vmem:[%s3235_s17 + $0x380] sm:$0xff] }
  0x58   : > { %1894 = vmatpush.bf16.msra.mxu0 %v3023_v18  ;;  %v3074_v18 = vld [vmem:[%s3235_s17 + $0x3c0] sm:$0xff] }
  0x59   : > { %1907 = vmatpush.bf16.msra.mxu1 %v3031_v19  ;;  %v3089_v19 = vld [vmem:[%s3235_s17 + $0x438] sm:$0xff] }
  0x5a   : > { %1920 = vmatpush.bf16.msra.mxu2 %v3039_v20  ;;  %v3097_v20 = vld [vmem:[%s3235_s17 + $0x478] sm:$0xff] }
  0x5b   : > { %1933 = vmatpush.bf16.msra.mxu3 %v3047_v21  ;;  %v3105_v21 = vld [vmem:[%s3235_s17 + $0x4b8] sm:$0xff] }
  0x5c   : > { %1895 = vmatpush.bf16.msra.mxu0 %v3022_v22  ;;  %v3113_v22 = vld [vmem:[%s3235_s17 + $0x4f8] sm:$0xff] }
  0x5d   : > { %1908 = vmatpush.bf16.msra.mxu1 %v3030_v23  ;;  %v3088_v23 = vld [vmem:[%s3235_s17 + $0x430] sm:$0xff] }
  0x5e   : > { %1921 = vmatpush.bf16.msra.mxu2 %v3038_v24  ;;  %v3096_v24 = vld [vmem:[%s3235_s17 + $0x470] sm:$0xff] }
  0x5f   : > { %1934 = vmatpush.bf16.msra.mxu3 %v3046_v25  ;;  %v3104_v25 = vld [vmem:[%s3235_s17 + $0x4b0] sm:$0xff] }
  0x60   : > { %1896 = vmatpush.bf16.msra.mxu0 %v3021_v26  ;;  %v3112_v26 = vld [vmem:[%s3235_s17 + $0x4f0] sm:$0xff] }
  0x61   : > { %1909 = vmatpush.bf16.msra.mxu1 %v3029_v27  ;;  %v3087_v27 = vld [vmem:[%s3235_s17 + $0x428] sm:$0xff] }
  0x62   : > { %1922 = vmatpush.bf16.msra.mxu2 %v3037_v28  ;;  %v3095_v28 = vld [vmem:[%s3235_s17 + $0x468] sm:$0xff] }
  0x63   : > { %1935 = vmatpush.bf16.msra.mxu3 %v3045_v29  ;;  %v3103_v29 = vld [vmem:[%s3235_s17 + $0x4a8] sm:$0xff] }
  0x64   : > { %1897 = vmatpush.bf16.msra.mxu0 %v3020_v30  ;;  %v3111_v30 = vld [vmem:[%s3235_s17 + $0x4e8] sm:$0xff] }
  0x65   : > { %1910 = vmatpush.bf16.msra.mxu1 %v3028_v31  ;;  %v3086_v31 = vld [vmem:[%s3235_s17 + $0x420] sm:$0xff] }
  0x66   : > { %1923 = vmatpush.bf16.msra.mxu2 %v3036_v32  ;;  %v3094_v32 = vld [vmem:[%s3235_s17 + $0x460] sm:$0xff] }
  0x67   : > { %1936 = vmatpush.bf16.msra.mxu3 %v3044_v33  ;;  %v3102_v33 = vld [vmem:[%s3235_s17 + $0x4a0] sm:$0xff] }
  0x68   : > { %1898 = vmatpush.bf16.msra.mxu0 %v3019_v34  ;;  %v3110_v34 = vld [vmem:[%s3235_s17 + $0x4e0] sm:$0xff] }
  0x69   : > { %1911 = vmatpush.bf16.msra.mxu1 %v3027_v35  ;;  %v3085_v35 = vld [vmem:[%s3235_s17 + $0x418] sm:$0xff] }
  0x6a   : > { %1924 = vmatpush.bf16.msra.mxu2 %v3035_v36  ;;  %v3093_v36 = vld [vmem:[%s3235_s17 + $0x458] sm:$0xff] }
  0x6b   : > { %1937 = vmatpush.bf16.msra.mxu3 %v3043_v37  ;;  %v3101_v37 = vld [vmem:[%s3235_s17 + $0x498] sm:$0xff] }
  0x6c   : > { %1899 = vmatpush.bf16.msra.mxu0 %v3018_v38  ;;  %v3109_v38 = vld [vmem:[%s3235_s17 + $0x4d8] sm:$0xff] }
  0x6d   : > { %1912 = vmatpush.bf16.msra.mxu1 %v3026_v39  ;;  %v3084_v39 = vld [vmem:[%s3235_s17 + $0x410] sm:$0xff] }
  0x6e   : > { %1925 = vmatpush.bf16.msra.mxu2 %v3034_v40  ;;  %v3092_v40 = vld [vmem:[%s3235_s17 + $0x450] sm:$0xff] }
  0x6f   : > { %1938 = vmatpush.bf16.msra.mxu3 %v3042_v41  ;;  %1900 = vmatmul.bf16.vlgmr.msra.gmra.mxu0 %v594_v47  ;;  %v3100_v41 = vld [vmem:[%s3235_s17 + $0x490] sm:$0xff]  ;;  %v3082_v47 = vld [vmem:[%s3235_s17 + $0x400] sm:$0xff] }
  0x70   : > { %1944 = vmatpush.bf16.msrb.mxu0 %v3057_v42  ;;  %1913 = vmatmul.bf16.vlgmr.msra.gmra.mxu1 %v595_v49  ;;  %v3108_v42 = vld [vmem:[%s3235_s17 + $0x4d0] sm:$0xff]  ;;  %v3098_v49 = vld [vmem:[%s3235_s17 + $0x480] sm:$0xff] }
  0x71   : > { %1957 = vmatpush.bf16.msrb.mxu1 %v3065_v43  ;;  %1926 = vmatmul.bf16.vlgmr.msra.gmra.mxu2 %v596_v48  ;;  %v3083_v43 = vld [vmem:[%s3235_s17 + $0x408] sm:$0xff]  ;;  %v3090_v48 = vld [vmem:[%s3235_s17 + $0x440] sm:$0xff] }
  0x72   : > { %1970 = vmatpush.bf16.msrb.mxu2 %v3073_v45  ;;  %1939 = vmatmul.bf16.vlgmr.msra.gmra.mxu3 %v597_v50  ;;  %v3099_v45 = vld [vmem:[%s3235_s17 + $0x488] sm:$0xff]  ;;  %v3106_v50 = vld [vmem:[%s3235_s17 + $0x4c0] sm:$0xff] }
  0x73   : > { %1983 = vmatpush.bf16.msrb.mxu3 %v3081_v46  ;;  %v3107_v46 = vld [vmem:[%s3235_s17 + $0x4c8] sm:$0xff] }
  0x74   : > { %1945 = vmatpush.bf16.msrb.mxu0 %v3056_v51  ;;  %v3121_v51 = vld [vmem:[%s3235_s17 + $0x538] sm:$0xff] }
  0x75   : > { %1958 = vmatpush.bf16.msrb.mxu1 %v3064_v52  ;;  %v3129_v52 = vld [vmem:[%s3235_s17 + $0x578] sm:$0xff] }
  0x76   : > { %1971 = vmatpush.bf16.msrb.mxu2 %v3072_v53  ;;  %v3137_v53 = vld [vmem:[%s3235_s17 + $0x5b8] sm:$0xff] }
  0x77   : > { %1984 = vmatpush.bf16.msrb.mxu3 %v3080_v54  ;;  %v3145_v54 = vld [vmem:[%s3235_s17 + $0x5f8] sm:$0xff] }
  0x78   : > { %1946 = vmatpush.bf16.msrb.mxu0 %v3055_v59  ;;  %v3120_v59 = vld [vmem:[%s3235_s17 + $0x530] sm:$0xff] }
  0x79   : > { %1959 = vmatpush.bf16.msrb.mxu1 %v3063_v60  ;;  %v3128_v60 = vld [vmem:[%s3235_s17 + $0x570] sm:$0xff] }
  0x7a   : > { %1972 = vmatpush.bf16.msrb.mxu2 %v3071_v61  ;;  %v3136_v61 = vld [vmem:[%s3235_s17 + $0x5b0] sm:$0xff] }
  0x7b   : > { %1985 = vmatpush.bf16.msrb.mxu3 %v3079_v62  ;;  %v3144_v62 = vld [vmem:[%s3235_s17 + $0x5f0] sm:$0xff] }
  0x7c   : > { %1947 = vmatpush.bf16.msrb.mxu0 %v3054_v63  ;;  %v3119_v63 = vld [vmem:[%s3235_s17 + $0x528] sm:$0xff] }
  0x7d   : > { %1960 = vmatpush.bf16.msrb.mxu1 %v3062_v0  ;;  %v3127_v0 = vld [vmem:[%s3235_s17 + $0x568] sm:$0xff] }
  0x7e   : > { %1973 = vmatpush.bf16.msrb.mxu2 %v3070_v1  ;;  %v3135_v1 = vld [vmem:[%s3235_s17 + $0x5a8] sm:$0xff] }
  0x7f   : > { %1986 = vmatpush.bf16.msrb.mxu3 %v3078_v2  ;;  %v3143_v2 = vld [vmem:[%s3235_s17 + $0x5e8] sm:$0xff] }
  0x80   : > { %1948 = vmatpush.bf16.msrb.mxu0 %v3053_v3 }
  0x81   : > { %1961 = vmatpush.bf16.msrb.mxu1 %v3061_v4  ;;  %v3118_v4 = vld [vmem:[%s3235_s17 + $0x520] sm:$0xff] }
  0x82   : > { %1974 = vmatpush.bf16.msrb.mxu2 %v3069_v5  ;;  %v3126_v5 = vld [vmem:[%s3235_s17 + $0x560] sm:$0xff] }
  0x83   : > { %1987 = vmatpush.bf16.msrb.mxu3 %v3077_v6 }
  0x84   : > { %1949 = vmatpush.bf16.msrb.mxu0 %v3052_v7  ;;  %v3134_v7 = vld [vmem:[%s3235_s17 + $0x5a0] sm:$0xff] }
  0x85   : > { %1962 = vmatpush.bf16.msrb.mxu1 %v3060_v8  ;;  %v3142_v8 = vld [vmem:[%s3235_s17 + $0x5e0] sm:$0xff] }
  0x86   : > { %1975 = vmatpush.bf16.msrb.mxu2 %v3068_v9 }
  0x87   : > { %1988 = vmatpush.bf16.msrb.mxu3 %v3076_v10  ;;  %v3117_v10 = vld [vmem:[%s3235_s17 + $0x518] sm:$0xff] }
  0x88   : > { %1950 = vmatpush.bf16.msrb.mxu0 %v3051_v11  ;;  %v3125_v11 = vld [vmem:[%s3235_s17 + $0x558] sm:$0xff] }
  0x89   : > { %1963 = vmatpush.bf16.msrb.mxu1 %v3059_v12  ;;  %v3133_v12 = vld [vmem:[%s3235_s17 + $0x598] sm:$0xff] }
  0x8a   : > { %1976 = vmatpush.bf16.msrb.mxu2 %v3067_v13  ;;  %v3141_v13 = vld [vmem:[%s3235_s17 + $0x5d8] sm:$0xff] }
  0x8b   : > { %1989 = vmatpush.bf16.msrb.mxu3 %v3075_v14 }
  0x8c   : > { %1951 = vmatpush.bf16.msrb.mxu0 %v3050_v15 }
  0x8d   : > { %1964 = vmatpush.bf16.msrb.mxu1 %v3058_v16 }
  0x8e   : > { %1977 = vmatpush.bf16.msrb.mxu2 %v3066_v17 }
  0x8f   : > { %1990 = vmatpush.bf16.msrb.mxu3 %v3074_v18  ;;  %1952 = vmatmul.bf16.vlgmr.msrb.gmra.mxu0 %v3350_v55  ;;  %v604_v55 = vld [vmem:[#allocation1] sm:$0xff]  ;;  %v3116_v18 = vld [vmem:[%s3235_s17 + $0x510] sm:$0xff] }
  0x90   : > { %1996 = vmatpush.bf16.msra.mxu0 %v3089_v19  ;;  %1965 = vmatmul.bf16.vlgmr.msrb.gmra.mxu1 %v3354_v57  ;;  %v605_v57 = vld [vmem:[#allocation1 + $0x9] sm:$0xff] }
  0x91   : > { %2009 = vmatpush.bf16.msra.mxu1 %v3097_v20  ;;  %1978 = vmatmul.bf16.vlgmr.msrb.gmra.mxu2 %v3352_v56  ;;  %v606_v56 = vld [vmem:[#allocation1 + $0x12] sm:$0xff] }
  0x92   : > { %2022 = vmatpush.bf16.msra.mxu2 %v3105_v21  ;;  %1991 = vmatmul.bf16.vlgmr.msrb.gmra.mxu3 %v3356_v58  ;;  %v607_v58 = vld [vmem:[#allocation1 + $0x1b] sm:$0xff]  ;;  %v3124_v19 = vld [vmem:[%s3235_s17 + $0x550] sm:$0xff] }
  0x93   : > { %2035 = vmatpush.bf16.msra.mxu3 %v3113_v22  ;;  %v3132_v22 = vld [vmem:[%s3235_s17 + $0x590] sm:$0xff] }
  0x94   : > { %1997 = vmatpush.bf16.msra.mxu0 %v3088_v23  ;;  %v3140_v23 = vld [vmem:[%s3235_s17 + $0x5d0] sm:$0xff] }
  0x95   : > { %2010 = vmatpush.bf16.msra.mxu1 %v3096_v24  ;;  %v3115_v24 = vld [vmem:[%s3235_s17 + $0x508] sm:$0xff] }
  0x96   : > { %2023 = vmatpush.bf16.msra.mxu2 %v3104_v25  ;;  %v3123_v25 = vld [vmem:[%s3235_s17 + $0x548] sm:$0xff] }
  0x97   : > { %2036 = vmatpush.bf16.msra.mxu3 %v3112_v26  ;;  %v3131_v26 = vld [vmem:[%s3235_s17 + $0x588] sm:$0xff] }
  0x98   : > { %1998 = vmatpush.bf16.msra.mxu0 %v3087_v27  ;;  %v3139_v27 = vld [vmem:[%s3235_s17 + $0x5c8] sm:$0xff] }
  0x99   : > { %2011 = vmatpush.bf16.msra.mxu1 %v3095_v28 }
  0x9a   : > { %2024 = vmatpush.bf16.msra.mxu2 %v3103_v29 }
  0x9b   : > { %2037 = vmatpush.bf16.msra.mxu3 %v3111_v30  ;;  %v3114_v30 = vld [vmem:[%s3235_s17 + $0x500] sm:$0xff] }
  0x9c   : > { %1999 = vmatpush.bf16.msra.mxu0 %v3086_v31  ;;  %v3122_v31 = vld [vmem:[%s3235_s17 + $0x540] sm:$0xff] }
  0x9d   : > { %2012 = vmatpush.bf16.msra.mxu1 %v3094_v32  ;;  %v3130_v32 = vld [vmem:[%s3235_s17 + $0x580] sm:$0xff] }
  0x9e   : > { %2025 = vmatpush.bf16.msra.mxu2 %v3102_v33  ;;  %v3138_v33 = vld [vmem:[%s3235_s17 + $0x5c0] sm:$0xff] }
  0x9f   : > { %2038 = vmatpush.bf16.msra.mxu3 %v3110_v34  ;;  %v608_v34 = vld [vmem:[#allocation1 + $0x24] sm:$0xff] }
  0xa0   : > { %2000 = vmatpush.bf16.msra.mxu0 %v3085_v35  ;;  %v609_v35 = vld [vmem:[#allocation1 + $0x2d] sm:$0xff] }
  0xa1   : > { %2013 = vmatpush.bf16.msra.mxu1 %v3093_v36  ;;  %v610_v36 = vld [vmem:[#allocation1 + $0x36] sm:$0xff] }
  0xa2   : > { %2026 = vmatpush.bf16.msra.mxu2 %v3101_v37  ;;  %v611_v37 = vld [vmem:[#allocation1 + $0x3f] sm:$0xff] }
  0xa3   : > { %2039 = vmatpush.bf16.msra.mxu3 %v3109_v38 }
  0xa4   : > { %2001 = vmatpush.bf16.msra.mxu0 %v3084_v39 }
  0xa5   : > { %2014 = vmatpush.bf16.msra.mxu1 %v3092_v40 }
  0xa6   : > { %2027 = vmatpush.bf16.msra.mxu2 %v3100_v41 }
  0xa7   : > { %2040 = vmatpush.bf16.msra.mxu3 %v3108_v42 }
  0xa8   : > { %2002 = vmatpush.bf16.msra.mxu0 %v3083_v43 }
  0xa9   : > { %2015 = vmatpush.bf16.msra.mxu1 %v3091_v44 }
  0xaa   : > { %2028 = vmatpush.bf16.msra.mxu2 %v3099_v45 }
  0xab   : > { %2041 = vmatpush.bf16.msra.mxu3 %v3107_v46 }
  0xac   : > { %2003 = vmatpush.bf16.msra.mxu0 %v3082_v47  ;;  %v1797_v3 = vpop.f32.mrf.mxu0 }
  0xad   : > { %2016 = vmatpush.bf16.msra.mxu1 %v3090_v48  ;;  %v1810_v6 = vpop.f32.mrf.mxu1 }
  0xae   : > { %2029 = vmatpush.bf16.msra.mxu2 %v3098_v49  ;;  %v1811_v9 = vadd.f32 %v1810_v6, %v1797_v3 }
  0xaf   : > { %2042 = vmatpush.bf16.msra.mxu3 %v3106_v50  ;;  %2004 = vmatmul.bf16.vlgmr.msra.gmra.mxu0 %v604_v55 }
  0xb0   : > { %2048 = vmatpush.bf16.msrb.mxu0 %v3121_v51  ;;  %2017 = vmatmul.bf16.vlgmr.msra.gmra.mxu1 %v605_v57 }
  0xb1   : > { %2061 = vmatpush.bf16.msrb.mxu1 %v3129_v52  ;;  %2030 = vmatmul.bf16.vlgmr.msra.gmra.mxu2 %v606_v56 }
  0xb2   : > { %2074 = vmatpush.bf16.msrb.mxu2 %v3137_v53  ;;  %2043 = vmatmul.bf16.vlgmr.msra.gmra.mxu3 %v607_v58 }
  0xb3   : > { %2087 = vmatpush.bf16.msrb.mxu3 %v3145_v54 }
  0xb4   : > { %2049 = vmatpush.bf16.msrb.mxu0 %v3120_v59  ;;  %v1823_v14 = vpop.f32.mrf.mxu2  ;;  %v1799_v17 = vpop.f32.mrf.mxu0 }
  0xb5   : > { %2062 = vmatpush.bf16.msrb.mxu1 %v3128_v60  ;;  %v1824_v15 = vadd.f32 %v1823_v14, %v1811_v9  ;;  %v1836_v16 = vpop.f32.mrf.mxu3  ;;  %v1812_v21 = vpop.f32.mrf.mxu1 }
  0xb6   : > { %2075 = vmatpush.bf16.msrb.mxu2 %v3136_v61 }
  0xb7   : > { %2088 = vmatpush.bf16.msrb.mxu3 %v3144_v62  ;;  %v1837_v20 = vadd.f32 %v1836_v16, %v1824_v15 }
  0xb8   : > { %2050 = vmatpush.bf16.msrb.mxu0 %v3119_v63 }
  0xb9   : > { %2063 = vmatpush.bf16.msrb.mxu1 %v3127_v0 }
  0xba   : > { %2076 = vmatpush.bf16.msrb.mxu2 %v3135_v1 }
  0xbb   : > { %2089 = vmatpush.bf16.msrb.mxu3 %v3143_v2 }
  0xbc   : > { %2051 = vmatpush.bf16.msrb.mxu0 %v3118_v4  ;;  %v1825_v28 = vpop.f32.mrf.mxu2 }
  0xbd   : > { %2064 = vmatpush.bf16.msrb.mxu1 %v3126_v5  ;;  %v1838_v29 = vpop.f32.mrf.mxu3 }
  0xbe   : > { %2077 = vmatpush.bf16.msrb.mxu2 %v3134_v7 }
  0xbf   : > { %2090 = vmatpush.bf16.msrb.mxu3 %v3142_v8  ;;  %v3195_v8 = vmov 0.0  }
  0xc0   : > { %2052 = vmatpush.bf16.msrb.mxu0 %v3117_v10  ;;  %193 = vst [vmem:[#allocation2] sm:$0x3] %v3195_v8 }
  0xc1   : > { %2065 = vmatpush.bf16.msrb.mxu1 %v3125_v11 }
  0xc2   : > { %2078 = vmatpush.bf16.msrb.mxu2 %v3133_v12 }
  0xc3   : > { %2091 = vmatpush.bf16.msrb.mxu3 %v3141_v13 }
  0xc4   : > { %2053 = vmatpush.bf16.msrb.mxu0 %v3116_v18 }
  0xc5   : > { %2066 = vmatpush.bf16.msrb.mxu1 %v3124_v19 }
  0xc6   : > { %2079 = vmatpush.bf16.msrb.mxu2 %v3132_v22 }
  0xc7   : > { %2092 = vmatpush.bf16.msrb.mxu3 %v3140_v23 }
  0xc8   : > { %2054 = vmatpush.bf16.msrb.mxu0 %v3115_v24 }
  0xc9   : > { %2067 = vmatpush.bf16.msrb.mxu1 %v3123_v25 }
  0xca   : > { %2080 = vmatpush.bf16.msrb.mxu2 %v3131_v26 }
  0xcb   : > { %2093 = vmatpush.bf16.msrb.mxu3 %v3139_v27 }
  0xcc   : > { %2055 = vmatpush.bf16.msrb.mxu0 %v3114_v30  ;;  %v1849_v38 = vpop.f32.mrf.mxu0 }
  0xcd   : > { %2068 = vmatpush.bf16.msrb.mxu1 %v3122_v31  ;;  %v1850_v39 = vadd.f32 %v1849_v38, %v1837_v20  ;;  %v1862_v40 = vpop.f32.mrf.mxu1 }
  0xce   : > { %2081 = vmatpush.bf16.msrb.mxu2 %v3130_v32  ;;  %v194_v32 = vld [vmem:[#allocation2] sm:$0x3] }
  0xcf   : > { %2094 = vmatpush.bf16.msrb.mxu3 %v3138_v33  ;;  %2056 = vmatmul.bf16.vlgmr.msrb.gmra.mxu0 %v608_v34  ;;  %v1863_v41 = vadd.f32 %v1862_v40, %v1850_v39 }
  0xd0   : > { %2069 = vmatmul.bf16.vlgmr.msrb.gmra.mxu1 %v609_v35 }
  0xd1   : > { %2082 = vmatmul.bf16.vlgmr.msrb.gmra.mxu2 %v610_v36 }
  0xd2   : > { %2095 = vmatmul.bf16.vlgmr.msrb.gmra.mxu3 %v611_v37 }
  0xd4   : > { %v1875_v42 = vpop.f32.mrf.mxu2  ;;  %v1851_v45 = vpop.f32.mrf.mxu0 }
  0xd5   : > { %v1876_v43 = vadd.f32 %v1875_v42, %v1863_v41  ;;  %v1888_v44 = vpop.f32.mrf.mxu3  ;;  %v1864_v47 = vpop.f32.mrf.mxu1 }
  0xd7   : > { %v1889_v46 = vadd.f32 %v1888_v44, %v1876_v43 }
  0xdc   : > { %v1877_v48 = vpop.f32.mrf.mxu2 }
  0xdd   : > { %v1890_v49 = vpop.f32.mrf.mxu3 }
  0xec   : > { %v1901_v50 = vpop.f32.mrf.mxu0 }
  0xed   : > { %v1902_v51 = vadd.f32 %v1901_v50, %v1889_v46  ;;  %v1914_v52 = vpop.f32.mrf.mxu1 }
  0xef   : > { %v1915_v53 = vadd.f32 %v1914_v52, %v1902_v51 }
  0xf4   : > { %v1927_v54 = vpop.f32.mrf.mxu2  ;;  %v1903_v57 = vpop.f32.mrf.mxu0 }
  0xf5   : > { %v1928_v55 = vadd.f32 %v1927_v54, %v1915_v53  ;;  %v1940_v56 = vpop.f32.mrf.mxu3  ;;  %v1916_v59 = vpop.f32.mrf.mxu1 }
  0xf7   : > { %v1941_v58 = vadd.f32 %v1940_v56, %v1928_v55 }
  0xfc   : > { %v1929_v60 = vpop.f32.mrf.mxu2 }
  0xfd   : > { %v1942_v61 = vpop.f32.mrf.mxu3 }
 0x10c   : > { %v1953_v62 = vpop.f32.mrf.mxu0 }
 0x10d   : > { %v1966_v63 = vpop.f32.mrf.mxu1  ;;  %v1954_v10 = vadd.f32 %v1953_v62, %v1941_v58 }
 0x10f   : > { %v1967_v14 = vadd.f32 %v1966_v63, %v1954_v10 }
 0x114   : > { %v1979_v0 = vpop.f32.mrf.mxu2  ;;  %v1955_v2 = vpop.f32.mrf.mxu0 }
 0x115   : > { %v1992_v1 = vpop.f32.mrf.mxu3  ;;  %v1968_v3 = vpop.f32.mrf.mxu1  ;;  %v1980_v15 = vadd.f32 %v1979_v0, %v1967_v14 }
 0x117   : > { %v1993_v18 = vadd.f32 %v1992_v1, %v1980_v15 }
 0x11c   : > { %v1981_v4 = vpop.f32.mrf.mxu2 }
 0x11d   : > { %v1994_v5 = vpop.f32.mrf.mxu3 }
 0x12c   : > { %v2005_v6 = vpop.f32.mrf.mxu0 }
 0x12d   : > { %v2018_v7 = vpop.f32.mrf.mxu1  ;;  %v2006_v19 = vadd.f32 %v2005_v6, %v1993_v18 }
 0x12f   : > { %v2019_v20 = vadd.f32 %v2018_v7, %v2006_v19 }
 0x134   : > { %v2031_v9 = vpop.f32.mrf.mxu2  ;;  %v2007_v12 = vpop.f32.mrf.mxu0 }
 0x135   : > { %v2044_v11 = vpop.f32.mrf.mxu3  ;;  %v2020_v13 = vpop.f32.mrf.mxu1  ;;  %v2032_v21 = vadd.f32 %v2031_v9, %v2019_v20 }
 0x137   : > { %v2045_v22 = vadd.f32 %v2044_v11, %v2032_v21 }
 0x13c   : > { %v2033_v16 = vpop.f32.mrf.mxu2 }
 0x13d   : > { %v2046_v17 = vpop.f32.mrf.mxu3 }
 0x14c   : > { %v2057_v23 = vpop.f32.mrf.mxu0 }
 0x14d   : > { %v2070_v24 = vpop.f32.mrf.mxu1  ;;  %v2058_v25 = vadd.f32 %v2057_v23, %v2045_v22 }
 0x14f   : > { %v2071_v26 = vadd.f32 %v2070_v24, %v2058_v25 }
 0x154   : > { %v2083_v27 = vpop.f32.mrf.mxu2  ;;  %v2059_v30 = vpop.f32.mrf.mxu0 }
 0x155   : > { %v2096_v28 = vpop.f32.mrf.mxu3  ;;  %v2084_v29 = vadd.f32 %v2083_v27, %v2071_v26  ;;  %v2072_v31 = vpop.f32.mrf.mxu1 }
 0x157   : > { %v2097_v33 = vadd.f32 %v2096_v28, %v2084_v29 }
 0x159   : > { %v2100_v34 = vadd.f32 %v2097_v33, %v194_v32 }
 0x15b   : > { %2101 = vst [vmem:[#allocation2] sm:$0x3] %v2100_v34 }
 0x15c   : > { %v2085_v35 = vpop.f32.mrf.mxu2 }
 0x15d   : > { %v2098_v36 = vpop.f32.mrf.mxu3 }
 0x162   : > { %v2105_v37 = vld [vmem:[#allocation2] sm:$0x3] }
 0x163   : > { %2106 = vst [vmem:[%s188_s25] sm:$0x3] %v2105_v37 }
 0x164 PF: > { %s12_s11 = sadd.s32 1, %s3193_s11   ;;  %s3467_s9 = smov %s3189_s10 }
 0x165   : > { %p9_p7 = scmp.ge.s32.totalorder %s12_s11, 4   ;;  %s3468_s10 = smov %s3470_s12 }
 0x167   :  { %11 = sbr.rel (!%p9_p7) target bundleno = 2 (0x2), region = 69 }

</bundles_post_ra>
